<compile_context>
chip_gen: v7x
topology: tpu7x:2x2x1
jax: 0.10.0
libtpu: 0.0.40
codegen_flags: <defaults>
</compile_context>

<pallas_src>
import functools

import jax
import jax.numpy as jnp
from jax.experimental import pallas as pl
from jax.experimental.pallas import tpu as pltpu


def convkb_kernel(x_ref, w_ref, wf_ref, bf_ref, out_ref):
    # x_ref  : (K, TB)    bf16 batch tile, batch on lanes; K = S*D+1 zero-padded to 128.
    #                     Row S*D is all-ones (feeds the folded conv bias), rows after are 0.
    # w_ref  : (O*D, K)   bf16 BN-folded conv weight + bias column (+ zero K-padding).
    # wf_ref : (1, O*D)   bf16 fc weight, o-major (matches torch .view(batch, -1)).
    # bf_ref : (1, 1)     f32 fc bias scalar, in SMEM.
    # out_ref: (1, 1, TB) f32 per-tile scores, batch on lanes (lane-dense store).
    featT = jnp.dot(w_ref[...], x_ref[...],
                    preferred_element_type=jnp.float32)          # (O*D, TB) on the MXU
    featT = jnp.maximum(featT, 0.0)                              # ReLU on the VPU
    # TODO(synk): nn.Dropout is identity in eval mode; not applied here.
    out = jnp.dot(wf_ref[...], featT.astype(jnp.bfloat16),
                  preferred_element_type=jnp.float32)            # (1, TB) on the MXU
    out_ref[0] = out + bf_ref[0, 0]


def fold_convkb_params(wc, bc, gamma, beta, run_mean, run_var, eps, wf, D):
    """Fold inference-mode BatchNorm into the conv, expand to a lane-dense
    (O*D, K) matrix (K = S*D+1 rounded up to 128) so the whole conv+bias is a
    single aligned matmul, and cast the weights to bf16 for halved HBM DMA.

    wc: (O, S) conv weight (squeezed torch (O,1,1,S));  bc: (O,) conv bias
    gamma/beta/run_mean/run_var: (O,) BatchNorm1d params;  wf: (1, O*D) fc weight.
    """
    O, S = wc.shape
    scale = gamma * jax.lax.rsqrt(run_var + eps)           # (O,)
    shift = beta - run_mean * scale                        # (O,)
    wc_fold = wc * scale[:, None]                          # (O, S)  BN folded into conv weight
    bias_fold = bc * scale + shift                         # (O,)    BN folded into conv bias
    # W_conv[o*D + d, s*D + d'] = wc_fold[o, s] * (d == d')
    eye = jnp.eye(D, dtype=wc.dtype)
    w_conv = jnp.einsum('os,de->odse', wc_fold, eye).reshape(O * D, S * D)
    bias_col = jnp.repeat(bias_fold, D)[:, None]           # (O*D, 1)
    w_aug = jnp.concatenate([w_conv, bias_col], axis=1)    # (O*D, S*D + 1)
    k = w_aug.shape[1]
    k_pad = -(-k // 128) * 128                             # align contraction dim to 128 lanes
    if k_pad != k:
        w_aug = jnp.pad(w_aug, ((0, 0), (0, k_pad - k)))   # zero K-padding (no effect on math)
    return w_aug.astype(jnp.bfloat16), wf.reshape(1, O * D).astype(jnp.bfloat16)


def _pick_batch_tiling(B, max_tb):
    """Pick (tb, num_tiles): fewest lane-aligned grid steps with tb <= max_tb.
    When more than one tile is needed, use an even tile count so the 'parallel'
    grid splits evenly across v7x's two TensorCores (no-op on v5e/v6e)."""
    blocks = -(-B // 128)                 # batch in units of 128 lanes
    if blocks * 128 <= max_tb:
        return blocks * 128, 1            # single grid step (e.g. B=300 -> tb=384)
    num_tiles = -(-(blocks * 128) // max_tb)
    if num_tiles % 2:
        num_tiles += 1                    # even tile count for 2-TC balance
    tb = -(-blocks // num_tiles) * 128
    return tb, num_tiles


@functools.partial(jax.jit, static_argnames=("max_tb",))
def convkb_forward(x, w_aug, wf_flat, bf, *, max_tb=512):
    """x: (B, S, D) float32 triples. Returns (B, 1) ConvKB scores (float32)."""
    B, S, D = x.shape
    OD = wf_flat.shape[1]
    K = w_aug.shape[1]                    # lane-aligned contraction dim (S*D+1 -> 128)
    tb, num_tiles = _pick_batch_tiling(B, max_tb)
    Bp = tb * num_tiles

    # Layout plumbing only: flatten (S, D), append the ones row that feeds the folded
    # conv bias, zero-pad the contraction dim to K and the batch to a tile multiple,
    # put the batch axis on lanes, and carry the tile as bf16 (f32 accumulation in-kernel).
    x_flat = x.reshape(B, S * D)
    x_aug = jnp.concatenate([x_flat, jnp.ones((B, 1), x_flat.dtype)], axis=1)  # (B, S*D+1)
    x_aug = jnp.pad(x_aug, ((0, Bp - B), (0, K - (S * D + 1))))                # (Bp, K)
    x_cols = x_aug.T.astype(jnp.bfloat16)                                      # (K, Bp)

    out = pl.pallas_call(
        convkb_kernel,
        out_shape=jax.ShapeDtypeStruct((num_tiles, 1, tb), jnp.float32),
        grid_spec=pltpu.PrefetchScalarGridSpec(
            num_scalar_prefetch=0,
            grid=(num_tiles,),
            in_specs=[
                pl.BlockSpec((K, tb), lambda i: (0, i)),            # batch tile of inputs
                pl.BlockSpec((OD, K), lambda i: (0, 0)),            # folded conv weight (loaded once)
                pl.BlockSpec((1, OD), lambda i: (0, 0)),            # fc weight (loaded once)
                pl.BlockSpec(memory_space=pltpu.MemorySpace.SMEM),  # fc bias scalar
            ],
            out_specs=pl.BlockSpec((1, 1, tb), lambda i: (i, 0, 0)),
        ),
        compiler_params=pltpu.CompilerParams(
            dimension_semantics=("parallel",),   # batch tiles split across TCs on v7x
        ),
    )(x_cols, w_aug, wf_flat, bf)

    return out.reshape(Bp, 1)[:B]


def xavier_uniform(key, shape, fan_in, fan_out, gain):
    bound = gain * jnp.sqrt(6.0 / (fan_in + fan_out))
    return jax.random.uniform(key, shape, jnp.float32, -bound, bound)


if __name__ == "__main__":
    # ConvKB(input_dim=D, input_seq_len=S, in_channels=1, out_channels=O).
    # O must be 50 to match the hard-coded BatchNorm1d(50); S=3 for (h, r, t) triples.
    B, S, D, O = 300, 3, 32, 50
    key = jax.random.PRNGKey(0)
    k_x, k_wc, k_bc, k_wf, k_bf = jax.random.split(key, 5)

    # conv_input: (batch, length=seq_len, dim)
    x = jax.random.normal(k_x, (B, S, D), jnp.float32)

    # Conv2d weight (O, 1, 1, S): xavier_uniform gain=1.414, fan_in=S, fan_out=O*S.
    wc = xavier_uniform(k_wc, (O, S), fan_in=S, fan_out=O * S, gain=1.414)
    bc = jax.random.uniform(k_bc, (O,), jnp.float32,
                            -1.0 / jnp.sqrt(float(S)), 1.0 / jnp.sqrt(float(S)))

    # Linear weight (1, O*D): xavier_uniform gain=1.414, fan_in=O*D, fan_out=1.
    wf = xavier_uniform(k_wf, (1, O * D), fan_in=O * D, fan_out=1, gain=1.414)
    bf = jax.random.uniform(k_bf, (1, 1), jnp.float32,
                            -1.0 / jnp.sqrt(float(O * D)), 1.0 / jnp.sqrt(float(O * D)))

    # BatchNorm1d(50) parameters at default init (inference mode).
    eps = 1e-5
    gamma = jnp.ones((O,), jnp.float32)
    beta = jnp.zeros((O,), jnp.float32)
    run_mean = jnp.zeros((O,), jnp.float32)
    run_var = jnp.ones((O,), jnp.float32)

    # One-time host-side weight folding/expansion (BN fold + lane-dense, K-padded, bf16).
    w_aug, wf_flat = fold_convkb_params(wc, bc, gamma, beta, run_mean, run_var, eps, wf, D)

    out = jax.block_until_ready(convkb_forward(x, w_aug, wf_flat, bf))

    # Plain-JAX f32 reference (pure elementwise/reduce ops, exact f32 accumulation).
    bn_scale = gamma * jax.lax.rsqrt(run_var + eps)
    bn_shift = beta - run_mean * bn_scale
    feat_ref = jnp.sum(x[:, None, :, :] * wc[None, :, :, None], axis=2) + bc[None, :, None]
    feat_ref = feat_ref * bn_scale[None, :, None] + bn_shift[None, :, None]
    feat_ref = jnp.maximum(feat_ref, 0.0)
    ref = jnp.sum(feat_ref.reshape(B, O * D) * wf.reshape(1, O * D),
                  axis=1, keepdims=True) + bf[0, 0]

    assert out.shape == (B, 1)
    # Tolerance loosened vs the f32 reference: kernel uses default-precision (single-pass
    # bf16) MXU matmuls and bf16-carried operands per the perf review.
    assert jnp.allclose(out, ref, rtol=5e-2, atol=5e-2), "mismatch vs. JAX reference"
    print("KERNEL_OK")
</pallas_src>

<mosaic_0001>
module attributes {stable_mosaic.version = 11 : i64} {
  func.func @convkb_kernel(%arg0: i32, %arg1: memref<128x384xbf16, #tpu.memory_space<vmem>>, %arg2: memref<1600x128xbf16, #tpu.memory_space<vmem>>, %arg3: memref<1x1600xbf16, #tpu.memory_space<vmem>>, %arg4: memref<1x1xf32, #tpu.memory_space<smem>>, %arg5: memref<1x1x384xf32, #tpu.memory_space<vmem>>) attributes {dimension_semantics = [#tpu.dimension_semantics<parallel>], iteration_bounds = array<i64: 1>, scalar_prefetch = 0 : i64, scratch_operands = 0 : i64, tpu.core_type = #tpu.core_type<tc>, window_params = [{transform_indices = @transform_0, window_bounds = array<i64: 128, 384>}, {pipeline_mode = #tpu.pipeline_mode<synchronous>, transform_indices = @transform_1, window_bounds = array<i64: 1600, 128>}, {pipeline_mode = #tpu.pipeline_mode<synchronous>, transform_indices = @transform_2, window_bounds = array<i64: 1, 1600>}, {transform_indices = @transform_3, window_bounds = array<i64: 1, 1>}, {transform_indices = @transform_4, window_bounds = array<i64: 1, 1, 384>}]} {
    %c0 = arith.constant 0 : index
    %c0_0 = arith.constant 0 : index
    %0 = vector.load %arg2[%c0, %c0_0] : memref<1600x128xbf16, #tpu.memory_space<vmem>>, vector<1600x128xbf16>
    %c0_1 = arith.constant 0 : index
    %c0_2 = arith.constant 0 : index
    %1 = vector.load %arg1[%c0_1, %c0_2] : memref<128x384xbf16, #tpu.memory_space<vmem>>, vector<128x384xbf16>
    %cst = arith.constant dense<0.000000e+00> : vector<1600x384xf32>
    %2 = tpu.matmul %0, %1, %cst {dimension_numbers = #tpu.dot_dimension_numbers<[1], [0], [0], [1], [0, 0, 1, 1], [], []>} : vector<1600x128xbf16>, vector<128x384xbf16>, vector<1600x384xf32> -> vector<1600x384xf32>
    %cst_3 = arith.constant 0.000000e+00 : f32
    %3 = vector.broadcast %cst_3 : f32 to vector<1600x384xf32>
    %4 = arith.maximumf %2, %3 : vector<1600x384xf32>
    %c0_4 = arith.constant 0 : index
    %c0_5 = arith.constant 0 : index
    %5 = vector.load %arg3[%c0_4, %c0_5] : memref<1x1600xbf16, #tpu.memory_space<vmem>>, vector<1x1600xbf16>
    %6 = arith.truncf %4 : vector<1600x384xf32> to vector<1600x384xbf16>
    %cst_6 = arith.constant dense<0.000000e+00> : vector<1x384xf32>
    %7 = tpu.matmul %5, %6, %cst_6 {dimension_numbers = #tpu.dot_dimension_numbers<[1], [0], [0], [1], [0, 0, 1, 1], [], []>} : vector<1x1600xbf16>, vector<1600x384xbf16>, vector<1x384xf32> -> vector<1x384xf32>
    %c0_7 = arith.constant 0 : index
    %c0_8 = arith.constant 0 : index
    %8 = memref.load %arg4[%c0_7, %c0_8] : memref<1x1xf32, #tpu.memory_space<smem>>
    %9 = vector.broadcast %8 : f32 to vector<1x384xf32>
    %10 = arith.addf %7, %9 : vector<1x384xf32>
    %c0_9 = arith.constant 0 : index
    %c0_10 = arith.constant 0 : index
    %c0_11 = arith.constant 0 : index
    %11 = vector.load %arg5[%c0_9, %c0_10, %c0_11] : memref<1x1x384xf32, #tpu.memory_space<vmem>>, vector<1x1x384xf32>
    %12 = vector.shape_cast %11 : vector<1x1x384xf32> to vector<1x384xf32>
    %13 = vector.shape_cast %10 : vector<1x384xf32> to vector<1x1x384xf32>
    tpu.vector_store %arg5[%c0_9, %c0_10, %c0_11], %13 {strides = array<i32>} : memref<1x1x384xf32, #tpu.memory_space<vmem>>, vector<1x1x384xf32>,
    return
  }
  func.func @transform_0(%arg0: i32) -> (i32, i32) {
    %c0_i32 = arith.constant 0 : i32
    %c0_i32_0 = arith.constant 0 : i32
    return %c0_i32, %arg0 : i32, i32
  }
  func.func @transform_1(%arg0: i32) -> (i32, i32) {
    %c0_i32 = arith.constant 0 : i32
    %c0_i32_0 = arith.constant 0 : i32
    %c0_i32_1 = arith.constant 0 : i32
    return %c0_i32, %c0_i32_0 : i32, i32
  }
  func.func @transform_2(%arg0: i32) -> (i32, i32) {
    %c0_i32 = arith.constant 0 : i32
    %c0_i32_0 = arith.constant 0 : i32
    %c0_i32_1 = arith.constant 0 : i32
    return %c0_i32, %c0_i32_0 : i32, i32
  }
  func.func @transform_3(%arg0: i32) -> (i32, i32) {
    %c0_i32 = arith.constant 0 : i32
    %c0_i32_0 = arith.constant 0 : i32
    %c0_i32_1 = arith.constant 0 : i32
    return %c0_i32, %c0_i32_0 : i32, i32
  }
  func.func @transform_4(%arg0: i32) -> (i32, i32, i32) {
    %c0_i32 = arith.constant 0 : i32
    %c0_i32_0 = arith.constant 0 : i32
    %c0_i32_1 = arith.constant 0 : i32
    return %arg0, %c0_i32, %c0_i32_0 : i32, i32, i32
  }
}

</mosaic_0001>

<bundles_post_ra>
// kernel: convkb_forward.1
= control target key start
LH: loop header
LB: loop body
LE: loop exit
PB: predicated region body
PF: predicated region fallthrough
CT: control target
= control target key end

     0   :  { %10 = vsyncpa [#allocation4], 0  ;;  %s5319_s15 = smov [#allocation3]   ;;  %s6053_s0 = inlined_call_operand.vmem [shape: bf16[128,384], index: 0, kind: input, shape index: {}]   ;;  %s6054_s1 = inlined_call_operand.hbm [shape: bf16[1600,128], index: 1, kind: input, shape index: {}]   ;;  %s6055_s2 = inlined_call_operand.vmem [shape: bf16[1,1600], index: 2, kind: input, shape index: {}]   ;;  %s6056_s3 = inlined_call_operand.<no memory space> [shape: f32[1,1], index: 3, kind: input, shape index: {}]   ;;  %s6057_s4 = inlined_call_operand.vmem [shape: f32[1,1,384], index: 4, kind: output, shape index: {}]  }
   0x1   :  { %s18_s16 = sshll.u32 %s5319_s15, 4  ;;  %s5295_s19 = scalar_lea.hbm %s6054_s1, 12800  ;;  %s19_s16 = int_to_ptr.vmem [resolvable:$true] %s18_s16 }
   0x2   :  { %p5296_p0 = scmp.ne.s32.totalorder %s6054_s1, %s5295_s19  ;;  %p5299_p1 = scmp.lt.u32.totalorder %s5295_s19, %s6054_s1 }
   0x4   :  { %p5301_p2 = pnand %p5299_p1, %p5296_p0 }
   0x6   :  { %5304 = shalt.err (!%p5301_p2)
}
   0x7   :  { %s5305_s24 = scalar_lea.vmem %s19_s16, 12800  ;;  %p5310_p4 = scmp.lt.s32.totalorder %s19_s16, %s19_s16 }
   0x8   :  { %p5306_p3 = scmp.ne.s32.totalorder %s19_s16, %s5305_s24  ;;  %p5311_p5 = scmp.lt.s32.totalorder %s5305_s24, %s5305_s24 }
   0xa   :  { %p5312_p6 = por %p5311_p5, %p5310_p4 }
   0xc   :  { %p5313_p7 = pnand %p5312_p6, %p5306_p3 }
   0xe   :  { %5316 = shalt.err (!%p5313_p7)
}
   0xf   :  { %s5320_s25 = smov 64   ;;  %s5321_s26 = smov 4  }
  0x10   :  { %24 = dma.hbm_to_vmem [thread:$0]  %s6054_s1, 12800, %s19_s16, [#allocation4], %s5320_s25, %s5320_s25, %s5321_s26  }
  0x11   :  { %5317 = dma.done.wait [#allocation4], 12800  }
  0x12   :  { %5318 = vsyncadd [#allocation4], 4294954496  ;;  %v6059_v0 = vmov 0   ;;  %v5105_v1 = vld [vmem:[%s6053_s0 + $0x4] ss:$12 sps:$4 sm:$0xff]   ;;  %v5138_v26 = vld [vmem:[#allocation3 + $0x8] sm:$0xff]  }
  0x13   :  { %1025 = vmatprep.mubr.bf16.mxu0 %v6059_v0  ;;  %v5107_v2 = vld [vmem:[%s6053_s0 + $0x8] ss:$12 sps:$4 sm:$0xff]   ;;  %993 = vmatprep.subr.bf16.mxu0 %v5105_v1  ;;  %v5108_v3 = vld [vmem:[%s6053_s0] ss:$12 sps:$4 sm:$0xff]   ;;  %v5112_v6 = vld [vmem:[%s6053_s0 + $0x18] ss:$12 sps:$4 sm:$0xff]  }
  0x14   :  { %4844 = vmatprep.subr.bf16.mxu1 %v5107_v2  ;;  %v5109_v4 = vld [vmem:[%s6053_s0 + $0x1c] ss:$12 sps:$4 sm:$0xff]   ;;  %994 = vmatpush1.bf16.msra.mxu0 %v5108_v3  ;;  %v5111_v5 = vld [vmem:[%s6053_s0 + $0x20] ss:$12 sps:$4 sm:$0xff]   ;;  %v5115_v8 = vld [vmem:[%s6053_s0 + $0x38] ss:$12 sps:$4 sm:$0xff]  }
  0x15   :  { %4845 = vmatpush3.bf16.msra.mxu1 %v5107_v2  ;;  %995 = vmatprep.subr.bf16.mxu0 %v5109_v4  ;;  %v5113_v7 = vld [vmem:[%s6053_s0 + $0x34] ss:$12 sps:$4 sm:$0xff]   ;;  %v5116_v9 = vld [vmem:[%s6053_s0 + $0x30] ss:$12 sps:$4 sm:$0xff]   ;;  %v5117_v10 = vld [vmem:[%s6053_s0 + $0x4c] ss:$12 sps:$4 sm:$0xff]  }
  0x16   :  { %4846 = vmatprep.subr.bf16.mxu1 %v5111_v5  ;;  %v5119_v11 = vld [vmem:[%s6053_s0 + $0x50] ss:$12 sps:$4 sm:$0xff]   ;;  %v5120_v12 = vld [vmem:[%s6053_s0 + $0x48] ss:$12 sps:$4 sm:$0xff]   ;;  %v5124_v15 = vld [vmem:[%s6053_s0 + $0x60] ss:$12 sps:$4 sm:$0xff]  }
  0x17   :  { %v5121_v13 = vld [vmem:[%s6053_s0 + $0x64] ss:$12 sps:$4 sm:$0xff]   ;;  %v5123_v14 = vld [vmem:[%s6053_s0 + $0x68] ss:$12 sps:$4 sm:$0xff]   ;;  %v5127_v17 = vld [vmem:[%s6053_s0 + $0x80] ss:$12 sps:$4 sm:$0xff]  }
  0x18   :  { %996 = vmatpush1.bf16.msra.mxu0 %v5112_v6  ;;  %v5125_v16 = vld [vmem:[%s6053_s0 + $0x7c] ss:$12 sps:$4 sm:$0xff]   ;;  %v5128_v18 = vld [vmem:[%s6053_s0 + $0x78] ss:$12 sps:$4 sm:$0xff]   ;;  %v5129_v20 = vld [vmem:[%s6053_s0 + $0x94] ss:$12 sps:$4 sm:$0xff]  }
  0x19   :  { %4847 = vmatpush3.bf16.msra.mxu1 %v5111_v5  ;;  %997 = vmatprep.subr.bf16.mxu0 %v5113_v7  ;;  %v5137_v19 = vld [vmem:[#allocation3] sm:$0xff]   ;;  %v5132_v22 = vld [vmem:[%s6053_s0 + $0x90] ss:$12 sps:$4 sm:$0xff]   ;;  %v5133_v23 = vld [vmem:[%s6053_s0 + $0xac] ss:$12 sps:$4 sm:$0xff]   ;;  %vm3865_vm0 = vcmask 523264  }
  0x1a   :  { %4848 = vmatprep.subr.bf16.mxu1 %v5115_v8  ;;  %v5131_v21 = vld [vmem:[%s6053_s0 + $0x98] ss:$12 sps:$4 sm:$0xff]   ;;  %4860 = vmatprep.mubr.bf16.mxu1 %v5137_v19  ;;  %v5135_v24 = vld [vmem:[%s6053_s0 + $0xb0] ss:$12 sps:$4 sm:$0xff]   ;;  %v5136_v25 = vld [vmem:[%s6053_s0 + $0xa8] ss:$12 sps:$4 sm:$0xff]  }
  0x1b   :  { %v5139_v27 = vld [vmem:[#allocation3 + $0x10] sm:$0xff]   ;;  %v5140_v28 = vld [vmem:[#allocation3 + $0x18] sm:$0xff]   ;;  %v5141_v29 = vld [vmem:[#allocation3 + $0x20] sm:$0xff]   ;;  %vm5325_vm1 = vmmov 0  }
  0x1c   :  { %998 = vmatpush1.bf16.msra.mxu0 %v5116_v9  ;;  %v5142_v30 = vld [vmem:[#allocation3 + $0x28] sm:$0xff]   ;;  %v5143_v31 = vld [vmem:[#allocation3 + $0x30] sm:$0xff]   ;;  %v5144_v32 = vld [vmem:[#allocation3 + $0x38] sm:$0xff]  }
  0x1d   :  { %4849 = vmatpush3.bf16.msra.mxu1 %v5115_v8  ;;  %999 = vmatprep.subr.bf16.mxu0 %v5117_v10  ;;  %v5145_v33 = vld [vmem:[#allocation3 + $0x40] sm:$0xff]   ;;  %v5146_v34 = vld [vmem:[#allocation3 + $0x48] sm:$0xff]   ;;  %v5147_v35 = vld [vmem:[#allocation3 + $0x50] sm:$0xff]  }
  0x1e   :  { %4850 = vmatprep.subr.bf16.mxu1 %v5119_v11  ;;  %v5148_v36 = vld [vmem:[#allocation3 + $0x58] sm:$0xff]   ;;  %v5149_v37 = vld [vmem:[#allocation3 + $0x60] sm:$0xff]   ;;  %v5150_v38 = vld [vmem:[#allocation3 + $0x68] sm:$0xff]  }
  0x1f   :  { %v5151_v39 = vld [vmem:[#allocation3 + $0x70] sm:$0xff]   ;;  %v5152_v40 = vld [vmem:[#allocation3 + $0x78] sm:$0xff]   ;;  %v5153_v41 = vld [vmem:[#allocation3 + $0x80] sm:$0xff]  }
  0x20   :  { %1000 = vmatpush1.bf16.msra.mxu0 %v5120_v12  ;;  %v5154_v42 = vld [vmem:[#allocation3 + $0x88] sm:$0xff]   ;;  %v5155_v43 = vld [vmem:[#allocation3 + $0x90] sm:$0xff]   ;;  %v5156_v44 = vld [vmem:[#allocation3 + $0x98] sm:$0xff]  }
  0x21   :  { %4851 = vmatpush3.bf16.msra.mxu1 %v5119_v11  ;;  %1001 = vmatprep.subr.bf16.mxu0 %v5121_v13  ;;  %v5445_v45 = vld [vmem:[#allocation3 + $0xa0] sm:$0xff]   ;;  %v5449_v46 = vld [vmem:[#allocation3 + $0xa8] sm:$0xff]   ;;  %v5451_v47 = vld [vmem:[#allocation3 + $0xb0] sm:$0xff]  }
  0x22   :  { %4852 = vmatprep.subr.bf16.mxu1 %v5123_v14  ;;  %v5456_v48 = vld [vmem:[#allocation3 + $0xb8] sm:$0xff]   ;;  %v5458_v49 = vld [vmem:[#allocation3 + $0xc0] sm:$0xff]   ;;  %v5463_v50 = vld [vmem:[#allocation3 + $0xc8] sm:$0xff]  }
  0x23   :  { %v5465_v51 = vld [vmem:[#allocation3 + $0xd0] sm:$0xff]   ;;  %v5470_v52 = vld [vmem:[#allocation3 + $0xd8] sm:$0xff]   ;;  %v5472_v53 = vld [vmem:[#allocation3 + $0xe0] sm:$0xff]  }
  0x24   :  { %1002 = vmatpush1.bf16.msra.mxu0 %v5124_v15  ;;  %v5477_v54 = vld [vmem:[#allocation3 + $0xe8] sm:$0xff]   ;;  %v5479_v55 = vld [vmem:[#allocation3 + $0xf0] sm:$0xff]   ;;  %v5484_v56 = vld [vmem:[#allocation3 + $0xf8] sm:$0xff]  }
  0x25   :  { %4853 = vmatpush3.bf16.msra.mxu1 %v5123_v14  ;;  %1003 = vmatprep.subr.bf16.mxu0 %v5125_v16  ;;  %v5486_v57 = vld [vmem:[#allocation3 + $0x100] sm:$0xff]   ;;  %v5491_v58 = vld [vmem:[#allocation3 + $0x108] sm:$0xff]   ;;  %v5493_v59 = vld [vmem:[#allocation3 + $0x110] sm:$0xff]  }
  0x26   :  { %4854 = vmatprep.subr.bf16.mxu1 %v5127_v17  ;;  %v5498_v60 = vld [vmem:[#allocation3 + $0x118] sm:$0xff]   ;;  %v5500_v61 = vld [vmem:[#allocation3 + $0x120] sm:$0xff]   ;;  %v5505_v62 = vld [vmem:[#allocation3 + $0x128] sm:$0xff]  }
  0x27   :  { %v5507_v63 = vld [vmem:[#allocation3 + $0x130] sm:$0xff]   ;;  %v5512_v1 = vld [vmem:[#allocation3 + $0x138] sm:$0xff]   ;;  %v5514_v2 = vld [vmem:[#allocation3 + $0x140] sm:$0xff]  }
  0x28   :  { %1004 = vmatpush1.bf16.msra.mxu0 %v5128_v18  ;;  %v5519_v3 = vld [vmem:[#allocation3 + $0x148] sm:$0xff]   ;;  %v5521_v4 = vld [vmem:[#allocation3 + $0x150] sm:$0xff]   ;;  %v5527_v5 = vld [vmem:[#allocation3 + $0x158] sm:$0xff]  }
  0x29   :  { %4855 = vmatpush3.bf16.msra.mxu1 %v5127_v17  ;;  %1005 = vmatprep.subr.bf16.mxu0 %v5129_v20  ;;  %v5181_v6 = vld [vmem:[#allocation3 + $0x160] sm:$0xff]   ;;  %v5182_v7 = vld [vmem:[#allocation3 + $0x168] sm:$0xff]   ;;  %v5183_v8 = vld [vmem:[#allocation3 + $0x170] sm:$0xff]  }
  0x2a   :  { %4856 = vmatprep.subr.bf16.mxu1 %v5131_v21  ;;  %v5184_v9 = vld [vmem:[#allocation3 + $0x178] sm:$0xff]   ;;  %v5185_v10 = vld [vmem:[#allocation3 + $0x180] sm:$0xff]   ;;  %v5186_v11 = vld [vmem:[#allocation3 + $0x188] sm:$0xff]  }
  0x2b   :  { %v5187_v12 = vld [vmem:[#allocation3 + $0x190] sm:$0xff]   ;;  %v5188_v13 = vld [vmem:[#allocation3 + $0x198] sm:$0xff]   ;;  %v5189_v14 = vld [vmem:[#allocation3 + $0x1a0] sm:$0xff]  }
  0x2c   :  { %1006 = vmatpush1.bf16.msra.mxu0 %v5132_v22  ;;  %v5190_v15 = vld [vmem:[#allocation3 + $0x1a8] sm:$0xff]   ;;  %v5191_v16 = vld [vmem:[#allocation3 + $0x1b0] sm:$0xff]  }
  0x2d   :  { %4857 = vmatpush3.bf16.msra.mxu1 %v5131_v21  ;;  %1007 = vmatprep.subr.bf16.mxu0 %v5133_v23  ;;  %v5192_v21 = vld [vmem:[#allocation3 + $0x1b8] sm:$0xff]  }
  0x2e   :  { %4858 = vmatprep.subr.bf16.mxu1 %v5135_v24 }
  0x30   :  { %1008 = vmatpush1.bf16.msra.mxu0 %v5136_v25  ;;  %v5193_v25 = vld [vmem:[#allocation3 + $0x1c0] sm:$0xff]  }
  0x31   :  { %4859 = vmatpush3.bf16.msra.mxu1 %v5135_v24 }
  0x33   :  { %1026 = vmatmul.mubr.bf16.vlgmr.msra.gmra.mrb[0].mxu0 %v5137_v19 }
  0x34   :  { %4861 = vmatmul.mubr.bf16.vlgmr.msra.gmra.mrb[0].mxu1 %v5138_v26  ;;  %1035 = vmatprep.mubr.bf16.mxu0 %v6059_v0 }
  0x35   :  { %4864 = vmatprep.mubr.bf16.mxu1 %v5139_v27 }
  0x3b   :  { %1036 = vmatmul.mubr.bf16.gmra.mrb[4].mxu0 %v5138_v26 }
  0x3c   :  { %4865 = vmatmul.mubr.bf16.gmra.mrb[4].mxu1 %v5140_v28  ;;  %1045 = vmatprep.mubr.bf16.mxu0 %v6059_v0 }
  0x3d   :  { %4868 = vmatprep.mubr.bf16.mxu1 %v5141_v29 }
  0x43   :  { %1046 = vmatmul.mubr.bf16.gmra.mrb[8].mxu0 %v5139_v27 }
  0x44   :  { %4869 = vmatmul.mubr.bf16.gmra.mrb[8].mxu1 %v5142_v30  ;;  %1055 = vmatprep.mubr.bf16.mxu0 %v6059_v0 }
  0x45   :  { %4872 = vmatprep.mubr.bf16.mxu1 %v5143_v31 }
  0x4b   :  { %1056 = vmatmul.mubr.bf16.gmra.mrb[12].mxu0 %v5140_v28 }
  0x4c   :  { %4873 = vmatmul.mubr.bf16.gmra.mrb[12].mxu1 %v5144_v32  ;;  %1065 = vmatprep.mubr.bf16.mxu0 %v6059_v0 }
  0x4d   :  { %4876 = vmatprep.mubr.bf16.mxu1 %v5145_v33 }
  0x53   :  { %1066 = vmatmul.mubr.bf16.gmra.mrb[16].mxu0 %v5141_v29 }
  0x54   :  { %4877 = vmatmul.mubr.bf16.gmra.mrb[16].mxu1 %v5146_v34  ;;  %1075 = vmatprep.mubr.bf16.mxu0 %v6059_v0 }
  0x55   :  { %4880 = vmatprep.mubr.bf16.mxu1 %v5147_v35 }
  0x5b   :  { %1076 = vmatmul.mubr.bf16.gmra.mrb[20].mxu0 %v5142_v30 }
  0x5c   :  { %4881 = vmatmul.mubr.bf16.gmra.mrb[20].mxu1 %v5148_v36  ;;  %1085 = vmatprep.mubr.bf16.mxu0 %v6059_v0 }
  0x5d   :  { %4884 = vmatprep.mubr.bf16.mxu1 %v5149_v37 }
  0x63   :  { %1086 = vmatmul.mubr.bf16.gmra.mrb[24].mxu0 %v5143_v31 }
  0x64   :  { %4885 = vmatmul.mubr.bf16.gmra.mrb[24].mxu1 %v5150_v38  ;;  %1095 = vmatprep.mubr.bf16.mxu0 %v6059_v0 }
  0x65   :  { %4888 = vmatprep.mubr.bf16.mxu1 %v5151_v39 }
  0x6b   :  { %1096 = vmatmul.mubr.bf16.gmra.mrb[28].mxu0 %v5144_v32 }
  0x6c   :  { %4889 = vmatmul.mubr.bf16.gmra.mrb[28].mxu1 %v5152_v40  ;;  %1105 = vmatprep.mubr.bf16.mxu0 %v6059_v0 }
  0x6d   :  { %4892 = vmatprep.mubr.bf16.mxu1 %v5153_v41 }
  0x73   :  { %1106 = vmatmul.mubr.bf16.gmra.mrb[32].mxu0 %v5145_v33 }
  0x74   :  { %4893 = vmatmul.mubr.bf16.gmra.mrb[32].mxu1 %v5154_v42  ;;  %1115 = vmatprep.mubr.bf16.mxu0 %v6059_v0 }
  0x75   :  { %4896 = vmatprep.mubr.bf16.mxu1 %v5155_v43 }
  0x7b   :  { %1116 = vmatmul.mubr.bf16.gmra.mrb[36].mxu0 %v5146_v34 }
  0x7c   :  { %4897 = vmatmul.mubr.bf16.gmra.mrb[36].mxu1 %v5156_v44  ;;  %1125 = vmatprep.mubr.bf16.mxu0 %v6059_v0 }
  0x7d   :  { %4900 = vmatprep.mubr.bf16.mxu1 %v5445_v45 }
  0x83   :  { %1126 = vmatmul.mubr.bf16.gmra.mrb[40].mxu0 %v5147_v35 }
  0x84   :  { %4901 = vmatmul.mubr.bf16.gmra.mrb[40].mxu1 %v5449_v46  ;;  %1135 = vmatprep.mubr.bf16.mxu0 %v6059_v0 }
  0x85   :  { %4904 = vmatprep.mubr.bf16.mxu1 %v5451_v47 }
  0x8b   :  { %1136 = vmatmul.mubr.bf16.gmra.mrb[44].mxu0 %v5148_v36 }
  0x8c   :  { %4905 = vmatmul.mubr.bf16.gmra.mrb[44].mxu1 %v5456_v48  ;;  %1145 = vmatprep.mubr.bf16.mxu0 %v6059_v0 }
  0x8d   :  { %4908 = vmatprep.mubr.bf16.mxu1 %v5458_v49 }
  0x93   :  { %1146 = vmatmul.mubr.bf16.gmra.mrb[48].mxu0 %v5149_v37 }
  0x94   :  { %4909 = vmatmul.mubr.bf16.gmra.mrb[48].mxu1 %v5463_v50  ;;  %1155 = vmatprep.mubr.bf16.mxu0 %v6059_v0 }
  0x95   :  { %4912 = vmatprep.mubr.bf16.mxu1 %v5465_v51 }
  0x9b   :  { %1156 = vmatmul.mubr.bf16.gmra.mrb[52].mxu0 %v5150_v38 }
  0x9c   :  { %4913 = vmatmul.mubr.bf16.gmra.mrb[52].mxu1 %v5470_v52  ;;  %1165 = vmatprep.mubr.bf16.mxu0 %v6059_v0 }
  0x9d   :  { %4916 = vmatprep.mubr.bf16.mxu1 %v5472_v53 }
  0xa3   :  { %1166 = vmatmul.mubr.bf16.gmra.mrb[56].mxu0 %v5151_v39 }
  0xa4   :  { %4917 = vmatmul.mubr.bf16.gmra.mrb[56].mxu1 %v5477_v54  ;;  %1175 = vmatprep.mubr.bf16.mxu0 %v6059_v0 }
  0xa5   :  { %4920 = vmatprep.mubr.bf16.mxu1 %v5479_v55 }
  0xab   :  { %1176 = vmatmul.mubr.bf16.gmra.mrb[60].mxu0 %v5152_v40 }
  0xac   :  { %4921 = vmatmul.mubr.bf16.gmra.mrb[60].mxu1 %v5484_v56  ;;  %1185 = vmatprep.mubr.bf16.mxu0 %v6059_v0 }
  0xad   :  { %4924 = vmatprep.mubr.bf16.mxu1 %v5486_v57 }
  0xb3   :  { %1186 = vmatmul.mubr.bf16.gmra.mrb[64].mxu0 %v5153_v41 }
  0xb4   :  { %4925 = vmatmul.mubr.bf16.gmra.mrb[64].mxu1 %v5491_v58  ;;  %1195 = vmatprep.mubr.bf16.mxu0 %v6059_v0 }
  0xb5   :  { %4928 = vmatprep.mubr.bf16.mxu1 %v5493_v59 }
  0xbb   :  { %1196 = vmatmul.mubr.bf16.gmra.mrb[68].mxu0 %v5154_v42 }
  0xbc   :  { %4929 = vmatmul.mubr.bf16.gmra.mrb[68].mxu1 %v5498_v60  ;;  %1205 = vmatprep.mubr.bf16.mxu0 %v6059_v0 }
  0xbd   :  { %4932 = vmatprep.mubr.bf16.mxu1 %v5500_v61 }
  0xc3   :  { %1206 = vmatmul.mubr.bf16.gmra.mrb[72].mxu0 %v5155_v43  ;;  %v5194_v43 = vld [vmem:[#allocation3 + $0x1c8] sm:$0xff]  }
  0xc4   :  { %4933 = vmatmul.mubr.bf16.gmra.mrb[72].mxu1 %v5505_v62  ;;  %1215 = vmatprep.mubr.bf16.mxu0 %v6059_v0 }
  0xc5   :  { %4936 = vmatprep.mubr.bf16.mxu1 %v5507_v63 }
  0xcb   :  { %1216 = vmatmul.mubr.bf16.gmra.mrb[76].mxu0 %v5156_v44 }
  0xcc   :  { %4937 = vmatmul.mubr.bf16.gmra.mrb[76].mxu1 %v5512_v1  ;;  %1225 = vmatprep.mubr.bf16.mxu0 %v6059_v0 }
  0xcd   :  { %4940 = vmatprep.mubr.bf16.mxu1 %v5514_v2 }
  0xd3   :  { %1226 = vmatmul.mubr.bf16.gmra.mrb[80].mxu0 %v5445_v45 }
  0xd4   :  { %4941 = vmatmul.mubr.bf16.gmra.mrb[80].mxu1 %v5519_v3  ;;  %1235 = vmatprep.mubr.bf16.mxu0 %v6059_v0 }
  0xd5   :  { %4944 = vmatprep.mubr.bf16.mxu1 %v5521_v4 }
  0xdb   :  { %1236 = vmatmul.mubr.bf16.gmra.mrb[84].mxu0 %v5449_v46 }
  0xdc   :  { %4945 = vmatmul.mubr.bf16.gmra.mrb[84].mxu1 %v5527_v5  ;;  %1245 = vmatprep.mubr.bf16.mxu0 %v6059_v0 }
  0xdd   :  { %4948 = vmatprep.mubr.bf16.mxu1 %v5181_v6 }
  0xe3   :  { %1246 = vmatmul.mubr.bf16.gmra.mrb[88].mxu0 %v5451_v47  ;;  %v5195_v47 = vld [vmem:[#allocation3 + $0x1d0] sm:$0xff]  }
  0xe4   :  { %4949 = vmatmul.mubr.bf16.gmra.mrb[88].mxu1 %v5182_v7  ;;  %1255 = vmatprep.mubr.bf16.mxu0 %v6059_v0 }
  0xe5   :  { %4952 = vmatprep.mubr.bf16.mxu1 %v5183_v8 }
  0xeb   :  { %1256 = vmatmul.mubr.bf16.gmra.mrb[92].mxu0 %v5456_v48 }
  0xec   :  { %4953 = vmatmul.mubr.bf16.gmra.mrb[92].mxu1 %v5184_v9  ;;  %1265 = vmatprep.mubr.bf16.mxu0 %v6059_v0 }
  0xed   :  { %4956 = vmatprep.mubr.bf16.mxu1 %v5185_v10 }
  0xf3   :  { %1266 = vmatmul.mubr.bf16.gmra.mrb[96].mxu0 %v5458_v49 }
  0xf4   :  { %4957 = vmatmul.mubr.bf16.gmra.mrb[96].mxu1 %v5186_v11  ;;  %1275 = vmatprep.mubr.bf16.mxu0 %v6059_v0 }
  0xf5   :  { %4960 = vmatprep.mubr.bf16.mxu1 %v5187_v12 }
  0xfb   :  { %1276 = vmatmul.mubr.bf16.gmra.mrb[100].mxu0 %v5463_v50 }
  0xfc   :  { %4961 = vmatmul.mubr.bf16.gmra.mrb[100].mxu1 %v5188_v13  ;;  %1285 = vmatprep.mubr.bf16.mxu0 %v6059_v0 }
  0xfd   :  { %4964 = vmatprep.mubr.bf16.mxu1 %v5189_v14 }
 0x103   :  { %1286 = vmatmul.mubr.bf16.gmra.mrb[104].mxu0 %v5465_v51 }
 0x104   :  { %4965 = vmatmul.mubr.bf16.gmra.mrb[104].mxu1 %v5190_v15  ;;  %1295 = vmatprep.mubr.bf16.mxu0 %v6059_v0 }
 0x105   :  { %4968 = vmatprep.mubr.bf16.mxu1 %v5191_v16 }
 0x106   :  { %v1027_v18 = vpop.f32.mrb[0].mxu0 }
 0x107   :  { %v4862_v17 = vpop.f32.mrb[0].mxu1  ;;  %v1029_v22 = vpop.f32.mrb[1].mxu0  ;;  %v2859_v29 = vmax.f32 %v1027_v18, 0.0  ;;  %v5196_v18 = vld [vmem:[#allocation3 + $0x1d8] sm:$0xff]  }
 0x108   :  { %v2867_v19 = vmax.f32 %v4862_v17, 0.0  ;;  %v2060_v20 = vpop.f32.mrb[1].mxu1  ;;  %v1031_v26 = vpop.f32.mrb[2].mxu0  ;;  %v2860_v33 = vmax.f32 %v1029_v22, 0.0  ;;  %v5197_v22 = vld [vmem:[#allocation3 + $0x1e0] sm:$0xff]  }
 0x109   :  { %v2861_v23 = vmax.f32 %v2060_v20, 0.0  ;;  %v4863_v24 = vpop.f32.mrb[2].mxu1  ;;  %v2862_v30 = vmax.f32 %v1031_v26, 0.0  ;;  %v1033_v31 = vpop.f32.mrb[3].mxu0 }
 0x10a   :  { %v2870_v27 = vmax.f32 %v4863_v24, 0.0  ;;  %v2063_v28 = vpop.f32.mrb[3].mxu1  ;;  %v2863_v34 = vmax.f32 %v1033_v31, 0.0 }
 0x10b   :  { %v2864_v32 = vmax.f32 %v2063_v28, 0.0  ;;  %1296 = vmatmul.mubr.bf16.gmra.mrb[108].mxu0 %v5470_v52  ;;  %v3461_v36 = vpack.c.bf16 %v2862_v30, %v2859_v29 }
 0x10c   :  { %v5542_v35 = vpack.c.bf16 %v2870_v27, %v2867_v19  ;;  %4969 = vmatmul.mubr.bf16.gmra.mrb[108].mxu1 %v5192_v21  ;;  %1305 = vmatprep.mubr.bf16.mxu0 %v6059_v0  ;;  %v3462_v38 = vpack.c.bf16 %v2863_v34, %v2860_v33 }
 0x10d   :  { %v5545_v37 = vpack.c.bf16 %v2864_v32, %v2861_v23  ;;  %4972 = vmatprep.mubr.bf16.mxu1 %v5193_v25 }
 0x10e   :  { %6065 = vst [vmem:[#allocation6_spill] sm:$0xff] %v5542_v35  ;;  %v1037_v40 = vpop.f32.mrb[4].mxu0  ;;  %3869 = vmatprep.subr.bf16.mxu1 %v3462_v38 }
 0x10f   :  { %v4866_v39 = vpop.f32.mrb[4].mxu1  ;;  %v1039_v44 = vpop.f32.mrb[5].mxu0  ;;  %3870 = vmatpush1.bf16.msra.mxu1 %v3461_v36  ;;  %v2865_v51 = vmax.f32 %v1037_v40, 0.0 }
 0x110   :  { %v2879_v41 = vmax.f32 %v4866_v39, 0.0  ;;  %v2076_v42 = vpop.f32.mrb[5].mxu1  ;;  %v1041_v48 = vpop.f32.mrb[6].mxu0  ;;  %v2866_v8 = vmax.f32 %v1039_v44, 0.0 }
 0x111   :  { %v2873_v45 = vmax.f32 %v2076_v42, 0.0  ;;  %v4867_v46 = vpop.f32.mrb[6].mxu1  ;;  %v2868_v52 = vmax.f32 %v1041_v48, 0.0  ;;  %v1043_v6 = vpop.f32.mrb[7].mxu0 }
 0x112   :  { %v2882_v49 = vmax.f32 %v4867_v46, 0.0  ;;  %v2079_v50 = vpop.f32.mrb[7].mxu1  ;;  %v2869_v9 = vmax.f32 %v1043_v6, 0.0 }
 0x113   :  { %v2876_v7 = vmax.f32 %v2079_v50, 0.0  ;;  %1306 = vmatmul.mubr.bf16.gmra.mrb[112].mxu0 %v5472_v53  ;;  %v3464_v11 = vpack.c.bf16 %v2868_v52, %v2865_v51 }
 0x114   :  { %v5548_v10 = vpack.c.bf16 %v2882_v49, %v2879_v41  ;;  %4973 = vmatmul.mubr.bf16.gmra.mrb[112].mxu1 %v5194_v43  ;;  %1315 = vmatprep.mubr.bf16.mxu0 %v6059_v0  ;;  %v3465_v13 = vpack.c.bf16 %v2869_v9, %v2866_v8  ;;  %v5198_v41 = vld [vmem:[#allocation3 + $0x1e8] sm:$0xff]  }
 0x115   :  { %v5551_v12 = vpack.c.bf16 %v2876_v7, %v2873_v45  ;;  %4976 = vmatprep.mubr.bf16.mxu1 %v5195_v47  ;;  %v5199_v45 = vld [vmem:[#allocation3 + $0x1f0] sm:$0xff]  }
 0x116   :  { %6066 = vst [vmem:[#allocation7_spill] sm:$0xff] %v5548_v10  ;;  %v1047_v15 = vpop.f32.mrb[8].mxu0  ;;  %3871 = vmatprep.subr.bf16.mxu1 %v3465_v13 }
 0x117   :  { %6067 = vst [vmem:[#allocation8_spill] sm:$0xff] %v5551_v12  ;;  %v4870_v14 = vpop.f32.mrb[8].mxu1  ;;  %v1049_v19 = vpop.f32.mrb[9].mxu0  ;;  %3872 = vmatpush1.bf16.msra.mxu1 %v3464_v11  ;;  %v2871_v25 = vmax.f32 %v1047_v15, 0.0 }
 0x118   :  { %v2891_v16 = vmax.f32 %v4870_v14, 0.0  ;;  %v2092_v17 = vpop.f32.mrb[9].mxu1  ;;  %v1051_v53 = vpop.f32.mrb[10].mxu0  ;;  %v2872_v29 = vmax.f32 %v1049_v19, 0.0 }
 0x119   :  { %v2885_v20 = vmax.f32 %v2092_v17, 0.0  ;;  %v4871_v21 = vpop.f32.mrb[10].mxu1  ;;  %v2874_v26 = vmax.f32 %v1051_v53, 0.0  ;;  %v1053_v27 = vpop.f32.mrb[11].mxu0  ;;  %v5200_v17 = vld [vmem:[#allocation3 + $0x1f8] sm:$0xff]  }
 0x11a   :  { %v2894_v23 = vmax.f32 %v4871_v21, 0.0  ;;  %v2095_v24 = vpop.f32.mrb[11].mxu1  ;;  %v2875_v30 = vmax.f32 %v1053_v27, 0.0  ;;  %v5201_v21 = vld [vmem:[#allocation3 + $0x200] sm:$0xff]  }
 0x11b   :  { %v2888_v28 = vmax.f32 %v2095_v24, 0.0  ;;  %1316 = vmatmul.mubr.bf16.gmra.mrb[116].mxu0 %v5477_v54  ;;  %v3467_v32 = vpack.c.bf16 %v2874_v26, %v2871_v25 }
 0x11c   :  { %v5554_v31 = vpack.c.bf16 %v2894_v23, %v2891_v16  ;;  %4977 = vmatmul.mubr.bf16.gmra.mrb[116].mxu1 %v5196_v18  ;;  %1325 = vmatprep.mubr.bf16.mxu0 %v6059_v0  ;;  %v3468_v34 = vpack.c.bf16 %v2875_v30, %v2872_v29 }
 0x11d   :  { %v5557_v33 = vpack.c.bf16 %v2888_v28, %v2885_v20  ;;  %4980 = vmatprep.mubr.bf16.mxu1 %v5197_v22 }
 0x11e   :  { %6068 = vst [vmem:[#allocation9_spill] sm:$0xff] %v5554_v31  ;;  %v1057_v38 = vpop.f32.mrb[12].mxu0  ;;  %3873 = vmatprep.subr.bf16.mxu1 %v3468_v34 }
 0x11f   :  { %6069 = vst [vmem:[#allocation10_spill] sm:$0xff] %v5557_v33  ;;  %v4874_v36 = vpop.f32.mrb[12].mxu1  ;;  %v1059_v42 = vpop.f32.mrb[13].mxu0  ;;  %3874 = vmatpush1.bf16.msra.mxu1 %v3467_v32  ;;  %v2877_v48 = vmax.f32 %v1057_v38, 0.0 }
 0x120   :  { %v2903_v39 = vmax.f32 %v4874_v36, 0.0  ;;  %v2108_v40 = vpop.f32.mrb[13].mxu1  ;;  %v1061_v54 = vpop.f32.mrb[14].mxu0  ;;  %v2878_v52 = vmax.f32 %v1059_v42, 0.0 }
 0x121   :  { %v2897_v43 = vmax.f32 %v2108_v40, 0.0  ;;  %v4875_v44 = vpop.f32.mrb[14].mxu1  ;;  %v2880_v49 = vmax.f32 %v1061_v54, 0.0  ;;  %v1063_v50 = vpop.f32.mrb[15].mxu0 }
 0x122   :  { %v2906_v46 = vmax.f32 %v4875_v44, 0.0  ;;  %v2111_v47 = vpop.f32.mrb[15].mxu1  ;;  %v2881_v6 = vmax.f32 %v1063_v50, 0.0 }
 0x123   :  { %v2900_v51 = vmax.f32 %v2111_v47, 0.0  ;;  %1326 = vmatmul.mubr.bf16.gmra.mrb[120].mxu0 %v5479_v55  ;;  %v3470_v8 = vpack.c.bf16 %v2880_v49, %v2877_v48 }
 0x124   :  { %v5560_v7 = vpack.c.bf16 %v2906_v46, %v2903_v39  ;;  %4981 = vmatmul.mubr.bf16.gmra.mrb[120].mxu1 %v5198_v41  ;;  %1335 = vmatprep.mubr.bf16.mxu0 %v6059_v0  ;;  %v3471_v11 = vpack.c.bf16 %v2881_v6, %v2878_v52  ;;  %v5202_v41 = vld [vmem:[#allocation3 + $0x208] sm:$0xff]  }
 0x125   :  { %v5563_v9 = vpack.c.bf16 %v2900_v51, %v2897_v43  ;;  %4984 = vmatprep.mubr.bf16.mxu1 %v5199_v45  ;;  %v5203_v45 = vld [vmem:[#allocation3 + $0x210] sm:$0xff]  }
 0x126   :  { %6070 = vst [vmem:[#allocation11_spill] sm:$0xff] %v5560_v7  ;;  %v1067_v14 = vpop.f32.mrb[16].mxu0  ;;  %3875 = vmatprep.subr.bf16.mxu1 %v3471_v11 }
 0x127   :  { %6071 = vst [vmem:[#allocation12_spill] sm:$0xff] %v5563_v9  ;;  %v4878_v13 = vpop.f32.mrb[16].mxu1  ;;  %v1069_v18 = vpop.f32.mrb[17].mxu0  ;;  %3876 = vmatpush1.bf16.msra.mxu1 %v3470_v8  ;;  %v2883_v23 = vmax.f32 %v1067_v14, 0.0 }
 0x128   :  { %v2915_v15 = vmax.f32 %v4878_v13, 0.0  ;;  %v2124_v16 = vpop.f32.mrb[17].mxu1  ;;  %v1071_v55 = vpop.f32.mrb[18].mxu0  ;;  %v2884_v27 = vmax.f32 %v1069_v18, 0.0  ;;  %v5204_v18 = vld [vmem:[#allocation3 + $0x218] sm:$0xff]  }
 0x129   :  { %v2909_v19 = vmax.f32 %v2124_v16, 0.0  ;;  %v4879_v20 = vpop.f32.mrb[18].mxu1  ;;  %v2886_v24 = vmax.f32 %v1071_v55, 0.0  ;;  %v1073_v25 = vpop.f32.mrb[19].mxu0  ;;  %v5205_v55 = vld [vmem:[#allocation3 + $0x220] sm:$0xff]  }
 0x12a   :  { %v2918_v22 = vmax.f32 %v4879_v20, 0.0  ;;  %v2127_v53 = vpop.f32.mrb[19].mxu1  ;;  %v2887_v28 = vmax.f32 %v1073_v25, 0.0 }
 0x12b   :  { %v2912_v26 = vmax.f32 %v2127_v53, 0.0  ;;  %1336 = vmatmul.mubr.bf16.gmra.mrb[124].mxu0 %v5484_v56  ;;  %v3473_v30 = vpack.c.bf16 %v2886_v24, %v2883_v23 }
 0x12c   :  { %v5566_v29 = vpack.c.bf16 %v2918_v22, %v2915_v15  ;;  %4985 = vmatmul.mubr.bf16.gmra.mrb[124].mxu1 %v5200_v17  ;;  %1345 = vmatprep.mubr.bf16.mxu0 %v6059_v0  ;;  %v3474_v34 = vpack.c.bf16 %v2887_v28, %v2884_v27 }
 0x12d   :  { %v5569_v32 = vpack.c.bf16 %v2912_v26, %v2909_v19  ;;  %4988 = vmatprep.mubr.bf16.mxu1 %v5201_v21 }
 0x12e   :  { %6072 = vst [vmem:[#allocation13_spill] sm:$0xff] %v5566_v29  ;;  %v1077_v38 = vpop.f32.mrb[20].mxu0  ;;  %3877 = vmatprep.subr.bf16.mxu1 %v3474_v34 }
 0x12f   :  { %v4882_v36 = vpop.f32.mrb[20].mxu1  ;;  %v1079_v42 = vpop.f32.mrb[21].mxu0  ;;  %3878 = vmatpush1.bf16.msra.mxu1 %v3473_v30  ;;  %v2889_v47 = vmax.f32 %v1077_v38, 0.0 }
 0x130   :  { %v2927_v39 = vmax.f32 %v4882_v36, 0.0  ;;  %v2140_v40 = vpop.f32.mrb[21].mxu1  ;;  %v1081_v56 = vpop.f32.mrb[22].mxu0  ;;  %v2890_v51 = vmax.f32 %v1079_v42, 0.0 }
 0x131   :  { %v2921_v43 = vmax.f32 %v2140_v40, 0.0  ;;  %v4883_v44 = vpop.f32.mrb[22].mxu1  ;;  %v2892_v48 = vmax.f32 %v1081_v56, 0.0  ;;  %v1083_v49 = vpop.f32.mrb[23].mxu0 }
 0x132   :  { %v2930_v54 = vmax.f32 %v4883_v44, 0.0  ;;  %v2143_v46 = vpop.f32.mrb[23].mxu1  ;;  %v2893_v52 = vmax.f32 %v1083_v49, 0.0 }
 0x133   :  { %v2924_v50 = vmax.f32 %v2143_v46, 0.0  ;;  %1346 = vmatmul.mubr.bf16.gmra.mrb[128].mxu0 %v5486_v57  ;;  %v3476_v8 = vpack.c.bf16 %v2892_v48, %v2889_v47 }
 0x134   :  { %v5572_v6 = vpack.c.bf16 %v2930_v54, %v2927_v39  ;;  %4989 = vmatmul.mubr.bf16.gmra.mrb[128].mxu1 %v5202_v41  ;;  %1355 = vmatprep.mubr.bf16.mxu0 %v6059_v0  ;;  %v3477_v13 = vpack.c.bf16 %v2893_v52, %v2890_v51  ;;  %v5207_v54 = vld [vmem:[#allocation3 + $0x230] sm:$0xff]  }
 0x135   :  { %v5575_v11 = vpack.c.bf16 %v2924_v50, %v2921_v43  ;;  %4992 = vmatprep.mubr.bf16.mxu1 %v5203_v45  ;;  %v5206_v43 = vld [vmem:[#allocation3 + $0x228] sm:$0xff]  }
 0x136   :  { %6073 = vst [vmem:[#allocation14_spill] sm:$0xff] %v5572_v6  ;;  %v1087_v15 = vpop.f32.mrb[24].mxu0  ;;  %3879 = vmatprep.subr.bf16.mxu1 %v3477_v13 }
 0x137   :  { %6074 = vst [vmem:[#allocation15_spill] sm:$0xff] %v5575_v11  ;;  %v4886_v14 = vpop.f32.mrb[24].mxu1  ;;  %v1089_v19 = vpop.f32.mrb[25].mxu0  ;;  %3880 = vmatpush1.bf16.msra.mxu1 %v3476_v8  ;;  %v2895_v23 = vmax.f32 %v1087_v15, 0.0 }
 0x138   :  { %v2939_v16 = vmax.f32 %v4886_v14, 0.0  ;;  %v2156_v17 = vpop.f32.mrb[25].mxu1  ;;  %v1091_v57 = vpop.f32.mrb[26].mxu0  ;;  %v2896_v27 = vmax.f32 %v1089_v19, 0.0 }
 0x139   :  { %v2933_v20 = vmax.f32 %v2156_v17, 0.0  ;;  %v4887_v21 = vpop.f32.mrb[26].mxu1  ;;  %v2898_v24 = vmax.f32 %v1091_v57, 0.0  ;;  %v1093_v25 = vpop.f32.mrb[27].mxu0 }
 0x13a   :  { %v2942_v22 = vmax.f32 %v4887_v21, 0.0  ;;  %v2159_v53 = vpop.f32.mrb[27].mxu1  ;;  %v2899_v28 = vmax.f32 %v1093_v25, 0.0  ;;  %v5208_v21 = vld [vmem:[#allocation3 + $0x238] sm:$0xff]  }
 0x13b   :  { %v2936_v26 = vmax.f32 %v2159_v53, 0.0  ;;  %1356 = vmatmul.mubr.bf16.gmra.mrb[132].mxu0 %v5491_v58  ;;  %v3479_v34 = vpack.c.bf16 %v2898_v24, %v2895_v23  ;;  %v5209_v53 = vld [vmem:[#allocation3 + $0x240] sm:$0xff]  }
 0x13c   :  { %v5578_v30 = vpack.c.bf16 %v2942_v22, %v2939_v16  ;;  %4993 = vmatmul.mubr.bf16.gmra.mrb[132].mxu1 %v5204_v18  ;;  %1365 = vmatprep.mubr.bf16.mxu0 %v6059_v0  ;;  %v3480_v38 = vpack.c.bf16 %v2899_v28, %v2896_v27 }
 0x13d   :  { %v5581_v36 = vpack.c.bf16 %v2936_v26, %v2933_v20  ;;  %4996 = vmatprep.mubr.bf16.mxu1 %v5205_v55 }
 0x13e   :  { %6075 = vst [vmem:[#allocation16_spill] sm:$0xff] %v5578_v30  ;;  %v1097_v40 = vpop.f32.mrb[28].mxu0  ;;  %3881 = vmatprep.subr.bf16.mxu1 %v3480_v38 }
 0x13f   :  { %6076 = vst [vmem:[#allocation17_spill] sm:$0xff] %v5581_v36  ;;  %v4890_v39 = vpop.f32.mrb[28].mxu1  ;;  %v1099_v44 = vpop.f32.mrb[29].mxu0  ;;  %3882 = vmatpush1.bf16.msra.mxu1 %v3479_v34  ;;  %v2901_v48 = vmax.f32 %v1097_v40, 0.0 }
 0x140   :  { %v2951_v41 = vmax.f32 %v4890_v39, 0.0  ;;  %v2172_v42 = vpop.f32.mrb[29].mxu1  ;;  %v1101_v58 = vpop.f32.mrb[30].mxu0  ;;  %v2902_v52 = vmax.f32 %v1099_v44, 0.0 }
 0x141   :  { %v2945_v45 = vmax.f32 %v2172_v42, 0.0  ;;  %v4891_v56 = vpop.f32.mrb[30].mxu1  ;;  %v2904_v49 = vmax.f32 %v1101_v58, 0.0  ;;  %v1103_v50 = vpop.f32.mrb[31].mxu0 }
 0x142   :  { %v2954_v46 = vmax.f32 %v4891_v56, 0.0  ;;  %v2175_v47 = vpop.f32.mrb[31].mxu1  ;;  %v2905_v8 = vmax.f32 %v1103_v50, 0.0 }
 0x143   :  { %v2948_v51 = vmax.f32 %v2175_v47, 0.0  ;;  %1366 = vmatmul.mubr.bf16.gmra.mrb[136].mxu0 %v5493_v59  ;;  %v3482_v14 = vpack.c.bf16 %v2904_v49, %v2901_v48  ;;  %v5211_v48 = vld [vmem:[#allocation3 + $0x250] sm:$0xff]  }
 0x144   :  { %v5584_v13 = vpack.c.bf16 %v2954_v46, %v2951_v41  ;;  %4997 = vmatmul.mubr.bf16.gmra.mrb[136].mxu1 %v5206_v43  ;;  %1375 = vmatprep.mubr.bf16.mxu0 %v6059_v0  ;;  %v3483_v16 = vpack.c.bf16 %v2905_v8, %v2902_v52 }
 0x145   :  { %v5587_v15 = vpack.c.bf16 %v2948_v51, %v2945_v45  ;;  %5000 = vmatprep.mubr.bf16.mxu1 %v5207_v54  ;;  %v5210_v54 = vld [vmem:[#allocation3 + $0x248] sm:$0xff]  }
 0x146   :  { %6077 = vst [vmem:[#allocation18_spill] sm:$0xff] %v5584_v13  ;;  %v1107_v18 = vpop.f32.mrb[32].mxu0  ;;  %3883 = vmatprep.subr.bf16.mxu1 %v3483_v16 }
 0x147   :  { %6078 = vst [vmem:[#allocation19_spill] sm:$0xff] %v5587_v15  ;;  %v4894_v17 = vpop.f32.mrb[32].mxu1  ;;  %v1109_v55 = vpop.f32.mrb[33].mxu0  ;;  %3884 = vmatpush1.bf16.msra.mxu1 %v3482_v14  ;;  %v2907_v25 = vmax.f32 %v1107_v18, 0.0 }
 0x148   :  { %v2963_v19 = vmax.f32 %v4894_v17, 0.0  ;;  %v2188_v20 = vpop.f32.mrb[33].mxu1  ;;  %v1111_v59 = vpop.f32.mrb[34].mxu0  ;;  %v2908_v34 = vmax.f32 %v1109_v55, 0.0 }
 0x149   :  { %v2957_v57 = vmax.f32 %v2188_v20, 0.0  ;;  %v4895_v22 = vpop.f32.mrb[34].mxu1  ;;  %v2910_v26 = vmax.f32 %v1111_v59, 0.0  ;;  %v1113_v27 = vpop.f32.mrb[35].mxu0  ;;  %v5212_v59 = vld [vmem:[#allocation3 + $0x258] sm:$0xff]  }
 0x14a   :  { %v2966_v23 = vmax.f32 %v4895_v22, 0.0  ;;  %v2191_v24 = vpop.f32.mrb[35].mxu1  ;;  %v2911_v38 = vmax.f32 %v1113_v27, 0.0 }
 0x14b   :  { %v2960_v28 = vmax.f32 %v2191_v24, 0.0  ;;  %1376 = vmatmul.mubr.bf16.gmra.mrb[140].mxu0 %v5498_v60  ;;  %v3485_v40 = vpack.c.bf16 %v2910_v26, %v2907_v25  ;;  %v5213_v26 = vld [vmem:[#allocation3 + $0x260] sm:$0xff]  }
 0x14c   :  { %v5590_v39 = vpack.c.bf16 %v2966_v23, %v2963_v19  ;;  %5001 = vmatmul.mubr.bf16.gmra.mrb[140].mxu1 %v5208_v21  ;;  %1385 = vmatprep.mubr.bf16.mxu0 %v6059_v0  ;;  %v3486_v42 = vpack.c.bf16 %v2911_v38, %v2908_v34 }
 0x14d   :  { %v5593_v41 = vpack.c.bf16 %v2960_v28, %v2957_v57  ;;  %5004 = vmatprep.mubr.bf16.mxu1 %v5209_v53 }
 0x14e   :  { %v1117_v44 = vpop.f32.mrb[36].mxu0  ;;  %3885 = vmatprep.subr.bf16.mxu1 %v3486_v42 }
 0x14f   :  { %v4898_v43 = vpop.f32.mrb[36].mxu1  ;;  %v1119_v58 = vpop.f32.mrb[37].mxu0  ;;  %3886 = vmatpush1.bf16.msra.mxu1 %v3485_v40  ;;  %v2913_v51 = vmax.f32 %v1117_v44, 0.0 }
 0x150   :  { %v2975_v45 = vmax.f32 %v4898_v43, 0.0  ;;  %v2204_v56 = vpop.f32.mrb[37].mxu1  ;;  %v1121_v60 = vpop.f32.mrb[38].mxu0  ;;  %v2914_v16 = vmax.f32 %v1119_v58, 0.0 }
 0x151   :  { %v2969_v46 = vmax.f32 %v2204_v56, 0.0  ;;  %v4899_v47 = vpop.f32.mrb[38].mxu1  ;;  %v2916_v52 = vmax.f32 %v1121_v60, 0.0  ;;  %v1123_v8 = vpop.f32.mrb[39].mxu0 }
 0x152   :  { %v2978_v49 = vmax.f32 %v4899_v47, 0.0  ;;  %v2207_v50 = vpop.f32.mrb[39].mxu1  ;;  %v2917_v17 = vmax.f32 %v1123_v8, 0.0  ;;  %v5215_v8 = vld [vmem:[#allocation3 + $0x270] sm:$0xff]  }
 0x153   :  { %v2972_v14 = vmax.f32 %v2207_v50, 0.0  ;;  %1386 = vmatmul.mubr.bf16.gmra.mrb[144].mxu0 %v5500_v61  ;;  %v3488_v19 = vpack.c.bf16 %v2916_v52, %v2913_v51 }
 0x154   :  { %v5596_v18 = vpack.c.bf16 %v2978_v49, %v2975_v45  ;;  %5005 = vmatmul.mubr.bf16.gmra.mrb[144].mxu1 %v5210_v54  ;;  %1395 = vmatprep.mubr.bf16.mxu0 %v6059_v0  ;;  %v3489_v21 = vpack.c.bf16 %v2917_v17, %v2914_v16  ;;  %v5214_v49 = vld [vmem:[#allocation3 + $0x268] sm:$0xff]  }
 0x155   :  { %v5599_v20 = vpack.c.bf16 %v2972_v14, %v2969_v46  ;;  %5008 = vmatprep.mubr.bf16.mxu1 %v5211_v48 }
 0x156   :  { %v1127_v57 = vpop.f32.mrb[40].mxu0  ;;  %3887 = vmatprep.subr.bf16.mxu1 %v3489_v21 }
 0x157   :  { %v4902_v55 = vpop.f32.mrb[40].mxu1  ;;  %v1129_v23 = vpop.f32.mrb[41].mxu0  ;;  %3888 = vmatpush1.bf16.msra.mxu1 %v3488_v19  ;;  %v2919_v34 = vmax.f32 %v1127_v57, 0.0 }
 0x158   :  { %v2987_v22 = vmax.f32 %v4902_v55, 0.0  ;;  %v2220_v53 = vpop.f32.mrb[41].mxu1  ;;  %v1131_v61 = vpop.f32.mrb[42].mxu0  ;;  %v2920_v43 = vmax.f32 %v1129_v23, 0.0 }
 0x159   :  { %v2981_v24 = vmax.f32 %v2220_v53, 0.0  ;;  %v4903_v25 = vpop.f32.mrb[42].mxu1  ;;  %v2922_v38 = vmax.f32 %v1131_v61, 0.0  ;;  %v1133_v40 = vpop.f32.mrb[43].mxu0 }
 0x15a   :  { %v2990_v27 = vmax.f32 %v4903_v25, 0.0  ;;  %v2223_v28 = vpop.f32.mrb[43].mxu1  ;;  %v2923_v44 = vmax.f32 %v1133_v40, 0.0 }
 0x15b   :  { %v2984_v42 = vmax.f32 %v2223_v28, 0.0  ;;  %1396 = vmatmul.mubr.bf16.gmra.mrb[148].mxu0 %v5505_v62  ;;  %v3491_v56 = vpack.c.bf16 %v2922_v38, %v2919_v34  ;;  %v5216_v28 = vld [vmem:[#allocation3 + $0x278] sm:$0xff]  }
 0x15c   :  { %v5602_v45 = vpack.c.bf16 %v2990_v27, %v2987_v22  ;;  %5009 = vmatmul.mubr.bf16.gmra.mrb[148].mxu1 %v5212_v59  ;;  %1405 = vmatprep.mubr.bf16.mxu0 %v6059_v0  ;;  %v3492_v58 = vpack.c.bf16 %v2923_v44, %v2920_v43 }
 0x15d   :  { %v5605_v54 = vpack.c.bf16 %v2984_v42, %v2981_v24  ;;  %5012 = vmatprep.mubr.bf16.mxu1 %v5213_v26  ;;  %v5217_v42 = vld [vmem:[#allocation3 + $0x280] sm:$0xff]  }
 0x15e   :  { %v1137_v47 = vpop.f32.mrb[44].mxu0  ;;  %3889 = vmatprep.subr.bf16.mxu1 %v3492_v58 }
 0x15f   :  { %v4906_v46 = vpop.f32.mrb[44].mxu1  ;;  %v1139_v50 = vpop.f32.mrb[45].mxu0  ;;  %3890 = vmatpush1.bf16.msra.mxu1 %v3491_v56  ;;  %v2925_v17 = vmax.f32 %v1137_v47, 0.0 }
 0x160   :  { %v2999_v48 = vmax.f32 %v4906_v46, 0.0  ;;  %v2236_v60 = vpop.f32.mrb[45].mxu1  ;;  %v1141_v62 = vpop.f32.mrb[46].mxu0  ;;  %v2926_v57 = vmax.f32 %v1139_v50, 0.0 }
 0x161   :  { %v2993_v51 = vmax.f32 %v2236_v60, 0.0  ;;  %v4907_v52 = vpop.f32.mrb[46].mxu1  ;;  %v2928_v19 = vmax.f32 %v1141_v62, 0.0  ;;  %v1143_v21 = vpop.f32.mrb[47].mxu0 }
 0x162   :  { %v3002_v14 = vmax.f32 %v4907_v52, 0.0  ;;  %v2239_v16 = vpop.f32.mrb[47].mxu1  ;;  %v2929_v22 = vmax.f32 %v1143_v21, 0.0 }
 0x163   :  { %v2996_v55 = vmax.f32 %v2239_v16, 0.0  ;;  %1406 = vmatmul.mubr.bf16.gmra.mrb[152].mxu0 %v5507_v63  ;;  %v3494_v59 = vpack.c.bf16 %v2928_v19, %v2925_v17  ;;  %v5218_v17 = vld [vmem:[#allocation3 + $0x288] sm:$0xff]  }
 0x164   :  { %v5608_v53 = vpack.c.bf16 %v3002_v14, %v2999_v48  ;;  %5013 = vmatmul.mubr.bf16.gmra.mrb[152].mxu1 %v5214_v49  ;;  %1415 = vmatprep.mubr.bf16.mxu0 %v6059_v0  ;;  %v3495_v24 = vpack.c.bf16 %v2929_v22, %v2926_v57 }
 0x165   :  { %v5611_v23 = vpack.c.bf16 %v2996_v55, %v2993_v51  ;;  %5016 = vmatprep.mubr.bf16.mxu1 %v5215_v8 }
 0x166   :  { %v1147_v26 = vpop.f32.mrb[48].mxu0  ;;  %3891 = vmatprep.subr.bf16.mxu1 %v3495_v24 }
 0x167   :  { %v4910_v25 = vpop.f32.mrb[48].mxu1  ;;  %v1149_v34 = vpop.f32.mrb[49].mxu0  ;;  %3892 = vmatpush1.bf16.msra.mxu1 %v3494_v59  ;;  %v2931_v56 = vmax.f32 %v1147_v26, 0.0  ;;  %v5219_v59 = vld [vmem:[#allocation3 + $0x290] sm:$0xff]  }
 0x168   :  { %v3011_v61 = vmax.f32 %v4910_v25, 0.0  ;;  %v2252_v27 = vpop.f32.mrb[49].mxu1  ;;  %v1151_v63 = vpop.f32.mrb[50].mxu0  ;;  %v2932_v48 = vmax.f32 %v1149_v34, 0.0 }
 0x169   :  { %v3005_v38 = vmax.f32 %v2252_v27, 0.0  ;;  %v4911_v40 = vpop.f32.mrb[50].mxu1  ;;  %v2934_v58 = vmax.f32 %v1151_v63, 0.0  ;;  %v1153_v46 = vpop.f32.mrb[51].mxu0 }
 0x16a   :  { %v3014_v43 = vmax.f32 %v4911_v40, 0.0  ;;  %v2255_v44 = vpop.f32.mrb[51].mxu1  ;;  %v2935_v60 = vmax.f32 %v1153_v46, 0.0 }
 0x16b   :  { %v3008_v47 = vmax.f32 %v2255_v44, 0.0  ;;  %1416 = vmatmul.mubr.bf16.gmra.mrb[156].mxu0 %v5512_v1  ;;  %v3497_v50 = vpack.c.bf16 %v2934_v58, %v2931_v56  ;;  %v5220_v56 = vld [vmem:[#allocation3 + $0x298] sm:$0xff]  }
 0x16c   :  { %v3538_v49 = vpack.c.bf16 %v3014_v43, %v3011_v61  ;;  %5017 = vmatmul.mubr.bf16.gmra.mrb[156].mxu1 %v5216_v28  ;;  %1425 = vmatprep.mubr.bf16.mxu0 %v6059_v0  ;;  %v3498_v52 = vpack.c.bf16 %v2935_v60, %v2932_v48  ;;  %v5221_v60 = vld [vmem:[#allocation3 + $0x2a0] sm:$0xff]  }
 0x16d   :  { %v3535_v51 = vpack.c.bf16 %v3008_v47, %v3005_v38  ;;  %5020 = vmatprep.mubr.bf16.mxu1 %v5217_v42 }
 0x16e   :  { %v1157_v62 = vpop.f32.mrb[52].mxu0  ;;  %3893 = vmatprep.subr.bf16.mxu1 %v3498_v52 }
 0x16f   :  { %v4914_v8 = vpop.f32.mrb[52].mxu1  ;;  %4729 = vmatprep.subr.bf16.mxu0 %v3535_v51  ;;  %v1159_v19 = vpop.f32.mrb[53].mxu0  ;;  %3894 = vmatpush1.bf16.msra.mxu1 %v3497_v50  ;;  %v2937_v24 = vmax.f32 %v1157_v62, 0.0 }
 0x170   :  { %v3023_v14 = vmax.f32 %v4914_v8, 0.0  ;;  %v2268_v16 = vpop.f32.mrb[53].mxu1  ;;  %4730 = vmatpush3.bf16.msra.mxu0 %v5593_v41  ;;  %v1161_v55 = vpop.f32.mrb[54].mxu0  ;;  %v2938_v27 = vmax.f32 %v1159_v19, 0.0 }
 0x171   :  { %v3017_v21 = vmax.f32 %v2268_v16, 0.0  ;;  %v4915_v1 = vpop.f32.mrb[54].mxu1  ;;  %4731 = vmatprep.subr.bf16.mxu0 %v3538_v49  ;;  %v2940_v25 = vmax.f32 %v1161_v55, 0.0  ;;  %v1163_v26 = vpop.f32.mrb[55].mxu0 }
 0x172   :  { %v3026_v57 = vmax.f32 %v4915_v1, 0.0  ;;  %v2271_v22 = vpop.f32.mrb[55].mxu1  ;;  %v2941_v28 = vmax.f32 %v1163_v26, 0.0  ;;  %v5223_v26 = vld [vmem:[#allocation3 + $0x2b0] sm:$0xff]  }
 0x173   :  { %v3020_v61 = vmax.f32 %v2271_v22, 0.0  ;;  %1426 = vmatmul.mubr.bf16.gmra.mrb[160].mxu0 %v5514_v2  ;;  %v3500_v41 = vpack.c.bf16 %v2940_v25, %v2937_v24 }
 0x174   :  { %v3544_v34 = vpack.c.bf16 %v3026_v57, %v3023_v14  ;;  %5021 = vmatmul.mubr.bf16.gmra.mrb[160].mxu1 %v5218_v17  ;;  %4732 = vmatpush3.bf16.msra.mxu0 %v5590_v39  ;;  %v3501_v40 = vpack.c.bf16 %v2941_v28, %v2938_v27  ;;  %v5222_v57 = vld [vmem:[#allocation3 + $0x2a8] sm:$0xff]  }
 0x175   :  { %v3541_v38 = vpack.c.bf16 %v3020_v61, %v3017_v21  ;;  %1435 = vmatprep.mubr.bf16.mxu0 %v6059_v0  ;;  %5024 = vmatprep.mubr.bf16.mxu1 %v5219_v59 }
 0x176   :  { %v1167_v63 = vpop.f32.mrb[56].mxu0  ;;  %3895 = vmatprep.subr.bf16.mxu1 %v3501_v40 }
 0x177   :  { %v4918_v42 = vpop.f32.mrb[56].mxu1  ;;  %4733 = vmatprep.subr.bf16.mxu0 %v3541_v38  ;;  %v1169_v58 = vpop.f32.mrb[57].mxu0  ;;  %3896 = vmatpush1.bf16.msra.mxu1 %v3500_v41  ;;  %v2943_v49 = vmax.f32 %v1167_v63, 0.0 }
 0x178   :  { %v3035_v43 = vmax.f32 %v4918_v42, 0.0  ;;  %v2284_v44 = vpop.f32.mrb[57].mxu1  ;;  %4734 = vmatpush3.bf16.msra.mxu0 %v5599_v20  ;;  %v1171_v47 = vpop.f32.mrb[58].mxu0  ;;  %v2944_v8 = vmax.f32 %v1169_v58, 0.0 }
 0x179   :  { %v3029_v46 = vmax.f32 %v2284_v44, 0.0  ;;  %v4919_v2 = vpop.f32.mrb[58].mxu1  ;;  %4735 = vmatprep.subr.bf16.mxu0 %v3544_v34  ;;  %v2946_v50 = vmax.f32 %v1171_v47, 0.0  ;;  %v1173_v51 = vpop.f32.mrb[59].mxu0  ;;  %v5224_v44 = vld [vmem:[#allocation3 + $0x2b8] sm:$0xff]  }
 0x17a   :  { %v3038_v48 = vmax.f32 %v4919_v2, 0.0  ;;  %v2287_v39 = vpop.f32.mrb[59].mxu1  ;;  %v2947_v62 = vmax.f32 %v1173_v51, 0.0  ;;  %v5227_v51 = vld [vmem:[#allocation3 + $0x2d0] sm:$0xff]  }
 0x17b   :  { %v3032_v52 = vmax.f32 %v2287_v39, 0.0  ;;  %1436 = vmatmul.mubr.bf16.gmra.mrb[164].mxu0 %v5519_v3  ;;  %v3503_v16 = vpack.c.bf16 %v2946_v50, %v2943_v49  ;;  %v5226_v49 = vld [vmem:[#allocation3 + $0x2c8] sm:$0xff]  }
 0x17c   :  { %v3550_v14 = vpack.c.bf16 %v3038_v48, %v3035_v43  ;;  %5025 = vmatmul.mubr.bf16.gmra.mrb[164].mxu1 %v5220_v56  ;;  %4736 = vmatpush3.bf16.msra.mxu0 %v5596_v18  ;;  %v3504_v20 = vpack.c.bf16 %v2947_v62, %v2944_v8 }
 0x17d   :  { %v3547_v17 = vpack.c.bf16 %v3032_v52, %v3029_v46  ;;  %1445 = vmatprep.mubr.bf16.mxu0 %v6059_v0  ;;  %5028 = vmatprep.mubr.bf16.mxu1 %v5221_v60 }
 0x17e   :  { %v1177_v21 = vpop.f32.mrb[60].mxu0  ;;  %3897 = vmatprep.subr.bf16.mxu1 %v3504_v20 }
 0x17f   :  { %v4922_v19 = vpop.f32.mrb[60].mxu1  ;;  %4737 = vmatprep.subr.bf16.mxu0 %v3547_v17  ;;  %v1179_v22 = vpop.f32.mrb[61].mxu0  ;;  %3898 = vmatpush1.bf16.msra.mxu1 %v3503_v16  ;;  %v2949_v61 = vmax.f32 %v1177_v21, 0.0  ;;  %v5239_v17 = vld [vmem:[#allocation3 + $0x160] sm:$0xff]   ;;  %v5228_v21 = vld [vmem:[#allocation3 + $0x2d8] sm:$0xff]  }
 0x180   :  { %v3047_v1 = vmax.f32 %v4922_v19, 0.0  ;;  %v2300_v55 = vpop.f32.mrb[61].mxu1  ;;  %4738 = vmatpush3.bf16.msra.mxu0 %v5605_v54  ;;  %v1181_v24 = vpop.f32.mrb[62].mxu0  ;;  %v2950_v41 = vmax.f32 %v1179_v22, 0.0 }
 0x181   :  { %v3041_v59 = vmax.f32 %v2300_v55, 0.0  ;;  %v4923_v3 = vpop.f32.mrb[62].mxu1  ;;  %4739 = vmatprep.subr.bf16.mxu0 %v3550_v14  ;;  %v2952_v27 = vmax.f32 %v1181_v24, 0.0  ;;  %v1183_v28 = vpop.f32.mrb[63].mxu0  ;;  %v5229_v55 = vld [vmem:[#allocation3 + $0x2e0] sm:$0xff]  }
 0x182   :  { %v3050_v25 = vmax.f32 %v4923_v3, 0.0  ;;  %v2303_v18 = vpop.f32.mrb[63].mxu1  ;;  %v2953_v38 = vmax.f32 %v1183_v28, 0.0  ;;  %v5230_v28 = vld [vmem:[#allocation3 + $0x2e8] sm:$0xff]  }
 0x183   :  { %v3044_v34 = vmax.f32 %v2303_v18, 0.0  ;;  %1446 = vmatmul.mubr.bf16.gmra.mrb[168].mxu0 %v5521_v4  ;;  %v3506_v42 = vpack.c.bf16 %v2952_v27, %v2949_v61  ;;  %v5225_v4 = vld [vmem:[#allocation3 + $0x2c0] sm:$0xff]   ;;  %v5240_v18 = vld [vmem:[#allocation3 + $0x168] sm:$0xff]  }
 0x184   :  { %v3556_v40 = vpack.c.bf16 %v3050_v25, %v3047_v1  ;;  %5029 = vmatmul.mubr.bf16.gmra.mrb[168].mxu1 %v5222_v57  ;;  %4740 = vmatpush3.bf16.msra.mxu0 %v5602_v45  ;;  %v3507_v54 = vpack.c.bf16 %v2953_v38, %v2950_v41  ;;  %v5231_v41 = vld [vmem:[#allocation3 + $0x2f0] sm:$0xff]  }
 0x185   :  { %v3553_v63 = vpack.c.bf16 %v3044_v34, %v3041_v59  ;;  %1455 = vmatprep.mubr.bf16.mxu0 %v6059_v0  ;;  %5032 = vmatprep.mubr.bf16.mxu1 %v5223_v26 }
 0x186   :  { %v1187_v43 = vpop.f32.mrb[64].mxu0  ;;  %3899 = vmatprep.subr.bf16.mxu1 %v3507_v54 }
 0x187   :  { %4741 = vmatprep.subr.bf16.mxu0 %v3553_v63  ;;  %v1189_v56 = vpop.f32.mrb[65].mxu0  ;;  %3900 = vmatpush1.bf16.msra.mxu1 %v3506_v42  ;;  %v2955_v46 = vmax.f32 %v1187_v43, 0.0 }
 0x188   :  { %4742 = vmatpush3.bf16.msra.mxu0 %v5611_v23  ;;  %v1191_v58 = vpop.f32.mrb[66].mxu0  ;;  %v2956_v48 = vmax.f32 %v1189_v56, 0.0 }
 0x189   :  { %4743 = vmatprep.subr.bf16.mxu0 %v3556_v40  ;;  %v2958_v2 = vmax.f32 %v1191_v58, 0.0  ;;  %v1193_v47 = vpop.f32.mrb[67].mxu0  ;;  %v5323_v58 = vmov 1966171168  }
 0x18a   :  { %v2959_v45 = vmax.f32 %v1193_v47, 0.0 }
 0x18b   :  { %1456 = vmatmul.mubr.bf16.gmra.mrb[172].mxu0 %v5527_v5  ;;  %v5630_v39 = vpack.c.bf16 %v2958_v2, %v2955_v46  ;;  %v6058_v46 = vlaneseq }
 0x18c   :  { %5033 = vmatmul.mubr.bf16.gmra.mrb[172].mxu1 %v5224_v44  ;;  %4744 = vmatpush3.bf16.msra.mxu0 %v5608_v53  ;;  %v3510_v60 = vpack.c.bf16 %v2959_v45, %v2956_v48  ;;  %v5241_v44 = vld [vmem:[#allocation3 + $0x170] sm:$0xff]   ;;  %v5232_v48 = vld [vmem:[#allocation3 + $0x2f8] sm:$0xff]  }
 0x18d   :  { %1465 = vmatprep.mubr.bf16.mxu0 %v6059_v0  ;;  %5036 = vmatprep.mubr.bf16.mxu1 %v5225_v4  ;;  %v3767_v4 = vunpack.c.l.s4 %v5323_v58 }
 0x18e   :  { %v1197_v23 = vpop.f32.mrb[68].mxu0  ;;  %3910 = vmatprep.subr.bf16.mxu1 %v3510_v60  ;;  %v5233_v60 = vld [vmem:[#allocation3 + $0x300] sm:$0xff]  }
 0x18f   :  { %v1199_v50 = vpop.f32.mrb[69].mxu0  ;;  %v2961_v8 = vmax.f32 %v1197_v23, 0.0  ;;  %v3768_v23 = vunpack.c.0.s8 %v3767_v4 }
 0x190   :  { %v1201_v52 = vpop.f32.mrb[70].mxu0  ;;  %v2962_v16 = vmax.f32 %v1199_v50, 0.0 }
 0x191   :  { %v2964_v62 = vmax.f32 %v1201_v52, 0.0  ;;  %v1203_v14 = vpop.f32.mrb[71].mxu0 }
 0x192   :  { %v2965_v5 = vmax.f32 %v1203_v14, 0.0 }
 0x193   :  { %1466 = vmatmul.mubr.bf16.gmra.mrb[176].mxu0 %v5239_v17  ;;  %v5634_v20 = vpack.c.bf16 %v2964_v62, %v2961_v8 }
 0x194   :  { %5037 = vmatmul.mubr.bf16.gmra.mrb[176].mxu1 %v5226_v49  ;;  %1475 = vmatprep.mubr.bf16.mxu0 %v6059_v0  ;;  %v5637_v53 = vpack.c.bf16 %v2965_v5, %v2962_v16  ;;  %v3770_v49 = vshrl.u32 %v6058_v46, 7  ;;  %v5242_v16 = vld [vmem:[#allocation3 + $0x178] sm:$0xff]  }
 0x195   :  { %5040 = vmatprep.mubr.bf16.mxu1 %v5227_v51 }
 0x196   :  { %v1207_v19 = vpop.f32.mrb[72].mxu0  ;;  %v5653_v17 = vsub.s32 %v3768_v23, %v3770_v49 }
 0x197   :  { %v1209_v1 = vpop.f32.mrb[73].mxu0  ;;  %v2967_v22 = vmax.f32 %v1207_v19, 0.0 }
 0x198   :  { %v1211_v57 = vpop.f32.mrb[74].mxu0  ;;  %v2968_v24 = vmax.f32 %v1209_v1, 0.0 }
 0x199   :  { %v2970_v59 = vmax.f32 %v1211_v57, 0.0  ;;  %v1213_v3 = vpop.f32.mrb[75].mxu0 }
 0x19a   :  { %v2971_v25 = vmax.f32 %v1213_v3, 0.0 }
 0x19b   :  { %1476 = vmatmul.mubr.bf16.gmra.mrb[180].mxu0 %v5240_v18  ;;  %v5639_v26 = vpack.c.bf16 %v2970_v59, %v2967_v22  ;;  %v5235_v22 = vld [vmem:[#allocation3 + $0x310] sm:$0xff]  }
 0x19c   :  { %5041 = vmatmul.mubr.bf16.gmra.mrb[180].mxu1 %v5228_v21  ;;  %1485 = vmatprep.mubr.bf16.mxu0 %v6059_v0  ;;  %v5642_v61 = vpack.c.bf16 %v2971_v25, %v2968_v24  ;;  %v5660_v21 = vld [vmem:[%s6055_s2] sm:$0xff] }
 0x19d   :  { %5044 = vmatprep.mubr.bf16.mxu1 %v5229_v55  ;;  %v5234_v55 = vld [vmem:[#allocation3 + $0x308] sm:$0xff]   ;;  %v3772_v59 = vrot.slane %v5660_v21, %v5653_v17 }
 0x19e   :  { %v1217_v27 = vpop.f32.mrb[76].mxu0 }
 0x19f   :  { %v1219_v34 = vpop.f32.mrb[77].mxu0  ;;  %v2973_v40 = vmax.f32 %v1217_v27, 0.0 }
 0x1a0   :  { %v1221_v38 = vpop.f32.mrb[78].mxu0  ;;  %v2974_v54 = vmax.f32 %v1219_v34, 0.0  ;;  %v5243_v34 = vld [vmem:[#allocation3 + $0x180] sm:$0xff]  }
 0x1a1   :  { %v2976_v42 = vmax.f32 %v1221_v38, 0.0  ;;  %v1223_v63 = vpop.f32.mrb[79].mxu0  ;;  %v3780_v38 = vcombine.high %v3772_v59, %v3772_v59 }
 0x1a2   :  { %v2977_v43 = vmax.f32 %v1223_v63, 0.0  ;;  %v5236_v63 = vld [vmem:[#allocation3 + $0x318] sm:$0xff]  }
 0x1a3   :  { %1486 = vmatmul.mubr.bf16.gmra.mrb[184].mxu0 %v5241_v44  ;;  %v5644_v56 = vpack.c.bf16 %v2976_v42, %v2973_v40 }
 0x1a4   :  { %5045 = vmatmul.mubr.bf16.gmra.mrb[184].mxu1 %v5230_v28  ;;  %1495 = vmatprep.mubr.bf16.mxu0 %v6059_v0  ;;  %v5647_v2 = vpack.c.bf16 %v2977_v43, %v2974_v54  ;;  %v5670_v43 = vrot.slane %v3780_v38, %v5653_v17 }
 0x1a5   :  { %5048 = vmatprep.mubr.bf16.mxu1 %v5231_v41 }
 0x1a6   :  { %v1227_v47 = vpop.f32.mrb[80].mxu0  ;;  %6079 = vst [vmem:[#allocation20_spill] sm:$0xff] %v5670_v43 }
 0x1a7   :  { %v1229_v45 = vpop.f32.mrb[81].mxu0  ;;  %v2979_v51 = vmax.f32 %v1227_v47, 0.0 }
 0x1a8   :  { %v1231_v50 = vpop.f32.mrb[82].mxu0  ;;  %v2980_v62 = vmax.f32 %v1229_v45, 0.0 }
 0x1a9   :  { %v2982_v52 = vmax.f32 %v1231_v50, 0.0  ;;  %v1233_v8 = vpop.f32.mrb[83].mxu0 }
 0x1aa   :  { %v2983_v14 = vmax.f32 %v1233_v8, 0.0 }
 0x1ab   :  { %1496 = vmatmul.mubr.bf16.gmra.mrb[188].mxu0 %v5242_v16  ;;  %v5650_v5 = vpack.c.bf16 %v2982_v52, %v2979_v51  ;;  %v5677_v51 = vrot.slane %v3772_v59, %v5653_v17 }
 0x1ac   :  { %5049 = vmatmul.mubr.bf16.gmra.mrb[188].mxu1 %v5232_v48  ;;  %1505 = vmatprep.mubr.bf16.mxu0 %v6059_v0  ;;  %v5655_v19 = vpack.c.bf16 %v2983_v14, %v2980_v62 }
 0x1ad   :  { %5052 = vmatprep.mubr.bf16.mxu1 %v5233_v60  ;;  %v5244_v60 = vld [vmem:[#allocation3 + $0x188] sm:$0xff]   ;;  %6080 = vst [vmem:[#allocation21_spill] sm:$0xff] %v5677_v51 }
 0x1ae   :  { %v1237_v1 = vpop.f32.mrb[84].mxu0 }
 0x1af   :  { %v1239_v57 = vpop.f32.mrb[85].mxu0  ;;  %v2985_v24 = vmax.f32 %v1237_v1, 0.0  ;;  %v5681_v1 = vcombine.high %v5670_v43, %v5670_v43 }
 0x1b0   :  { %v1241_v3 = vpop.f32.mrb[86].mxu0  ;;  %v2986_v27 = vmax.f32 %v1239_v57, 0.0 }
 0x1b1   :  { %v2988_v25 = vmax.f32 %v1241_v3, 0.0  ;;  %v1243_v18 = vpop.f32.mrb[87].mxu0 }
 0x1b2   :  { %v2989_v28 = vmax.f32 %v1243_v18, 0.0 }
 0x1b3   :  { %1506 = vmatmul.mubr.bf16.gmra.mrb[192].mxu0 %v5243_v34  ;;  %v5664_v41 = vpack.c.bf16 %v2988_v25, %v2985_v24 }
 0x1b4   :  { %5053 = vmatmul.mubr.bf16.gmra.mrb[192].mxu1 %v5234_v55  ;;  %1515 = vmatprep.mubr.bf16.mxu0 %v6059_v0  ;;  %v5667_v40 = vpack.c.bf16 %v2989_v28, %v2986_v27 }
 0x1b5   :  { %5056 = vmatprep.mubr.bf16.mxu1 %v5235_v22  ;;  %v5245_v22 = vld [vmem:[#allocation3 + $0x190] sm:$0xff]  }
 0x1b6   :  { %v1247_v42 = vpop.f32.mrb[88].mxu0 }
 0x1b7   :  { %v1249_v54 = vpop.f32.mrb[89].mxu0  ;;  %v2991_v58 = vmax.f32 %v1247_v42, 0.0 }
 0x1b8   :  { %v1251_v44 = vpop.f32.mrb[90].mxu0  ;;  %v2992_v48 = vmax.f32 %v1249_v54, 0.0 }
 0x1b9   :  { %v2994_v4 = vmax.f32 %v1251_v44, 0.0  ;;  %v1253_v47 = vpop.f32.mrb[91].mxu0 }
 0x1ba   :  { %v2995_v45 = vmax.f32 %v1253_v47, 0.0 }
 0x1bb   :  { %1516 = vmatmul.mubr.bf16.gmra.mrb[196].mxu0 %v5244_v60  ;;  %v5672_v23 = vpack.c.bf16 %v2994_v4, %v2991_v58 }
 0x1bc   :  { %5057 = vmatmul.mubr.bf16.gmra.mrb[196].mxu1 %v5236_v63  ;;  %1525 = vmatprep.mubr.bf16.mxu0 %v6059_v0  ;;  %v3528_v49 = vpack.c.bf16 %v2995_v45, %v2992_v48  ;;  %v5247_v45 = vld [vmem:[#allocation3 + $0x1a0] sm:$0xff]  }
 0x1bd   :  { %3901 = vmatprep.mubr.bf16.mxu1 %v5670_v43 }
 0x1be   :  { %v1257_v50 = vpop.f32.mrb[92].mxu0 }
 0x1bf   :  { %v1259_v52 = vpop.f32.mrb[93].mxu0  ;;  %v2997_v62 = vmax.f32 %v1257_v50, 0.0 }
 0x1c0   :  { %v1261_v8 = vpop.f32.mrb[94].mxu0  ;;  %v2998_v55 = vmax.f32 %v1259_v52, 0.0 }
 0x1c1   :  { %v3000_v14 = vmax.f32 %v1261_v8, 0.0  ;;  %v1263_v16 = vpop.f32.mrb[95].mxu0 }
 0x1c2   :  { %v3001_v57 = vmax.f32 %v1263_v16, 0.0  ;;  %v5248_v16 = vld [vmem:[#allocation3 + $0x1a8] sm:$0xff]  }
 0x1c3   :  { %1526 = vmatmul.mubr.bf16.gmra.mrb[200].mxu0 %v5245_v22  ;;  %v3530_v3 = vpack.c.bf16 %v3000_v14, %v2997_v62 }
 0x1c4   :  { %3902 = vmatmul.mubr.bf16.vlgmr.msra.gmra.mrb[200].mxu1 %v5677_v51  ;;  %1535 = vmatprep.mubr.bf16.mxu0 %v6059_v0  ;;  %v3531_v59 = vpack.c.bf16 %v3001_v57, %v2998_v55 }
 0x1c5   :  { %3911 = vmatpush1.bf16.msra.mxu1 %v5630_v39  ;;  %3942 = vmatprep.mubr.bf16.mxu1 %v5681_v1  ;;  %v5246_v39 = vld [vmem:[#allocation3 + $0x198] sm:$0xff]  }
 0x1c6   :  { %3912 = vmatprep.subr.bf16.mxu1 %v5637_v53  ;;  %v1267_v24 = vpop.f32.mrb[96].mxu0 }
 0x1c7   :  { %v1269_v25 = vpop.f32.mrb[97].mxu0  ;;  %v3003_v27 = vmax.f32 %v1267_v24, 0.0 }
 0x1c8   :  { %v1271_v18 = vpop.f32.mrb[98].mxu0  ;;  %v3004_v38 = vmax.f32 %v1269_v25, 0.0 }
 0x1c9   :  { %3913 = vmatpush1.bf16.msra.mxu1 %v5634_v20  ;;  %v3006_v28 = vmax.f32 %v1271_v18, 0.0  ;;  %v1273_v34 = vpop.f32.mrb[99].mxu0 }
 0x1ca   :  { %3914 = vmatprep.subr.bf16.mxu1 %v5642_v61  ;;  %v3007_v42 = vmax.f32 %v1273_v34, 0.0 }
 0x1cb   :  { %1536 = vmatmul.mubr.bf16.gmra.mrb[204].mxu0 %v5246_v39  ;;  %v3533_v63 = vpack.c.bf16 %v3006_v28, %v3003_v27  ;;  %v5249_v27 = vld [vmem:[#allocation3 + $0x1b0] sm:$0xff]  }
 0x1cc   :  { %1545 = vmatprep.mubr.bf16.mxu0 %v6059_v0  ;;  %v3534_v53 = vpack.c.bf16 %v3007_v42, %v3004_v38 }
 0x1cd   :  { %3915 = vmatpush1.bf16.msra.mxu1 %v5639_v26 }
 0x1ce   :  { %3916 = vmatprep.subr.bf16.mxu1 %v5647_v2  ;;  %v1277_v54 = vpop.f32.mrb[100].mxu0 }
 0x1cf   :  { %v1279_v20 = vpop.f32.mrb[101].mxu0  ;;  %v3009_v44 = vmax.f32 %v1277_v54, 0.0 }
 0x1d0   :  { %v1281_v61 = vpop.f32.mrb[102].mxu0  ;;  %v3010_v47 = vmax.f32 %v1279_v20, 0.0  ;;  %v5250_v20 = vld [vmem:[#allocation3 + $0x1b8] sm:$0xff]  }
 0x1d1   :  { %3917 = vmatpush1.bf16.msra.mxu1 %v5644_v56  ;;  %v3012_v58 = vmax.f32 %v1281_v61, 0.0  ;;  %v1283_v4 = vpop.f32.mrb[103].mxu0 }
 0x1d2   :  { %3918 = vmatprep.subr.bf16.mxu1 %v5655_v19  ;;  %v3013_v48 = vmax.f32 %v1283_v4, 0.0 }
 0x1d3   :  { %1546 = vmatmul.mubr.bf16.gmra.mrb[208].mxu0 %v5247_v45  ;;  %v3536_v60 = vpack.c.bf16 %v3012_v58, %v3009_v44 }
 0x1d4   :  { %1555 = vmatprep.mubr.bf16.mxu0 %v6059_v0  ;;  %v3537_v26 = vpack.c.bf16 %v3013_v48, %v3010_v47 }
 0x1d5   :  { %3919 = vmatpush1.bf16.msra.mxu1 %v5650_v5 }
 0x1d6   :  { %3920 = vmatprep.subr.bf16.mxu1 %v5667_v40  ;;  %v1287_v2 = vpop.f32.mrb[104].mxu0 }
 0x1d7   :  { %v1289_v56 = vpop.f32.mrb[105].mxu0  ;;  %v3015_v50 = vmax.f32 %v1287_v2, 0.0  ;;  %v5251_v2 = vld [vmem:[#allocation3 + $0x1c0] sm:$0xff]  }
 0x1d8   :  { %v1291_v19 = vpop.f32.mrb[106].mxu0  ;;  %v3016_v62 = vmax.f32 %v1289_v56, 0.0 }
 0x1d9   :  { %3921 = vmatpush1.bf16.msra.mxu1 %v5664_v41  ;;  %v3018_v52 = vmax.f32 %v1291_v19, 0.0  ;;  %v1293_v8 = vpop.f32.mrb[107].mxu0 }
 0x1da   :  { %3922 = vmatprep.subr.bf16.mxu1 %v3528_v49  ;;  %v3019_v14 = vmax.f32 %v1293_v8, 0.0 }
 0x1db   :  { %1556 = vmatmul.mubr.bf16.gmra.mrb[212].mxu0 %v5248_v16  ;;  %v3539_v55 = vpack.c.bf16 %v3018_v52, %v3015_v50 }
 0x1dc   :  { %1565 = vmatprep.mubr.bf16.mxu0 %v6059_v0  ;;  %v3540_v5 = vpack.c.bf16 %v3019_v14, %v3016_v62 }
 0x1dd   :  { %3923 = vmatpush1.bf16.msra.mxu1 %v5672_v23 }
 0x1de   :  { %3924 = vmatprep.subr.bf16.mxu1 %v3531_v59  ;;  %v1297_v40 = vpop.f32.mrb[108].mxu0 }
 0x1df   :  { %v1299_v57 = vpop.f32.mrb[109].mxu0  ;;  %v3021_v49 = vmax.f32 %v1297_v40, 0.0  ;;  %v5252_v40 = vld [vmem:[#allocation3 + $0x1c8] sm:$0xff]  }
 0x1e0   :  { %v1301_v41 = vpop.f32.mrb[110].mxu0  ;;  %v3022_v25 = vmax.f32 %v1299_v57, 0.0 }
 0x1e1   :  { %3925 = vmatpush1.bf16.msra.mxu1 %v3530_v3  ;;  %v3024_v22 = vmax.f32 %v1301_v41, 0.0  ;;  %v1303_v24 = vpop.f32.mrb[111].mxu0 }
 0x1e2   :  { %3926 = vmatprep.subr.bf16.mxu1 %v3534_v53  ;;  %v3025_v18 = vmax.f32 %v1303_v24, 0.0 }
 0x1e3   :  { %1566 = vmatmul.mubr.bf16.gmra.mrb[216].mxu0 %v5249_v27  ;;  %v3542_v28 = vpack.c.bf16 %v3024_v22, %v3021_v49 }
 0x1e4   :  { %1575 = vmatprep.mubr.bf16.mxu0 %v6059_v0  ;;  %v3543_v34 = vpack.c.bf16 %v3025_v18, %v3022_v25 }
 0x1e5   :  { %3927 = vmatpush1.bf16.msra.mxu1 %v3533_v63 }
 0x1e6   :  { %3928 = vmatprep.subr.bf16.mxu1 %v3537_v26  ;;  %v1307_v23 = vpop.f32.mrb[112].mxu0 }
 0x1e7   :  { %v1309_v59 = vpop.f32.mrb[113].mxu0  ;;  %v3027_v3 = vmax.f32 %v1307_v23, 0.0  ;;  %v5253_v23 = vld [vmem:[#allocation3 + $0x1d0] sm:$0xff]  }
 0x1e8   :  { %v1311_v38 = vpop.f32.mrb[114].mxu0  ;;  %v3028_v53 = vmax.f32 %v1309_v59, 0.0 }
 0x1e9   :  { %3929 = vmatpush1.bf16.msra.mxu1 %v3536_v60  ;;  %v3030_v42 = vmax.f32 %v1311_v38, 0.0  ;;  %v1313_v39 = vpop.f32.mrb[115].mxu0 }
 0x1ea   :  { %3930 = vmatprep.subr.bf16.mxu1 %v3540_v5  ;;  %v3031_v54 = vmax.f32 %v1313_v39, 0.0 }
 0x1eb   :  { %1576 = vmatmul.mubr.bf16.gmra.mrb[220].mxu0 %v5250_v20  ;;  %v3545_v61 = vpack.c.bf16 %v3030_v42, %v3027_v3  ;;  %v5708_v42 = vcombine.high %v5677_v51, %v5677_v51 }
 0x1ec   :  { %1585 = vmatprep.mubr.bf16.mxu0 %v6059_v0  ;;  %v3546_v44 = vpack.c.bf16 %v3031_v54, %v3028_v53  ;;  %v3765_v53 = vcombine.high %v5660_v21, %v5660_v21 }
 0x1ed   :  { %3931 = vmatpush1.bf16.msra.mxu1 %v3539_v55 }
 0x1ee   :  { %3932 = vmatprep.subr.bf16.mxu1 %v3543_v34  ;;  %v1317_v63 = vpop.f32.mrb[116].mxu0 }
 0x1ef   :  { %v1319_v58 = vpop.f32.mrb[117].mxu0  ;;  %v3033_v47 = vmax.f32 %v1317_v63, 0.0  ;;  %v5713_v63 = vrot.slane %v3765_v53, %v5653_v17 }
 0x1f0   :  { %v1321_v4 = vpop.f32.mrb[118].mxu0  ;;  %v3034_v60 = vmax.f32 %v1319_v58, 0.0 }
 0x1f1   :  { %3933 = vmatpush1.bf16.msra.mxu1 %v3542_v28  ;;  %v3036_v48 = vmax.f32 %v1321_v4, 0.0  ;;  %v1323_v45 = vpop.f32.mrb[119].mxu0 }
 0x1f2   :  { %3934 = vmatprep.subr.bf16.mxu1 %v3546_v44  ;;  %v3037_v26 = vmax.f32 %v1323_v45, 0.0  ;;  %v3781_v45 = vcombine.high %v5713_v63, %v5713_v63 }
 0x1f3   :  { %1586 = vmatmul.mubr.bf16.gmra.mrb[224].mxu0 %v5251_v2  ;;  %v3548_v56 = vpack.c.bf16 %v3036_v48, %v3033_v47  ;;  %v5254_v47 = vld [vmem:[#allocation3 + $0x1d8] sm:$0xff]  }
 0x1f4   :  { %1595 = vmatprep.mubr.bf16.mxu0 %v6059_v0  ;;  %v3549_v19 = vpack.c.bf16 %v3037_v26, %v3034_v60  ;;  %v5720_v60 = vrot.slane %v3781_v45, %v5653_v17 }
 0x1f5   :  { %3935 = vmatpush1.bf16.msra.mxu1 %v3545_v61 }
 0x1f6   :  { %v1327_v50 = vpop.f32.mrb[120].mxu0  ;;  %3936 = vmatprep.subr.bf16.mxu1 %v3549_v19  ;;  %6081 = vst [vmem:[#allocation22_spill] sm:$0xff] %v5720_v60 }
 0x1f7   :  { %v1329_v52 = vpop.f32.mrb[121].mxu0  ;;  %v3039_v62 = vmax.f32 %v1327_v50, 0.0 }
 0x1f8   :  { %v1331_v8 = vpop.f32.mrb[122].mxu0  ;;  %v3040_v55 = vmax.f32 %v1329_v52, 0.0 }
 0x1f9   :  { %3937 = vmatpush1.bf16.msra.mxu1 %v3548_v56  ;;  %v3042_v14 = vmax.f32 %v1331_v8, 0.0  ;;  %v1333_v16 = vpop.f32.mrb[123].mxu0 }
 0x1fa   :  { %v3043_v5 = vmax.f32 %v1333_v16, 0.0 }
 0x1fb   :  { %1596 = vmatmul.mubr.bf16.gmra.mrb[228].mxu0 %v5252_v40  ;;  %v3551_v57 = vpack.c.bf16 %v3042_v14, %v3039_v62  ;;  %v5255_v14 = vld [vmem:[#allocation3 + $0x1e0] sm:$0xff]  }
 0x1fc   :  { %1605 = vmatprep.mubr.bf16.mxu0 %v6059_v0  ;;  %v3552_v41 = vpack.c.bf16 %v3043_v5, %v3040_v55 }
 0x1fe   :  { %v1337_v49 = vpop.f32.mrb[124].mxu0  ;;  %3938 = vmatprep.subr.bf16.mxu1 %v3552_v41 }
 0x1ff   :  { %v1339_v22 = vpop.f32.mrb[125].mxu0  ;;  %3939 = vmatpush1.bf16.msra.mxu1 %v3551_v57  ;;  %v3045_v25 = vmax.f32 %v1337_v49, 0.0 }
 0x200   :  { %v1341_v24 = vpop.f32.mrb[126].mxu0  ;;  %v3046_v28 = vmax.f32 %v1339_v22, 0.0 }
 0x201   :  { %v3048_v18 = vmax.f32 %v1341_v24, 0.0  ;;  %v1343_v27 = vpop.f32.mrb[127].mxu0 }
 0x202   :  { %v3049_v34 = vmax.f32 %v1343_v27, 0.0 }
 0x203   :  { %1606 = vmatmul.mubr.bf16.gmra.mrb[232].mxu0 %v5253_v23  ;;  %v3554_v59 = vpack.c.bf16 %v3048_v18, %v3045_v25  ;;  %v5256_v18 = vld [vmem:[#allocation3 + $0x1e8] sm:$0xff]  }
 0x204   :  { %1615 = vmatprep.mubr.bf16.mxu0 %v6059_v0  ;;  %v3555_v38 = vpack.c.bf16 %v3049_v34, %v3046_v28  ;;  %v4926_v34 = vpop.f32.mrb[64].mxu1 }
 0x205   :  { %v2316_v23 = vpop.f32.mrb[65].mxu1 }
 0x206   :  { %v1347_v3 = vpop.f32.mrb[128].mxu0  ;;  %3940 = vmatprep.subr.bf16.mxu1 %v3555_v38  ;;  %v4927_v38 = vpop.f32.mrb[66].mxu1 }
 0x207   :  { %v1349_v39 = vpop.f32.mrb[129].mxu0  ;;  %3941 = vmatpush1.bf16.msra.mxu1 %v3554_v59  ;;  %v3051_v20 = vmax.f32 %v1347_v3, 0.0 }
 0x208   :  { %v1351_v54 = vpop.f32.mrb[130].mxu0  ;;  %v3052_v58 = vmax.f32 %v1349_v39, 0.0  ;;  %v2319_v39 = vpop.f32.mrb[67].mxu1 }
 0x209   :  { %v3054_v61 = vmax.f32 %v1351_v54, 0.0  ;;  %v1353_v44 = vpop.f32.mrb[131].mxu0  ;;  %v3059_v54 = vmax.f32 %v4926_v34, 0.0 }
 0x20a   :  { %v3055_v4 = vmax.f32 %v1353_v44, 0.0  ;;  %3943 = vmatmul.mubr.bf16.vlgmr.msra.gmra.mrb[200].mxu1 %v5708_v42 }
 0x20b   :  { %1616 = vmatmul.mubr.bf16.gmra.mrb[236].mxu0 %v5254_v47  ;;  %v3557_v48 = vpack.c.bf16 %v3054_v61, %v3051_v20  ;;  %3983 = vmatprep.mubr.bf16.mxu1 %v5720_v60  ;;  %v3053_v20 = vmax.f32 %v2316_v23, 0.0  ;;  %v3062_v61 = vmax.f32 %v4927_v38, 0.0  ;;  %v3056_v47 = vmax.f32 %v2319_v39, 0.0 }
 0x20c   :  { %1625 = vmatprep.mubr.bf16.mxu0 %v6059_v0  ;;  %v3558_v21 = vpack.c.bf16 %v3055_v4, %v3052_v58 }
 0x20e   :  { %v1357_v26 = vpop.f32.mrb[132].mxu0  ;;  %3951 = vmatprep.subr.bf16.mxu1 %v3558_v21  ;;  %v5725_v21 = vpack.c.bf16 %v3062_v61, %v3059_v54 }
 0x20f   :  { %v1359_v2 = vpop.f32.mrb[133].mxu0  ;;  %3952 = vmatpush1.bf16.msra.mxu1 %v3557_v48  ;;  %v3057_v19 = vmax.f32 %v1357_v26, 0.0  ;;  %v5257_v26 = vld [vmem:[#allocation3 + $0x1f0] sm:$0xff]  }
 0x210   :  { %v1361_v56 = vpop.f32.mrb[134].mxu0  ;;  %v3058_v8 = vmax.f32 %v1359_v2, 0.0  ;;  %6082 = vst [vmem:[#allocation23_spill] sm:$0xff] %v5725_v21 }
 0x211   :  { %v3060_v50 = vmax.f32 %v1361_v56, 0.0  ;;  %v1363_v52 = vpop.f32.mrb[135].mxu0  ;;  %v5727_v56 = vpack.c.bf16 %v3056_v47, %v3053_v20 }
 0x212   :  { %v3061_v62 = vmax.f32 %v1363_v52, 0.0 }
 0x213   :  { %1626 = vmatmul.mubr.bf16.gmra.mrb[240].mxu0 %v5255_v14  ;;  %v3560_v16 = vpack.c.bf16 %v3060_v50, %v3057_v19  ;;  %6083 = vst [vmem:[#allocation24_spill] sm:$0xff] %v5727_v56  ;;  %v4930_v50 = vpop.f32.mrb[68].mxu1 }
 0x214   :  { %1635 = vmatprep.mubr.bf16.mxu0 %v6059_v0  ;;  %v3561_v55 = vpack.c.bf16 %v3061_v62, %v3058_v8  ;;  %v2332_v52 = vpop.f32.mrb[69].mxu1 }
 0x215   :  { %v4931_v62 = vpop.f32.mrb[70].mxu1 }
 0x216   :  { %v1367_v5 = vpop.f32.mrb[136].mxu0  ;;  %3953 = vmatprep.subr.bf16.mxu1 %v3561_v55 }
 0x217   :  { %v1369_v40 = vpop.f32.mrb[137].mxu0  ;;  %3954 = vmatpush1.bf16.msra.mxu1 %v3560_v16  ;;  %v3063_v41 = vmax.f32 %v1367_v5, 0.0  ;;  %v2335_v16 = vpop.f32.mrb[71].mxu1  ;;  %v3071_v5 = vmax.f32 %v4930_v50, 0.0 }
 0x218   :  { %v1371_v57 = vpop.f32.mrb[138].mxu0  ;;  %v3064_v24 = vmax.f32 %v1369_v40, 0.0  ;;  %v3065_v40 = vmax.f32 %v2332_v52, 0.0  ;;  %v4934_v38 = vpop.f32.mrb[72].mxu1  ;;  %v5259_v52 = vld [vmem:[#allocation3 + $0x200] sm:$0xff]  }
 0x219   :  { %v3066_v49 = vmax.f32 %v1371_v57, 0.0  ;;  %v1373_v22 = vpop.f32.mrb[139].mxu0  ;;  %v3074_v57 = vmax.f32 %v4931_v62, 0.0 }
 0x21a   :  { %v3067_v25 = vmax.f32 %v1373_v22, 0.0 }
 0x21b   :  { %1636 = vmatmul.mubr.bf16.gmra.mrb[244].mxu0 %v5256_v18  ;;  %v3563_v27 = vpack.c.bf16 %v3066_v49, %v3063_v41 }
 0x21c   :  { %1645 = vmatprep.mubr.bf16.mxu0 %v6059_v0  ;;  %v3564_v28 = vpack.c.bf16 %v3067_v25, %v3064_v24  ;;  %v3068_v24 = vmax.f32 %v2335_v16, 0.0 }
 0x21e   :  { %v1377_v59 = vpop.f32.mrb[140].mxu0  ;;  %3955 = vmatprep.subr.bf16.mxu1 %v3564_v28  ;;  %v5258_v28 = vld [vmem:[#allocation3 + $0x1f8] sm:$0xff]   ;;  %v5732_v23 = vpack.c.bf16 %v3068_v24, %v3065_v40 }
 0x21f   :  { %v1379_v3 = vpop.f32.mrb[141].mxu0  ;;  %3956 = vmatpush1.bf16.msra.mxu1 %v3563_v27  ;;  %v3069_v44 = vmax.f32 %v1377_v59, 0.0  ;;  %v5730_v27 = vpack.c.bf16 %v3074_v57, %v3071_v5 }
 0x220   :  { %v1381_v53 = vpop.f32.mrb[142].mxu0  ;;  %v3070_v48 = vmax.f32 %v1379_v3, 0.0  ;;  %6085 = vst [vmem:[#allocation26_spill] sm:$0xff] %v5732_v23  ;;  %v2348_v3 = vpop.f32.mrb[73].mxu1 }
 0x221   :  { %v3072_v58 = vmax.f32 %v1381_v53, 0.0  ;;  %v1383_v4 = vpop.f32.mrb[143].mxu0  ;;  %6084 = vst [vmem:[#allocation25_spill] sm:$0xff] %v5730_v27  ;;  %v4935_v53 = vpop.f32.mrb[74].mxu1 }
 0x222   :  { %v3073_v45 = vmax.f32 %v1383_v4, 0.0  ;;  %v2351_v20 = vpop.f32.mrb[75].mxu1  ;;  %v3086_v4 = vmax.f32 %v4935_v53, 0.0  ;;  %v5260_v53 = vld [vmem:[#allocation3 + $0x208] sm:$0xff]  }
 0x223   :  { %1646 = vmatmul.mubr.bf16.gmra.mrb[248].mxu0 %v5257_v26  ;;  %v3566_v2 = vpack.c.bf16 %v3072_v58, %v3069_v44  ;;  %v3083_v44 = vmax.f32 %v4934_v38, 0.0  ;;  %v3077_v58 = vmax.f32 %v2348_v3, 0.0  ;;  %v3080_v26 = vmax.f32 %v2351_v20, 0.0  ;;  %v4938_v16 = vpop.f32.mrb[76].mxu1 }
 0x224   :  { %1655 = vmatprep.mubr.bf16.mxu0 %v6059_v0  ;;  %v3567_v19 = vpack.c.bf16 %v3073_v45, %v3070_v48 }
 0x225   :  { %v5735_v50 = vpack.c.bf16 %v3086_v4, %v3083_v44  ;;  %v5737_v62 = vpack.c.bf16 %v3080_v26, %v3077_v58 }
 0x226   :  { %v1387_v8 = vpop.f32.mrb[144].mxu0  ;;  %3957 = vmatprep.subr.bf16.mxu1 %v3567_v19 }
 0x227   :  { %v1389_v14 = vpop.f32.mrb[145].mxu0  ;;  %3958 = vmatpush1.bf16.msra.mxu1 %v3566_v2  ;;  %v3075_v41 = vmax.f32 %v1387_v8, 0.0  ;;  %6086 = vst [vmem:[#allocation27_spill] sm:$0xff] %v5735_v50  ;;  %6087 = vst [vmem:[#allocation28_spill] sm:$0xff] %v5737_v62 }
 0x228   :  { %v1391_v55 = vpop.f32.mrb[146].mxu0  ;;  %v3076_v25 = vmax.f32 %v1389_v14, 0.0 }
 0x229   :  { %v3078_v49 = vmax.f32 %v1391_v55, 0.0  ;;  %v1393_v22 = vpop.f32.mrb[147].mxu0  ;;  %v2364_v55 = vpop.f32.mrb[77].mxu1 }
 0x22a   :  { %v3079_v18 = vmax.f32 %v1393_v22, 0.0  ;;  %v4939_v40 = vpop.f32.mrb[78].mxu1  ;;  %v3095_v22 = vmax.f32 %v4938_v16, 0.0  ;;  %v3089_v24 = vmax.f32 %v2364_v55, 0.0 }
 0x22b   :  { %1656 = vmatmul.mubr.bf16.gmra.mrb[252].mxu0 %v5258_v28  ;;  %v3569_v34 = vpack.c.bf16 %v3078_v49, %v3075_v41  ;;  %v2367_v41 = vpop.f32.mrb[79].mxu1 }
 0x22c   :  { %1665 = vmatprep.mubr.bf16.mxu0 %v6059_v0  ;;  %v3570_v59 = vpack.c.bf16 %v3079_v18, %v3076_v25  ;;  %v3098_v25 = vmax.f32 %v4939_v40, 0.0  ;;  %v4942_v44 = vpop.f32.mrb[80].mxu1 }
 0x22d   :  { %v2380_v58 = vpop.f32.mrb[81].mxu1 }
 0x22e   :  { %v1397_v39 = vpop.f32.mrb[148].mxu0  ;;  %3959 = vmatprep.subr.bf16.mxu1 %v3570_v59  ;;  %v3092_v59 = vmax.f32 %v2367_v41, 0.0  ;;  %v5261_v41 = vld [vmem:[#allocation3 + $0x210] sm:$0xff]  }
 0x22f   :  { %v1399_v54 = vpop.f32.mrb[149].mxu0  ;;  %3960 = vmatpush1.bf16.msra.mxu1 %v3569_v34  ;;  %v3081_v47 = vmax.f32 %v1397_v39, 0.0  ;;  %v5740_v39 = vpack.c.bf16 %v3098_v25, %v3095_v22 }
 0x230   :  { %v1401_v61 = vpop.f32.mrb[150].mxu0  ;;  %v3082_v2 = vmax.f32 %v1399_v54, 0.0  ;;  %v5742_v20 = vpack.c.bf16 %v3092_v59, %v3089_v24 }
 0x231   :  { %v3084_v48 = vmax.f32 %v1401_v61, 0.0  ;;  %v1403_v45 = vpop.f32.mrb[151].mxu0  ;;  %6088 = vst [vmem:[#allocation29_spill] sm:$0xff] %v5740_v39  ;;  %v6098_v39 = vmov 0  }
 0x232   :  { %v3085_v19 = vmax.f32 %v1403_v45, 0.0  ;;  %6089 = vst [vmem:[#allocation30_spill] sm:$0xff] %v5742_v20 }
 0x233   :  { %1666 = vmatmul.mubr.bf16.gmra.mrb[0].mxu0 %v5259_v52  ;;  %v3572_v8 = vpack.c.bf16 %v3084_v48, %v3081_v47  ;;  %v4943_v47 = vpop.f32.mrb[82].mxu1 }
 0x234   :  { %1675 = vmatprep.mubr.bf16.mxu0 %v6059_v0  ;;  %v3573_v14 = vpack.c.bf16 %v3085_v19, %v3082_v2  ;;  %v2383_v45 = vpop.f32.mrb[83].mxu1  ;;  %v3107_v2 = vmax.f32 %v4942_v44, 0.0  ;;  %v3101_v19 = vmax.f32 %v2380_v58, 0.0  ;;  %v3110_v52 = vmax.f32 %v4943_v47, 0.0 }
 0x235   :  { %v3104_v55 = vmax.f32 %v2383_v45, 0.0  ;;  %v4946_v25 = vpop.f32.mrb[84].mxu1 }
 0x236   :  { %v1407_v5 = vpop.f32.mrb[152].mxu0  ;;  %3961 = vmatprep.subr.bf16.mxu1 %v3573_v14 }
 0x237   :  { %v1409_v57 = vpop.f32.mrb[153].mxu0  ;;  %3962 = vmatpush1.bf16.msra.mxu1 %v3572_v8  ;;  %v3087_v18 = vmax.f32 %v1407_v5, 0.0  ;;  %v5747_v22 = vpack.c.bf16 %v3104_v55, %v3101_v19 }
 0x238   :  { %v1411_v49 = vpop.f32.mrb[154].mxu0  ;;  %v3088_v38 = vmax.f32 %v1409_v57, 0.0  ;;  %v5745_v57 = vpack.c.bf16 %v3110_v52, %v3107_v2  ;;  %v5262_v2 = vld [vmem:[#allocation3 + $0x218] sm:$0xff]  }
 0x239   :  { %v3090_v28 = vmax.f32 %v1411_v49, 0.0  ;;  %v1413_v34 = vpop.f32.mrb[155].mxu0  ;;  %6091 = vst [vmem:[#allocation32_spill] sm:$0xff] %v5747_v22 }
 0x23a   :  { %v3091_v3 = vmax.f32 %v1413_v34, 0.0  ;;  %6090 = vst [vmem:[#allocation31_spill] sm:$0xff] %v5745_v57 }
 0x23b   :  { %1676 = vmatmul.mubr.bf16.gmra.mrb[4].mxu0 %v5260_v53  ;;  %v3575_v54 = vpack.c.bf16 %v3090_v28, %v3087_v18  ;;  %v2396_v18 = vpop.f32.mrb[85].mxu1  ;;  %v3119_v53 = vmax.f32 %v4946_v25, 0.0 }
 0x23c   :  { %1685 = vmatprep.mubr.bf16.mxu0 %v6059_v0  ;;  %v3576_v61 = vpack.c.bf16 %v3091_v3, %v3088_v38  ;;  %v4947_v34 = vpop.f32.mrb[86].mxu1 }
 0x23d   :  { %v2399_v38 = vpop.f32.mrb[87].mxu1 }
 0x23e   :  { %v1417_v4 = vpop.f32.mrb[156].mxu0  ;;  %3963 = vmatprep.subr.bf16.mxu1 %v3576_v61  ;;  %v3122_v61 = vmax.f32 %v4947_v34, 0.0  ;;  %v3116_v47 = vmax.f32 %v2399_v38, 0.0 }
 0x23f   :  { %v1419_v48 = vpop.f32.mrb[157].mxu0  ;;  %3964 = vmatpush1.bf16.msra.mxu1 %v3575_v54  ;;  %v3093_v8 = vmax.f32 %v1417_v4, 0.0  ;;  %v3113_v54 = vmax.f32 %v2396_v18, 0.0 }
 0x240   :  { %v1421_v26 = vpop.f32.mrb[158].mxu0  ;;  %v3094_v5 = vmax.f32 %v1419_v48, 0.0 }
 0x241   :  { %v3096_v14 = vmax.f32 %v1421_v26, 0.0  ;;  %v1423_v16 = vpop.f32.mrb[159].mxu0  ;;  %v5750_v26 = vpack.c.bf16 %v3122_v61, %v3119_v53  ;;  %v5752_v52 = vpack.c.bf16 %v3116_v47, %v3113_v54  ;;  %v5263_v61 = vld [vmem:[#allocation3 + $0x220] sm:$0xff]  }
 0x242   :  { %v3097_v40 = vmax.f32 %v1423_v16, 0.0 }
 0x243   :  { %1686 = vmatmul.mubr.bf16.gmra.mrb[8].mxu0 %v5261_v41  ;;  %v3578_v49 = vpack.c.bf16 %v3096_v14, %v3093_v8  ;;  %6092 = vst [vmem:[#allocation33_spill] sm:$0xff] %v5750_v26  ;;  %6093 = vst [vmem:[#allocation34_spill] sm:$0xff] %v5752_v52  ;;  %v4950_v14 = vpop.f32.mrb[88].mxu1 }
 0x244   :  { %1695 = vmatprep.mubr.bf16.mxu0 %v6059_v0  ;;  %v3579_v24 = vpack.c.bf16 %v3097_v40, %v3094_v5  ;;  %v2412_v16 = vpop.f32.mrb[89].mxu1 }
 0x245   :  { %v4951_v5 = vpop.f32.mrb[90].mxu1  ;;  %v3125_v25 = vmax.f32 %v2412_v16, 0.0 }
 0x246   :  { %v1427_v28 = vpop.f32.mrb[160].mxu0  ;;  %3965 = vmatprep.subr.bf16.mxu1 %v3579_v24  ;;  %v2415_v41 = vpop.f32.mrb[91].mxu1  ;;  %v3131_v24 = vmax.f32 %v4950_v14, 0.0  ;;  %v3134_v18 = vmax.f32 %v4951_v5, 0.0 }
 0x247   :  { %v1429_v59 = vpop.f32.mrb[161].mxu0  ;;  %3966 = vmatpush1.bf16.msra.mxu1 %v3578_v49  ;;  %v3099_v44 = vmax.f32 %v1427_v28, 0.0  ;;  %v3128_v38 = vmax.f32 %v2415_v41, 0.0  ;;  %v4954_v47 = vpop.f32.mrb[92].mxu1 }
 0x248   :  { %v1431_v3 = vpop.f32.mrb[162].mxu0  ;;  %v3100_v48 = vmax.f32 %v1429_v59, 0.0  ;;  %v5755_v54 = vpack.c.bf16 %v3134_v18, %v3131_v24  ;;  %v3143_v16 = vmax.f32 %v4954_v47, 0.0 }
 0x249   :  { %v3102_v58 = vmax.f32 %v1431_v3, 0.0  ;;  %v1433_v4 = vpop.f32.mrb[163].mxu0 }
 0x24a   :  { %v3103_v45 = vmax.f32 %v1433_v4, 0.0  ;;  %6094 = vst [vmem:[#allocation35_spill] sm:$0xff] %v5755_v54 }
 0x24b   :  { %1696 = vmatmul.mubr.bf16.gmra.mrb[12].mxu0 %v5262_v2  ;;  %v3581_v19 = vpack.c.bf16 %v3102_v58, %v3099_v44  ;;  %v5757_v58 = vpack.c.bf16 %v3128_v38, %v3125_v25 }
 0x24c   :  { %1705 = vmatprep.mubr.bf16.mxu0 %v6059_v0  ;;  %v3582_v8 = vpack.c.bf16 %v3103_v45, %v3100_v48  ;;  %v2428_v48 = vpop.f32.mrb[93].mxu1 }
 0x24d   :  { %6095 = vst [vmem:[#allocation36_spill] sm:$0xff] %v5757_v58  ;;  %v4955_v2 = vpop.f32.mrb[94].mxu1  ;;  %v5271_v58 = vld [vmem:[#allocation3 + $0x260] sm:$0xff]  }
 0x24e   :  { %v1437_v55 = vpop.f32.mrb[164].mxu0  ;;  %3967 = vmatprep.subr.bf16.mxu1 %v3582_v8  ;;  %v2431_v8 = vpop.f32.mrb[95].mxu1  ;;  %v3146_v5 = vmax.f32 %v4955_v2, 0.0 }
 0x24f   :  { %v1439_v40 = vpop.f32.mrb[165].mxu0  ;;  %3968 = vmatpush1.bf16.msra.mxu1 %v3581_v19  ;;  %v3105_v28 = vmax.f32 %v1437_v55, 0.0  ;;  %v3137_v55 = vmax.f32 %v2428_v48, 0.0  ;;  %v3140_v24 = vmax.f32 %v2431_v8, 0.0 }
 0x250   :  { %v1441_v49 = vpop.f32.mrb[166].mxu0  ;;  %v3106_v3 = vmax.f32 %v1439_v40, 0.0 }
 0x251   :  { %v3108_v34 = vmax.f32 %v1441_v49, 0.0  ;;  %v1443_v59 = vpop.f32.mrb[167].mxu0  ;;  %v5762_v38 = vpack.c.bf16 %v3140_v24, %v3137_v55  ;;  %v5265_v24 = vld [vmem:[#allocation3 + $0x230] sm:$0xff]  }
 0x252   :  { %v3109_v53 = vmax.f32 %v1443_v59, 0.0 }
 0x253   :  { %1706 = vmatmul.mubr.bf16.gmra.mrb[16].mxu0 %v5263_v61  ;;  %v3584_v44 = vpack.c.bf16 %v3108_v34, %v3105_v28  ;;  %v5760_v28 = vpack.c.bf16 %v3146_v5, %v3143_v16  ;;  %v5264_v34 = vld [vmem:[#allocation3 + $0x228] sm:$0xff]   ;;  %6097 = vst [vmem:[#allocation38_spill] sm:$0xff] %v5762_v38 }
 0x254   :  { %1715 = vmatprep.mubr.bf16.mxu0 %v6059_v0  ;;  %v3585_v4 = vpack.c.bf16 %v3109_v53, %v3106_v3  ;;  %v4958_v53 = vpop.f32.mrb[96].mxu1 }
 0x255   :  { %6096 = vst [vmem:[#allocation37_spill] sm:$0xff] %v5760_v28  ;;  %v2444_v61 = vpop.f32.mrb[97].mxu1  ;;  %v3155_v2 = vmax.f32 %v4958_v53, 0.0 }
 0x256   :  { %v1447_v45 = vpop.f32.mrb[168].mxu0  ;;  %3969 = vmatprep.subr.bf16.mxu1 %v3585_v4  ;;  %v4959_v4 = vpop.f32.mrb[98].mxu1 }
 0x257   :  { %v1449_v19 = vpop.f32.mrb[169].mxu0  ;;  %3970 = vmatpush1.bf16.msra.mxu1 %v3584_v44  ;;  %v3111_v40 = vmax.f32 %v1447_v45, 0.0  ;;  %v2447_v48 = vpop.f32.mrb[99].mxu1  ;;  %v3158_v8 = vmax.f32 %v4959_v4, 0.0 }
 0x258   :  { %v1451_v14 = vpop.f32.mrb[170].mxu0  ;;  %v3112_v25 = vmax.f32 %v1449_v19, 0.0  ;;  %v3149_v19 = vmax.f32 %v2444_v61, 0.0  ;;  %v3152_v55 = vmax.f32 %v2447_v48, 0.0 }
 0x259   :  { %v3114_v41 = vmax.f32 %v1451_v14, 0.0  ;;  %v1453_v49 = vpop.f32.mrb[171].mxu0 }
 0x25a   :  { %v3115_v18 = vmax.f32 %v1453_v49, 0.0  ;;  %v5765_v49 = vpack.c.bf16 %v3158_v8, %v3155_v2 }
 0x25b   :  { %1716 = vmatmul.mubr.bf16.gmra.mrb[20].mxu0 %v5264_v34  ;;  %v3587_v59 = vpack.c.bf16 %v3114_v41, %v3111_v40 }
 0x25c   :  { %1725 = vmatprep.mubr.bf16.mxu0 %v6059_v0  ;;  %v3588_v3 = vpack.c.bf16 %v3115_v18, %v3112_v25  ;;  %v5767_v18 = vpack.c.bf16 %v3152_v55, %v3149_v19 }
 0x25e   :  { %v1457_v44 = vpop.f32.mrb[172].mxu0  ;;  %3971 = vmatprep.subr.bf16.mxu1 %v3588_v3 }
 0x25f   :  { %v1459_v47 = vpop.f32.mrb[173].mxu0  ;;  %3972 = vmatpush1.bf16.msra.mxu1 %v3587_v59  ;;  %v3117_v14 = vmax.f32 %v1457_v44, 0.0  ;;  %v4962_v59 = vpop.f32.mrb[100].mxu1 }
 0x260   :  { %v1461_v45 = vpop.f32.mrb[174].mxu0  ;;  %v3118_v40 = vmax.f32 %v1459_v47, 0.0  ;;  %v2460_v3 = vpop.f32.mrb[101].mxu1  ;;  %v3167_v48 = vmax.f32 %v4962_v59, 0.0 }
 0x261   :  { %v3120_v16 = vmax.f32 %v1461_v45, 0.0  ;;  %v1463_v5 = vpop.f32.mrb[175].mxu0  ;;  %v4963_v61 = vpop.f32.mrb[102].mxu1  ;;  %v3161_v45 = vmax.f32 %v2460_v3, 0.0 }
 0x262   :  { %v3121_v41 = vmax.f32 %v1463_v5, 0.0  ;;  %v2463_v4 = vpop.f32.mrb[103].mxu1  ;;  %v3170_v2 = vmax.f32 %v4963_v61, 0.0 }
 0x263   :  { %1726 = vmatmul.mubr.bf16.gmra.mrb[24].mxu0 %v5265_v24  ;;  %v3590_v25 = vpack.c.bf16 %v3120_v16, %v3117_v14  ;;  %v3164_v19 = vmax.f32 %v2463_v4, 0.0  ;;  %v4966_v46 = vpop.f32.mrb[104].mxu1 }
 0x264   :  { %1735 = vmatprep.mubr.bf16.mxu0 %v6059_v0  ;;  %v3591_v34 = vpack.c.bf16 %v3121_v41, %v3118_v40  ;;  %v5770_v24 = vpack.c.bf16 %v3170_v2, %v3167_v48  ;;  %v5266_v40 = vld [vmem:[#allocation3 + $0x238] sm:$0xff]   ;;  %v2476_v59 = vpop.f32.mrb[105].mxu1 }
 0x265   :  { %v3173_v48 = vmax.f32 %v2476_v59, 0.0 }
 0x266   :  { %v1467_v53 = vpop.f32.mrb[176].mxu0  ;;  %3973 = vmatprep.subr.bf16.mxu1 %v3591_v34  ;;  %v5772_v34 = vpack.c.bf16 %v3164_v19, %v3161_v45 }
 0x267   :  { %v1469_v44 = vpop.f32.mrb[177].mxu0  ;;  %3974 = vmatpush1.bf16.msra.mxu1 %v3590_v25  ;;  %v3123_v8 = vmax.f32 %v1467_v53, 0.0  ;;  %v4967_v53 = vpop.f32.mrb[106].mxu1 }
 0x268   :  { %v1471_v47 = vpop.f32.mrb[178].mxu0  ;;  %v3124_v16 = vmax.f32 %v1469_v44, 0.0  ;;  %v2479_v4 = vpop.f32.mrb[107].mxu1  ;;  %v3182_v2 = vmax.f32 %v4967_v53, 0.0 }
 0x269   :  { %v3126_v5 = vmax.f32 %v1471_v47, 0.0  ;;  %v1473_v14 = vpop.f32.mrb[179].mxu0  ;;  %v3179_v47 = vmax.f32 %v4966_v46, 0.0  ;;  %v3176_v45 = vmax.f32 %v2479_v4, 0.0  ;;  %v4970_v28 = vpop.f32.mrb[108].mxu1 }
 0x26a   :  { %v3127_v55 = vmax.f32 %v1473_v14, 0.0  ;;  %v2492_v46 = vpop.f32.mrb[109].mxu1 }
 0x26b   :  { %1736 = vmatmul.mubr.bf16.gmra.mrb[28].mxu0 %v5266_v40  ;;  %v3593_v41 = vpack.c.bf16 %v3126_v5, %v3123_v8 }
 0x26c   :  { %1745 = vmatprep.mubr.bf16.mxu0 %v6059_v0  ;;  %v3594_v25 = vpack.c.bf16 %v3127_v55, %v3124_v16  ;;  %v5775_v0 = vpack.c.bf16 %v3182_v2, %v3179_v47  ;;  %v5267_v16 = vld [vmem:[#allocation3 + $0x240] sm:$0xff]   ;;  %v3185_v47 = vmax.f32 %v2492_v46, 0.0 }
 0x26e   :  { %v1477_v3 = vpop.f32.mrb[180].mxu0  ;;  %3975 = vmatprep.subr.bf16.mxu1 %v3594_v25  ;;  %v5777_v25 = vpack.c.bf16 %v3176_v45, %v3173_v48 }
 0x26f   :  { %v1479_v61 = vpop.f32.mrb[181].mxu0  ;;  %3976 = vmatpush1.bf16.msra.mxu1 %v3593_v41  ;;  %v3129_v14 = vmax.f32 %v1477_v3, 0.0  ;;  %v4971_v3 = vpop.f32.mrb[110].mxu1 }
 0x270   :  { %v1481_v44 = vpop.f32.mrb[182].mxu0  ;;  %v3130_v5 = vmax.f32 %v1479_v61, 0.0  ;;  %v2495_v4 = vpop.f32.mrb[111].mxu1  ;;  %v3194_v2 = vmax.f32 %v4971_v3, 0.0 }
 0x271   :  { %v3132_v40 = vmax.f32 %v1481_v44, 0.0  ;;  %v1483_v8 = vpop.f32.mrb[183].mxu0  ;;  %v3191_v44 = vmax.f32 %v4970_v28, 0.0  ;;  %v3188_v48 = vmax.f32 %v2495_v4, 0.0  ;;  %v4974_v38 = vpop.f32.mrb[112].mxu1 }
 0x272   :  { %v3133_v19 = vmax.f32 %v1483_v8, 0.0  ;;  %v2508_v28 = vpop.f32.mrb[113].mxu1 }
 0x273   :  { %1746 = vmatmul.mubr.bf16.gmra.mrb[32].mxu0 %v5267_v16  ;;  %v3596_v55 = vpack.c.bf16 %v3132_v40, %v3129_v14  ;;  %v5780_v20 = vpack.c.bf16 %v3194_v2, %v3191_v44  ;;  %v3197_v44 = vmax.f32 %v2508_v28, 0.0 }
 0x274   :  { %1755 = vmatprep.mubr.bf16.mxu0 %v6098_v39  ;;  %v3597_v41 = vpack.c.bf16 %v3133_v19, %v3130_v5  ;;  %v5268_v5 = vld [vmem:[#allocation3 + $0x248] sm:$0xff]  }
 0x276   :  { %v1487_v59 = vpop.f32.mrb[184].mxu0  ;;  %3977 = vmatprep.subr.bf16.mxu1 %v3597_v41  ;;  %v5782_v41 = vpack.c.bf16 %v3188_v48, %v3185_v47 }
 0x277   :  { %v1489_v53 = vpop.f32.mrb[185].mxu0  ;;  %3978 = vmatpush1.bf16.msra.mxu1 %v3596_v55  ;;  %v3135_v8 = vmax.f32 %v1487_v59, 0.0  ;;  %v4975_v59 = vpop.f32.mrb[114].mxu1 }
 0x278   :  { %v1491_v61 = vpop.f32.mrb[186].mxu0  ;;  %v3136_v40 = vmax.f32 %v1489_v53, 0.0  ;;  %v2511_v4 = vpop.f32.mrb[115].mxu1  ;;  %v3206_v2 = vmax.f32 %v4975_v59, 0.0 }
 0x279   :  { %v3138_v16 = vmax.f32 %v1491_v61, 0.0  ;;  %v1493_v14 = vpop.f32.mrb[187].mxu0  ;;  %v3203_v61 = vmax.f32 %v4974_v38, 0.0  ;;  %v3200_v47 = vmax.f32 %v2511_v4, 0.0  ;;  %v4978_v54 = vpop.f32.mrb[116].mxu1 }
 0x27a   :  { %v3139_v45 = vmax.f32 %v1493_v14, 0.0  ;;  %v2524_v38 = vpop.f32.mrb[117].mxu1 }
 0x27b   :  { %1756 = vmatmul.mubr.bf16.gmra.mrb[36].mxu0 %v5268_v5  ;;  %v3599_v19 = vpack.c.bf16 %v3138_v16, %v3135_v8  ;;  %v5785_v50 = vpack.c.bf16 %v3206_v2, %v3203_v61  ;;  %v4979_v59 = vpop.f32.mrb[118].mxu1  ;;  %v3215_v61 = vmax.f32 %v4978_v54, 0.0  ;;  %v3209_v2 = vmax.f32 %v2524_v38, 0.0 }
 0x27c   :  { %1765 = vmatprep.mubr.bf16.mxu0 %v6098_v39  ;;  %v3600_v55 = vpack.c.bf16 %v3139_v45, %v3136_v40  ;;  %v5269_v40 = vld [vmem:[#allocation3 + $0x250] sm:$0xff]   ;;  %v2527_v4 = vpop.f32.mrb[119].mxu1  ;;  %v5800_v38 = vcombine.high %v5720_v60, %v5720_v60 }
 0x27e   :  { %v1497_v46 = vpop.f32.mrb[188].mxu0  ;;  %3979 = vmatprep.subr.bf16.mxu1 %v3600_v55  ;;  %v3631_v55 = vpack.c.bf16 %v3200_v47, %v3197_v44  ;;  %v3218_v44 = vmax.f32 %v4979_v59, 0.0  ;;  %v3212_v47 = vmax.f32 %v2527_v4, 0.0 }
 0x27f   :  { %v1499_v3 = vpop.f32.mrb[189].mxu0  ;;  %3980 = vmatpush1.bf16.msra.mxu1 %v3599_v19  ;;  %v3141_v14 = vmax.f32 %v1497_v46, 0.0  ;;  %v5790_v46 = vrot.slane %v5713_v63, %v5653_v17  ;;  %v5270_v63 = vld [vmem:[#allocation3 + $0x258] sm:$0xff]  }
 0x280   :  { %v1501_v53 = vpop.f32.mrb[190].mxu0  ;;  %v3142_v16 = vmax.f32 %v1499_v3, 0.0  ;;  %4773 = vmatprep.subr.bf16.mxu0 %v3631_v55 }
 0x281   :  { %v3144_v5 = vmax.f32 %v1501_v53, 0.0  ;;  %v1503_v8 = vpop.f32.mrb[191].mxu0  ;;  %6099 = vst [vmem:[#allocation39_spill] sm:$0xff] %v5790_v46 }
 0x282   :  { %v3145_v48 = vmax.f32 %v1503_v8, 0.0 }
 0x283   :  { %1766 = vmatmul.mubr.bf16.gmra.mrb[40].mxu0 %v5269_v40  ;;  %v3602_v45 = vpack.c.bf16 %v3144_v5, %v3141_v14  ;;  %v5793_v40 = vpack.c.bf16 %v3218_v44, %v3215_v61 }
 0x284   :  { %1775 = vmatprep.mubr.bf16.mxu0 %v6098_v39  ;;  %v3603_v19 = vpack.c.bf16 %v3145_v48, %v3142_v16 }
 0x286   :  { %v1507_v28 = vpop.f32.mrb[192].mxu0  ;;  %3981 = vmatprep.subr.bf16.mxu1 %v3603_v19  ;;  %v5795_v19 = vpack.c.bf16 %v3212_v47, %v3209_v2 }
 0x287   :  { %v1509_v3 = vpop.f32.mrb[193].mxu0  ;;  %3982 = vmatpush1.bf16.msra.mxu1 %v3602_v45  ;;  %v3147_v14 = vmax.f32 %v1507_v28, 0.0  ;;  %v4982_v45 = vpop.f32.mrb[120].mxu1 }
 0x288   :  { %v1511_v53 = vpop.f32.mrb[194].mxu0  ;;  %v3148_v16 = vmax.f32 %v1509_v3, 0.0  ;;  %v2540_v28 = vpop.f32.mrb[121].mxu1  ;;  %v3227_v2 = vmax.f32 %v4982_v45, 0.0 }
 0x289   :  { %v3150_v5 = vmax.f32 %v1511_v53, 0.0  ;;  %v1513_v8 = vpop.f32.mrb[195].mxu0  ;;  %v4983_v3 = vpop.f32.mrb[122].mxu1  ;;  %v3221_v44 = vmax.f32 %v2540_v28, 0.0 }
 0x28a   :  { %v3151_v48 = vmax.f32 %v1513_v8, 0.0  ;;  %3984 = vmatmul.mubr.bf16.vlgmr.msra.gmra.mrb[200].mxu1 %v5790_v46  ;;  %v2543_v53 = vpop.f32.mrb[123].mxu1 }
 0x28b   :  { %1776 = vmatmul.mubr.bf16.gmra.mrb[44].mxu0 %v5270_v63  ;;  %v3605_v55 = vpack.c.bf16 %v3150_v5, %v3147_v14  ;;  %4024 = vmatprep.mubr.bf16.mxu1 %v5800_v38  ;;  %v3230_v14 = vmax.f32 %v4983_v3, 0.0  ;;  %v4986_v26 = vpop.f32.mrb[124].mxu1 }
 0x28c   :  { %1785 = vmatprep.mubr.bf16.mxu0 %v6098_v39  ;;  %v3606_v54 = vpack.c.bf16 %v3151_v48, %v3148_v16  ;;  %v3224_v16 = vmax.f32 %v2543_v53, 0.0  ;;  %v2556_v45 = vpop.f32.mrb[125].mxu1 }
 0x28d   :  { %v5803_v62 = vpack.c.bf16 %v3230_v14, %v3227_v2  ;;  %v3233_v2 = vmax.f32 %v2556_v45, 0.0 }
 0x28e   :  { %v1517_v59 = vpop.f32.mrb[196].mxu0  ;;  %3992 = vmatprep.subr.bf16.mxu1 %v3606_v54  ;;  %v5805_v27 = vpack.c.bf16 %v3224_v16, %v3221_v44 }
 0x28f   :  { %v1519_v4 = vpop.f32.mrb[197].mxu0  ;;  %3993 = vmatpush1.bf16.msra.mxu1 %v3605_v55  ;;  %v3153_v5 = vmax.f32 %v1517_v59, 0.0  ;;  %v4987_v59 = vpop.f32.mrb[126].mxu1 }
 0x290   :  { %v1521_v61 = vpop.f32.mrb[198].mxu0  ;;  %v3154_v48 = vmax.f32 %v1519_v4, 0.0  ;;  %v2559_v53 = vpop.f32.mrb[127].mxu1  ;;  %v3242_v14 = vmax.f32 %v4987_v59, 0.0 }
 0x291   :  { %v3156_v8 = vmax.f32 %v1521_v61, 0.0  ;;  %v1523_v47 = vpop.f32.mrb[199].mxu0  ;;  %v3239_v61 = vmax.f32 %v4986_v26, 0.0  ;;  %v3236_v44 = vmax.f32 %v2559_v53, 0.0  ;;  %v4990_v52 = vpop.f32.mrb[128].mxu1 }
 0x292   :  { %v3157_v63 = vmax.f32 %v1523_v47, 0.0  ;;  %v2572_v26 = vpop.f32.mrb[129].mxu1 }
 0x293   :  { %1786 = vmatmul.mubr.bf16.gmra.mrb[48].mxu0 %v5271_v58  ;;  %v3608_v54 = vpack.c.bf16 %v3156_v8, %v3153_v5  ;;  %v5808_v23 = vpack.c.bf16 %v3242_v14, %v3239_v61  ;;  %v3245_v61 = vmax.f32 %v2572_v26, 0.0 }
 0x294   :  { %1795 = vmatprep.mubr.bf16.mxu0 %v6098_v39  ;;  %v3609_v55 = vpack.c.bf16 %v3157_v63, %v3154_v48  ;;  %v5272_v48 = vld [vmem:[#allocation3 + $0x268] sm:$0xff]  }
 0x296   :  { %v1527_v28 = vpop.f32.mrb[200].mxu0  ;;  %3994 = vmatprep.subr.bf16.mxu1 %v3609_v55  ;;  %v5810_v55 = vpack.c.bf16 %v3236_v44, %v3233_v2 }
 0x297   :  { %v1529_v3 = vpop.f32.mrb[201].mxu0  ;;  %3995 = vmatpush1.bf16.msra.mxu1 %v3608_v54  ;;  %v3159_v47 = vmax.f32 %v1527_v28, 0.0  ;;  %v4991_v28 = vpop.f32.mrb[130].mxu1 }
 0x298   :  { %v1531_v4 = vpop.f32.mrb[202].mxu0  ;;  %v3160_v8 = vmax.f32 %v1529_v3, 0.0  ;;  %v2575_v53 = vpop.f32.mrb[131].mxu1  ;;  %v3254_v14 = vmax.f32 %v4991_v28, 0.0 }
 0x299   :  { %v3162_v58 = vmax.f32 %v1531_v4, 0.0  ;;  %v1533_v5 = vpop.f32.mrb[203].mxu0  ;;  %v3251_v4 = vmax.f32 %v4990_v52, 0.0  ;;  %v3248_v2 = vmax.f32 %v2575_v53, 0.0  ;;  %v4994_v57 = vpop.f32.mrb[132].mxu1 }
 0x29a   :  { %v3163_v16 = vmax.f32 %v1533_v5, 0.0  ;;  %v2588_v52 = vpop.f32.mrb[133].mxu1 }
 0x29b   :  { %1796 = vmatmul.mubr.bf16.gmra.mrb[52].mxu0 %v5272_v48  ;;  %v3611_v63 = vpack.c.bf16 %v3162_v58, %v3159_v47  ;;  %v5813_v21 = vpack.c.bf16 %v3254_v14, %v3251_v4  ;;  %v3257_v4 = vmax.f32 %v2588_v52, 0.0 }
 0x29c   :  { %1805 = vmatprep.mubr.bf16.mxu0 %v6098_v39  ;;  %v3612_v54 = vpack.c.bf16 %v3163_v16, %v3160_v8  ;;  %v5273_v8 = vld [vmem:[#allocation3 + $0x270] sm:$0xff]  }
 0x29d   :  { %6100 = vst [vmem:[#allocation40_spill] sm:$0xff] %v5813_v21 }
 0x29e   :  { %v1537_v45 = vpop.f32.mrb[204].mxu0  ;;  %3996 = vmatprep.subr.bf16.mxu1 %v3612_v54  ;;  %v5815_v54 = vpack.c.bf16 %v3248_v2, %v3245_v61 }
 0x29f   :  { %v1539_v59 = vpop.f32.mrb[205].mxu0  ;;  %3997 = vmatpush1.bf16.msra.mxu1 %v3611_v63  ;;  %v3165_v5 = vmax.f32 %v1537_v45, 0.0  ;;  %v4995_v45 = vpop.f32.mrb[134].mxu1 }
 0x2a0   :  { %v1541_v3 = vpop.f32.mrb[206].mxu0  ;;  %v3166_v58 = vmax.f32 %v1539_v59, 0.0  ;;  %6101 = vst [vmem:[#allocation41_spill] sm:$0xff] %v5815_v54  ;;  %v2591_v53 = vpop.f32.mrb[135].mxu1  ;;  %v3266_v14 = vmax.f32 %v4995_v45, 0.0 }
 0x2a1   :  { %v3168_v48 = vmax.f32 %v1541_v3, 0.0  ;;  %v1543_v47 = vpop.f32.mrb[207].mxu0  ;;  %v3263_v3 = vmax.f32 %v4994_v57, 0.0  ;;  %v3260_v61 = vmax.f32 %v2591_v53, 0.0  ;;  %v4998_v54 = vpop.f32.mrb[136].mxu1 }
 0x2a2   :  { %v3169_v44 = vmax.f32 %v1543_v47, 0.0  ;;  %v2604_v57 = vpop.f32.mrb[137].mxu1 }
 0x2a3   :  { %1806 = vmatmul.mubr.bf16.gmra.mrb[56].mxu0 %v5273_v8  ;;  %v3614_v16 = vpack.c.bf16 %v3168_v48, %v3165_v5  ;;  %v5818_v21 = vpack.c.bf16 %v3266_v14, %v3263_v3  ;;  %v3269_v3 = vmax.f32 %v2604_v57, 0.0 }
 0x2a4   :  { %1815 = vmatprep.mubr.bf16.mxu0 %v6098_v39  ;;  %v3615_v63 = vpack.c.bf16 %v3169_v44, %v3166_v58  ;;  %v5274_v58 = vld [vmem:[#allocation3 + $0x278] sm:$0xff]  }
 0x2a5   :  { %6102 = vst [vmem:[#allocation42_spill] sm:$0xff] %v5818_v21 }
 0x2a6   :  { %v1547_v26 = vpop.f32.mrb[208].mxu0  ;;  %3998 = vmatprep.subr.bf16.mxu1 %v3615_v63  ;;  %v5820_v63 = vpack.c.bf16 %v3260_v61, %v3257_v4 }
 0x2a7   :  { %v1549_v28 = vpop.f32.mrb[209].mxu0  ;;  %3999 = vmatpush1.bf16.msra.mxu1 %v3614_v16  ;;  %v3171_v47 = vmax.f32 %v1547_v26, 0.0  ;;  %v4999_v26 = vpop.f32.mrb[138].mxu1 }
 0x2a8   :  { %v1551_v59 = vpop.f32.mrb[210].mxu0  ;;  %v3172_v48 = vmax.f32 %v1549_v28, 0.0  ;;  %6103 = vst [vmem:[#allocation43_spill] sm:$0xff] %v5820_v63  ;;  %v2607_v53 = vpop.f32.mrb[139].mxu1  ;;  %v3278_v14 = vmax.f32 %v4999_v26, 0.0 }
 0x2a9   :  { %v3174_v8 = vmax.f32 %v1551_v59, 0.0  ;;  %v1553_v5 = vpop.f32.mrb[211].mxu0  ;;  %v3275_v59 = vmax.f32 %v4998_v54, 0.0  ;;  %v3272_v4 = vmax.f32 %v2607_v53, 0.0  ;;  %v5002_v63 = vpop.f32.mrb[140].mxu1 }
 0x2aa   :  { %v3175_v2 = vmax.f32 %v1553_v5, 0.0  ;;  %v2620_v54 = vpop.f32.mrb[141].mxu1 }
 0x2ab   :  { %1816 = vmatmul.mubr.bf16.gmra.mrb[60].mxu0 %v5274_v58  ;;  %v3617_v44 = vpack.c.bf16 %v3174_v8, %v3171_v47  ;;  %v5823_v21 = vpack.c.bf16 %v3278_v14, %v3275_v59  ;;  %v3281_v59 = vmax.f32 %v2620_v54, 0.0 }
 0x2ac   :  { %1825 = vmatprep.mubr.bf16.mxu0 %v6098_v39  ;;  %v3618_v16 = vpack.c.bf16 %v3175_v2, %v3172_v48  ;;  %v5275_v48 = vld [vmem:[#allocation3 + $0x280] sm:$0xff]  }
 0x2ad   :  { %6104 = vst [vmem:[#allocation44_spill] sm:$0xff] %v5823_v21 }
 0x2ae   :  { %v1557_v52 = vpop.f32.mrb[212].mxu0  ;;  %4000 = vmatprep.subr.bf16.mxu1 %v3618_v16  ;;  %v5825_v16 = vpack.c.bf16 %v3272_v4, %v3269_v3 }
 0x2af   :  { %v1559_v45 = vpop.f32.mrb[213].mxu0  ;;  %4001 = vmatpush1.bf16.msra.mxu1 %v3617_v44  ;;  %v3177_v5 = vmax.f32 %v1557_v52, 0.0  ;;  %v5003_v52 = vpop.f32.mrb[142].mxu1 }
 0x2b0   :  { %v1561_v28 = vpop.f32.mrb[214].mxu0  ;;  %v3178_v8 = vmax.f32 %v1559_v45, 0.0  ;;  %6105 = vst [vmem:[#allocation45_spill] sm:$0xff] %v5825_v16  ;;  %v2623_v53 = vpop.f32.mrb[143].mxu1  ;;  %v3290_v14 = vmax.f32 %v5003_v52, 0.0 }
 0x2b1   :  { %v3180_v58 = vmax.f32 %v1561_v28, 0.0  ;;  %v1563_v47 = vpop.f32.mrb[215].mxu0  ;;  %v3287_v28 = vmax.f32 %v5002_v63, 0.0  ;;  %v3284_v3 = vmax.f32 %v2623_v53, 0.0  ;;  %v5006_v16 = vpop.f32.mrb[144].mxu1 }
 0x2b2   :  { %v3181_v61 = vmax.f32 %v1563_v47, 0.0  ;;  %v2636_v63 = vpop.f32.mrb[145].mxu1 }
 0x2b3   :  { %1826 = vmatmul.mubr.bf16.gmra.mrb[64].mxu0 %v5275_v48  ;;  %v3620_v2 = vpack.c.bf16 %v3180_v58, %v3177_v5  ;;  %v5828_v21 = vpack.c.bf16 %v3290_v14, %v3287_v28  ;;  %v3293_v28 = vmax.f32 %v2636_v63, 0.0 }
 0x2b4   :  { %1835 = vmatprep.mubr.bf16.mxu0 %v6098_v39  ;;  %v3621_v44 = vpack.c.bf16 %v3181_v61, %v3178_v8  ;;  %v5276_v8 = vld [vmem:[#allocation3 + $0x288] sm:$0xff]  }
 0x2b5   :  { %6106 = vst [vmem:[#allocation46_spill] sm:$0xff] %v5828_v21 }
 0x2b6   :  { %v1567_v57 = vpop.f32.mrb[216].mxu0  ;;  %4002 = vmatprep.subr.bf16.mxu1 %v3621_v44  ;;  %v5830_v44 = vpack.c.bf16 %v3284_v3, %v3281_v59 }
 0x2b7   :  { %v1569_v26 = vpop.f32.mrb[217].mxu0  ;;  %4003 = vmatpush1.bf16.msra.mxu1 %v3620_v2  ;;  %v3183_v47 = vmax.f32 %v1567_v57, 0.0  ;;  %v5007_v57 = vpop.f32.mrb[146].mxu1 }
 0x2b8   :  { %v1571_v45 = vpop.f32.mrb[218].mxu0  ;;  %v3184_v58 = vmax.f32 %v1569_v26, 0.0  ;;  %6107 = vst [vmem:[#allocation47_spill] sm:$0xff] %v5830_v44  ;;  %v2639_v53 = vpop.f32.mrb[147].mxu1  ;;  %v3302_v14 = vmax.f32 %v5007_v57, 0.0 }
 0x2b9   :  { %v3186_v48 = vmax.f32 %v1571_v45, 0.0  ;;  %v1573_v5 = vpop.f32.mrb[219].mxu0  ;;  %v3299_v45 = vmax.f32 %v5006_v16, 0.0  ;;  %v3296_v59 = vmax.f32 %v2639_v53, 0.0  ;;  %v5010_v44 = vpop.f32.mrb[148].mxu1 }
 0x2ba   :  { %v3187_v4 = vmax.f32 %v1573_v5, 0.0  ;;  %v2652_v16 = vpop.f32.mrb[149].mxu1 }
 0x2bb   :  { %1836 = vmatmul.mubr.bf16.gmra.mrb[68].mxu0 %v5276_v8  ;;  %v3623_v61 = vpack.c.bf16 %v3186_v48, %v3183_v47  ;;  %v5833_v21 = vpack.c.bf16 %v3302_v14, %v3299_v45  ;;  %v3305_v45 = vmax.f32 %v2652_v16, 0.0 }
 0x2bc   :  { %1845 = vmatprep.mubr.bf16.mxu0 %v6098_v39  ;;  %v3624_v2 = vpack.c.bf16 %v3187_v4, %v3184_v58  ;;  %v5277_v58 = vld [vmem:[#allocation3 + $0x290] sm:$0xff]  }
 0x2bd   :  { %6108 = vst [vmem:[#allocation48_spill] sm:$0xff] %v5833_v21 }
 0x2be   :  { %v1577_v54 = vpop.f32.mrb[220].mxu0  ;;  %4004 = vmatprep.subr.bf16.mxu1 %v3624_v2  ;;  %v5835_v2 = vpack.c.bf16 %v3296_v59, %v3293_v28 }
 0x2bf   :  { %v1579_v52 = vpop.f32.mrb[221].mxu0  ;;  %4005 = vmatpush1.bf16.msra.mxu1 %v3623_v61  ;;  %v3189_v5 = vmax.f32 %v1577_v54, 0.0  ;;  %v5011_v54 = vpop.f32.mrb[150].mxu1 }
 0x2c0   :  { %v1581_v26 = vpop.f32.mrb[222].mxu0  ;;  %v3190_v48 = vmax.f32 %v1579_v52, 0.0  ;;  %6109 = vst [vmem:[#allocation49_spill] sm:$0xff] %v5835_v2  ;;  %v2655_v53 = vpop.f32.mrb[151].mxu1  ;;  %v3314_v14 = vmax.f32 %v5011_v54, 0.0 }
 0x2c1   :  { %v3192_v8 = vmax.f32 %v1581_v26, 0.0  ;;  %v1583_v47 = vpop.f32.mrb[223].mxu0  ;;  %v3311_v26 = vmax.f32 %v5010_v44, 0.0  ;;  %v3308_v28 = vmax.f32 %v2655_v53, 0.0  ;;  %v5014_v2 = vpop.f32.mrb[152].mxu1 }
 0x2c2   :  { %v3193_v3 = vmax.f32 %v1583_v47, 0.0  ;;  %v2668_v44 = vpop.f32.mrb[153].mxu1 }
 0x2c3   :  { %1846 = vmatmul.mubr.bf16.gmra.mrb[72].mxu0 %v5277_v58  ;;  %v3626_v4 = vpack.c.bf16 %v3192_v8, %v3189_v5  ;;  %v5838_v21 = vpack.c.bf16 %v3314_v14, %v3311_v26  ;;  %v3317_v26 = vmax.f32 %v2668_v44, 0.0 }
 0x2c4   :  { %1855 = vmatprep.mubr.bf16.mxu0 %v6098_v39  ;;  %v3627_v61 = vpack.c.bf16 %v3193_v3, %v3190_v48  ;;  %v5278_v48 = vld [vmem:[#allocation3 + $0x298] sm:$0xff]  }
 0x2c5   :  { %6110 = vst [vmem:[#allocation50_spill] sm:$0xff] %v5838_v21 }
 0x2c6   :  { %v1587_v63 = vpop.f32.mrb[224].mxu0  ;;  %4006 = vmatprep.subr.bf16.mxu1 %v3627_v61  ;;  %v5840_v61 = vpack.c.bf16 %v3308_v28, %v3305_v45 }
 0x2c7   :  { %v1589_v57 = vpop.f32.mrb[225].mxu0  ;;  %4007 = vmatpush1.bf16.msra.mxu1 %v3626_v4  ;;  %v3195_v47 = vmax.f32 %v1587_v63, 0.0  ;;  %v5015_v63 = vpop.f32.mrb[154].mxu1 }
 0x2c8   :  { %v1591_v52 = vpop.f32.mrb[226].mxu0  ;;  %v3196_v8 = vmax.f32 %v1589_v57, 0.0  ;;  %6111 = vst [vmem:[#allocation51_spill] sm:$0xff] %v5840_v61  ;;  %v2671_v53 = vpop.f32.mrb[155].mxu1  ;;  %v3326_v14 = vmax.f32 %v5015_v63, 0.0 }
 0x2c9   :  { %v3198_v58 = vmax.f32 %v1591_v52, 0.0  ;;  %v1593_v5 = vpop.f32.mrb[227].mxu0  ;;  %v3323_v52 = vmax.f32 %v5014_v2, 0.0  ;;  %v3320_v45 = vmax.f32 %v2671_v53, 0.0  ;;  %v5018_v61 = vpop.f32.mrb[156].mxu1 }
 0x2ca   :  { %v3199_v59 = vmax.f32 %v1593_v5, 0.0  ;;  %v2684_v2 = vpop.f32.mrb[157].mxu1 }
 0x2cb   :  { %1856 = vmatmul.mubr.bf16.gmra.mrb[76].mxu0 %v5278_v48  ;;  %v3629_v3 = vpack.c.bf16 %v3198_v58, %v3195_v47  ;;  %v5843_v21 = vpack.c.bf16 %v3326_v14, %v3323_v52  ;;  %v3329_v52 = vmax.f32 %v2684_v2, 0.0 }
 0x2cc   :  { %1865 = vmatprep.mubr.bf16.mxu0 %v6098_v39  ;;  %v3630_v4 = vpack.c.bf16 %v3199_v59, %v3196_v8  ;;  %v5279_v8 = vld [vmem:[#allocation3 + $0x2a0] sm:$0xff]  }
 0x2cd   :  { %6112 = vst [vmem:[#allocation52_spill] sm:$0xff] %v5843_v21 }
 0x2ce   :  { %v1597_v16 = vpop.f32.mrb[228].mxu0  ;;  %4008 = vmatprep.subr.bf16.mxu1 %v3630_v4  ;;  %v5845_v4 = vpack.c.bf16 %v3320_v45, %v3317_v26 }
 0x2cf   :  { %v1599_v54 = vpop.f32.mrb[229].mxu0  ;;  %4009 = vmatpush1.bf16.msra.mxu1 %v3629_v3  ;;  %v3201_v5 = vmax.f32 %v1597_v16, 0.0  ;;  %v5019_v16 = vpop.f32.mrb[158].mxu1 }
 0x2d0   :  { %v1601_v57 = vpop.f32.mrb[230].mxu0  ;;  %v3202_v58 = vmax.f32 %v1599_v54, 0.0  ;;  %6113 = vst [vmem:[#allocation53_spill] sm:$0xff] %v5845_v4  ;;  %v2687_v53 = vpop.f32.mrb[159].mxu1  ;;  %v3338_v14 = vmax.f32 %v5019_v16, 0.0 }
 0x2d1   :  { %v3204_v48 = vmax.f32 %v1601_v57, 0.0  ;;  %v1603_v47 = vpop.f32.mrb[231].mxu0  ;;  %v3335_v57 = vmax.f32 %v5018_v61, 0.0  ;;  %v3332_v26 = vmax.f32 %v2687_v53, 0.0  ;;  %v5022_v4 = vpop.f32.mrb[160].mxu1 }
 0x2d2   :  { %v3205_v28 = vmax.f32 %v1603_v47, 0.0  ;;  %v2700_v61 = vpop.f32.mrb[161].mxu1 }
 0x2d3   :  { %1866 = vmatmul.mubr.bf16.gmra.mrb[80].mxu0 %v5279_v8  ;;  %v3632_v59 = vpack.c.bf16 %v3204_v48, %v3201_v5  ;;  %v5848_v21 = vpack.c.bf16 %v3338_v14, %v3335_v57  ;;  %v5023_v2 = vpop.f32.mrb[162].mxu1  ;;  %v3347_v57 = vmax.f32 %v5022_v4, 0.0  ;;  %v3341_v14 = vmax.f32 %v2700_v61, 0.0 }
 0x2d4   :  { %1875 = vmatprep.mubr.bf16.mxu0 %v6098_v39  ;;  %v3633_v3 = vpack.c.bf16 %v3205_v28, %v3202_v58  ;;  %v5280_v58 = vld [vmem:[#allocation3 + $0x2a8] sm:$0xff]  }
 0x2d5   :  { %6114 = vst [vmem:[#allocation54_spill] sm:$0xff] %v5848_v21 }
 0x2d6   :  { %v1607_v44 = vpop.f32.mrb[232].mxu0  ;;  %4010 = vmatprep.subr.bf16.mxu1 %v3633_v3  ;;  %v5850_v3 = vpack.c.bf16 %v3332_v26, %v3329_v52 }
 0x2d7   :  { %v1609_v63 = vpop.f32.mrb[233].mxu0  ;;  %4011 = vmatpush1.bf16.msra.mxu1 %v3632_v59  ;;  %v3207_v47 = vmax.f32 %v1607_v44, 0.0  ;;  %v2703_v44 = vpop.f32.mrb[163].mxu1 }
 0x2d8   :  { %v1611_v54 = vpop.f32.mrb[234].mxu0  ;;  %v3208_v48 = vmax.f32 %v1609_v63, 0.0  ;;  %6115 = vst [vmem:[#allocation55_spill] sm:$0xff] %v5850_v3  ;;  %v5026_v63 = vpop.f32.mrb[164].mxu1  ;;  %v3344_v26 = vmax.f32 %v2703_v44, 0.0 }
 0x2d9   :  { %v3210_v8 = vmax.f32 %v1611_v54, 0.0  ;;  %v1613_v5 = vpop.f32.mrb[235].mxu0 }
 0x2da   :  { %v3211_v45 = vmax.f32 %v1613_v5, 0.0  ;;  %v3350_v5 = vmax.f32 %v5023_v2, 0.0 }
 0x2db   :  { %1876 = vmatmul.mubr.bf16.gmra.mrb[84].mxu0 %v5280_v58  ;;  %v3635_v28 = vpack.c.bf16 %v3210_v8, %v3207_v47  ;;  %v2716_v58 = vpop.f32.mrb[165].mxu1 }
 0x2dc   :  { %1885 = vmatprep.mubr.bf16.mxu0 %v6098_v39  ;;  %v3636_v59 = vpack.c.bf16 %v3211_v45, %v3208_v48  ;;  %v5027_v21 = vpop.f32.mrb[166].mxu1  ;;  %v5853_v45 = vpack.c.bf16 %v3350_v5, %v3347_v57  ;;  %v3359_v5 = vmax.f32 %v5026_v63, 0.0 }
 0x2dd   :  { %v2719_v60 = vpop.f32.mrb[167].mxu1  ;;  %v3362_v22 = vmax.f32 %v5027_v21, 0.0 }
 0x2de   :  { %v1617_v16 = vpop.f32.mrb[236].mxu0  ;;  %4012 = vmatprep.subr.bf16.mxu1 %v3636_v59  ;;  %v5281_v59 = vld [vmem:[#allocation3 + $0x2b0] sm:$0xff]   ;;  %v5030_v51 = vpop.f32.mrb[168].mxu1 }
 0x2df   :  { %v1619_v54 = vpop.f32.mrb[237].mxu0  ;;  %4013 = vmatpush1.bf16.msra.mxu1 %v3635_v28  ;;  %v3213_v47 = vmax.f32 %v1617_v16, 0.0  ;;  %v5855_v28 = vpack.c.bf16 %v3344_v26, %v3341_v14  ;;  %v2732_v61 = vpop.f32.mrb[169].mxu1  ;;  %v3356_v26 = vmax.f32 %v2719_v60, 0.0 }
 0x2e0   :  { %v1621_v53 = vpop.f32.mrb[238].mxu0  ;;  %v3214_v3 = vmax.f32 %v1619_v54, 0.0  ;;  %v5031_v2 = vpop.f32.mrb[170].mxu1 }
 0x2e1   :  { %v3216_v52 = vmax.f32 %v1621_v53, 0.0  ;;  %v1623_v8 = vpop.f32.mrb[239].mxu0  ;;  %v2735_v44 = vpop.f32.mrb[171].mxu1 }
 0x2e2   :  { %v3217_v48 = vmax.f32 %v1623_v8, 0.0  ;;  %v5034_v54 = vpop.f32.mrb[172].mxu1  ;;  %v3353_v8 = vmax.f32 %v2716_v58, 0.0  ;;  %v3368_v36 = vmax.f32 %v2735_v44, 0.0 }
 0x2e3   :  { %1886 = vmatmul.mubr.bf16.gmra.mrb[88].mxu0 %v5281_v59  ;;  %v3638_v56 = vpack.c.bf16 %v3216_v52, %v3213_v47  ;;  %v2748_v59 = vpop.f32.mrb[173].mxu1 }
 0x2e4   :  { %1895 = vmatprep.mubr.bf16.mxu0 %v6098_v39  ;;  %v3639_v4 = vpack.c.bf16 %v3217_v48, %v3214_v3  ;;  %v5035_v7 = vpop.f32.mrb[174].mxu1  ;;  %v5858_v48 = vpack.c.bf16 %v3362_v22, %v3359_v5 }
 0x2e5   :  { %v2751_v9 = vpop.f32.mrb[175].mxu1 }
 0x2e6   :  { %v1627_v16 = vpop.f32.mrb[240].mxu0  ;;  %4014 = vmatprep.subr.bf16.mxu1 %v3639_v4  ;;  %v5282_v4 = vld [vmem:[#allocation3 + $0x2b8] sm:$0xff]   ;;  %v5038_v31 = vpop.f32.mrb[176].mxu1  ;;  %v3380_v12 = vmax.f32 %v2751_v9, 0.0 }
 0x2e7   :  { %v1629_v53 = vpop.f32.mrb[241].mxu0  ;;  %4015 = vmatpush1.bf16.msra.mxu1 %v3638_v56  ;;  %v3219_v47 = vmax.f32 %v1627_v16, 0.0  ;;  %v5860_v56 = vpack.c.bf16 %v3356_v26, %v3353_v8  ;;  %v2764_v63 = vpop.f32.mrb[177].mxu1  ;;  %v3374_v8 = vmax.f32 %v5031_v2, 0.0 }
 0x2e8   :  { %v1631_v57 = vpop.f32.mrb[242].mxu0  ;;  %v3220_v13 = vmax.f32 %v1629_v53, 0.0  ;;  %v5039_v58 = vpop.f32.mrb[178].mxu1  ;;  %v3389_v22 = vmax.f32 %v2764_v63, 0.0 }
 0x2e9   :  { %v3222_v14 = vmax.f32 %v1631_v57, 0.0  ;;  %v1633_v52 = vpop.f32.mrb[243].mxu0  ;;  %v2767_v60 = vpop.f32.mrb[179].mxu1 }
 0x2ea   :  { %v3223_v3 = vmax.f32 %v1633_v52, 0.0  ;;  %v3392_v5 = vmax.f32 %v2767_v60, 0.0 }
 0x2eb   :  { %1896 = vmatmul.mubr.bf16.gmra.mrb[92].mxu0 %v5282_v4  ;;  %v3641_v15 = vpack.c.bf16 %v3222_v14, %v3219_v47  ;;  %v3371_v4 = vmax.f32 %v5030_v51, 0.0  ;;  %v3365_v47 = vmax.f32 %v2732_v61, 0.0  ;;  %v5042_v14 = vpop.f32.mrb[180].mxu1  ;;  %v3395_v51 = vmax.f32 %v5038_v31, 0.0 }
 0x2ec   :  { %1905 = vmatprep.mubr.bf16.mxu0 %v6098_v39  ;;  %v3642_v21 = vpack.c.bf16 %v3223_v3, %v3220_v13  ;;  %v3383_v13 = vmax.f32 %v5034_v54, 0.0  ;;  %v3377_v3 = vmax.f32 %v2748_v59, 0.0  ;;  %v2780_v10 = vpop.f32.mrb[181].mxu1  ;;  %v3398_v61 = vmax.f32 %v5039_v58, 0.0 }
 0x2ed   :  { %v5865_v60 = vpack.c.bf16 %v3368_v36, %v3365_v47  ;;  %v5872_v54 = vpack.c.bf16 %v3392_v5, %v3389_v22  ;;  %v3401_v9 = vmax.f32 %v2780_v10, 0.0  ;;  %v5284_v10 = vld [vmem:[#allocation3 + $0x2c8] sm:$0xff]  }
 0x2ee   :  { %v1637_v16 = vpop.f32.mrb[244].mxu0  ;;  %4016 = vmatprep.subr.bf16.mxu1 %v3642_v21  ;;  %v5863_v21 = vpack.c.bf16 %v3374_v8, %v3371_v4  ;;  %v5870_v44 = vpack.c.bf16 %v3380_v12, %v3377_v3  ;;  %v5874_v59 = vpack.c.bf16 %v3398_v61, %v3395_v51 }
 0x2ef   :  { %v3225_v57 = vmax.f32 %v1637_v16, 0.0  ;;  %v1639_v53 = vpop.f32.mrb[245].mxu0  ;;  %4017 = vmatpush1.bf16.msra.mxu1 %v3641_v15  ;;  %v3386_v16 = vmax.f32 %v5035_v7, 0.0  ;;  %v5283_v15 = vld [vmem:[#allocation3 + $0x2c0] sm:$0xff]   ;;  %v3407_v7 = vmax.f32 %v5042_v14, 0.0 }
 0x2f0   :  { %v3226_v52 = vmax.f32 %v1639_v53, 0.0  ;;  %v1641_v30 = vpop.f32.mrb[246].mxu0 }
 0x2f1   :  { %v3228_v26 = vmax.f32 %v1641_v30, 0.0  ;;  %v1643_v33 = vpop.f32.mrb[247].mxu0  ;;  %v5868_v2 = vpack.c.bf16 %v3386_v16, %v3383_v13 }
 0x2f2   :  { %v3229_v6 = vmax.f32 %v1643_v33, 0.0  ;;  %v5043_v33 = vpop.f32.mrb[182].mxu1 }
 0x2f3   :  { %1906 = vmatmul.mubr.bf16.gmra.mrb[96].mxu0 %v5283_v15  ;;  %v3644_v63 = vpack.c.bf16 %v3228_v26, %v3225_v57  ;;  %v3410_v53 = vmax.f32 %v5043_v33, 0.0  ;;  %v2783_v57 = vpop.f32.mrb[183].mxu1 }
 0x2f4   :  { %1915 = vmatprep.mubr.bf16.mxu0 %v6098_v39  ;;  %v3645_v30 = vpack.c.bf16 %v3229_v6, %v3226_v52  ;;  %v3404_v31 = vmax.f32 %v2783_v57, 0.0  ;;  %v5046_v12 = vpop.f32.mrb[184].mxu1 }
 0x2f5   :  { %v5876_v4 = vpack.c.bf16 %v3410_v53, %v3407_v7  ;;  %v2796_v8 = vpop.f32.mrb[185].mxu1  ;;  %v3419_v3 = vmax.f32 %v5046_v12, 0.0 }
 0x2f6   :  { %v1647_v36 = vpop.f32.mrb[248].mxu0  ;;  %4018 = vmatprep.subr.bf16.mxu1 %v3645_v30  ;;  %v5878_v52 = vpack.c.bf16 %v3404_v31, %v3401_v9  ;;  %v3413_v15 = vmax.f32 %v2796_v8, 0.0 }
 0x2f7   :  { %v1649_v58 = vpop.f32.mrb[249].mxu0  ;;  %4019 = vmatpush1.bf16.msra.mxu1 %v3644_v63  ;;  %v3231_v22 = vmax.f32 %v1647_v36, 0.0  ;;  %v5047_v63 = vpop.f32.mrb[186].mxu1 }
 0x2f8   :  { %v1651_v6 = vpop.f32.mrb[250].mxu0  ;;  %v3232_v26 = vmax.f32 %v1649_v58, 0.0  ;;  %v3422_v51 = vmax.f32 %v5047_v63, 0.0  ;;  %v2799_v61 = vpop.f32.mrb[187].mxu1  ;;  %v5888_v63 = vcombine.high %v5790_v46, %v5790_v46 }
 0x2f9   :  { %v3234_v5 = vmax.f32 %v1651_v6, 0.0  ;;  %v1653_v47 = vpop.f32.mrb[251].mxu0  ;;  %v3416_v33 = vmax.f32 %v2799_v61, 0.0  ;;  %v5050_v36 = vpop.f32.mrb[188].mxu1 }
 0x2fa   :  { %v3235_v14 = vmax.f32 %v1653_v47, 0.0  ;;  %v5881_v9 = vpack.c.bf16 %v3422_v51, %v3419_v3  ;;  %v2812_v12 = vpop.f32.mrb[189].mxu1  ;;  %v5285_v47 = vld [vmem:[#allocation3 + $0x2d0] sm:$0xff]  }
 0x2fb   :  { %1916 = vmatmul.mubr.bf16.gmra.mrb[100].mxu0 %v5284_v10  ;;  %v3647_v13 = vpack.c.bf16 %v3234_v5, %v3231_v22  ;;  %v5883_v57 = vpack.c.bf16 %v3416_v33, %v3413_v15  ;;  %v3425_v10 = vmax.f32 %v2812_v12, 0.0 }
 0x2fc   :  { %1925 = vmatprep.mubr.bf16.mxu0 %v6098_v39  ;;  %v3648_v16 = vpack.c.bf16 %v3235_v14, %v3232_v26  ;;  %v3431_v26 = vmax.f32 %v5050_v36, 0.0 }
 0x2fe   :  { %v1657_v30 = vpop.f32.mrb[252].mxu0  ;;  %4020 = vmatprep.subr.bf16.mxu1 %v3648_v16 }
 0x2ff   :  { %v1659_v7 = vpop.f32.mrb[253].mxu0  ;;  %4021 = vmatpush1.bf16.msra.mxu1 %v3647_v13  ;;  %v3237_v31 = vmax.f32 %v1657_v30, 0.0  ;;  %v5051_v13 = vpop.f32.mrb[190].mxu1 }
 0x300   :  { %v1661_v53 = vpop.f32.mrb[254].mxu0  ;;  %v3238_v22 = vmax.f32 %v1659_v7, 0.0  ;;  %v3434_v3 = vmax.f32 %v5051_v13, 0.0  ;;  %v2815_v16 = vpop.f32.mrb[191].mxu1 }
 0x301   :  { %v3240_v58 = vmax.f32 %v1661_v53, 0.0  ;;  %v1663_v6 = vpop.f32.mrb[255].mxu0  ;;  %v3428_v51 = vmax.f32 %v2815_v16, 0.0  ;;  %v5897_v53 = vld [vmem:[%s6055_s2 + $0x8] sm:$0x1f] }
 0x302   :  { %v3241_v5 = vmax.f32 %v1663_v6, 0.0  ;;  %v5890_v30 = vpack.c.bf16 %v3434_v3, %v3431_v26  ;;  %v5901_v6 = vrot.slane %v5897_v53, %v5653_v17 }
 0x303   :  { %1926 = vmatmul.mubr.bf16.gmra.mrb[104].mxu0 %v5285_v47  ;;  %v3650_v8 = vpack.c.bf16 %v3240_v58, %v3237_v31  ;;  %v5892_v7 = vpack.c.bf16 %v3428_v51, %v3425_v10 }
 0x304   :  { %1935 = vmatprep.mubr.bf16.mxu0 %v6098_v39  ;;  %v3651_v14 = vpack.c.bf16 %v3241_v5, %v3238_v22  ;;  %v5286_v5 = vld [vmem:[#allocation3 + $0x2d8] sm:$0xff]  }
 0x306   :  { %v1667_v15 = vpop.f32.mrb[0].mxu0  ;;  %4022 = vmatprep.subr.bf16.mxu1 %v3651_v14 }
 0x307   :  { %v1669_v61 = vpop.f32.mrb[1].mxu0  ;;  %4023 = vmatpush1.bf16.msra.mxu1 %v3650_v8  ;;  %v3243_v36 = vmax.f32 %v1667_v15, 0.0  ;;  %v3829_v8 = vcombine.high %v5901_v6, %v5901_v6 }
 0x308   :  { %v1671_v33 = vpop.f32.mrb[2].mxu0  ;;  %v3244_v12 = vmax.f32 %v1669_v61, 0.0 }
 0x309   :  { %v3246_v31 = vmax.f32 %v1671_v33, 0.0  ;;  %v1673_v58 = vpop.f32.mrb[3].mxu0  ;;  %v5908_v14 = vrot.slane %v3829_v8, %v5653_v17 }
 0x30a   :  { %v3247_v22 = vmax.f32 %v1673_v58, 0.0  ;;  %4025 = vmatmul.mubr.bf16.vlgmr.msra.gmra.mrb[200].mxu1 %v5888_v63 }
 0x30b   :  { %1936 = vmatmul.mubr.bf16.gmra.mrb[108].mxu0 %v5286_v5  ;;  %v3653_v47 = vpack.c.bf16 %v3246_v31, %v3243_v36  ;;  %4065 = vmatprep.mubr.bf16.mxu1 %v5908_v14  ;;  %v5287_v36 = vld [vmem:[#allocation3 + $0x2e0] sm:$0xff]  }
 0x30c   :  { %1945 = vmatprep.mubr.bf16.mxu0 %v6098_v39  ;;  %v3654_v26 = vpack.c.bf16 %v3247_v22, %v3244_v12 }
 0x30e   :  { %v1677_v10 = vpop.f32.mrb[4].mxu0  ;;  %4033 = vmatprep.subr.bf16.mxu1 %v3654_v26 }
 0x30f   :  { %v1679_v13 = vpop.f32.mrb[5].mxu0  ;;  %4034 = vmatpush1.bf16.msra.mxu1 %v3653_v47  ;;  %v3249_v16 = vmax.f32 %v1677_v10, 0.0 }
 0x310   :  { %v1681_v3 = vpop.f32.mrb[6].mxu0  ;;  %v3250_v61 = vmax.f32 %v1679_v13, 0.0 }
 0x311   :  { %v3252_v15 = vmax.f32 %v1681_v3, 0.0  ;;  %v1683_v51 = vpop.f32.mrb[7].mxu0  ;;  %v5288_v3 = vld [vmem:[#allocation3 + $0x2e8] sm:$0xff]  }
 0x312   :  { %v3253_v33 = vmax.f32 %v1683_v51, 0.0 }
 0x313   :  { %1946 = vmatmul.mubr.bf16.gmra.mrb[112].mxu0 %v5287_v36  ;;  %v3656_v31 = vpack.c.bf16 %v3252_v15, %v3249_v16  ;;  %v5054_v16 = vpop.f32.mrb[192].mxu1 }
 0x314   :  { %1955 = vmatprep.mubr.bf16.mxu0 %v6098_v39  ;;  %v3657_v58 = vpack.c.bf16 %v3253_v33, %v3250_v61  ;;  %v2828_v15 = vpop.f32.mrb[193].mxu1 }
 0x315   :  { %v5055_v61 = vpop.f32.mrb[194].mxu1 }
 0x316   :  { %v1687_v12 = vpop.f32.mrb[8].mxu0  ;;  %4035 = vmatprep.subr.bf16.mxu1 %v3657_v58  ;;  %v3446_v11 = vmax.f32 %v5055_v61, 0.0 }
 0x317   :  { %v1689_v22 = vpop.f32.mrb[9].mxu0  ;;  %4036 = vmatpush1.bf16.msra.mxu1 %v3656_v31  ;;  %v3255_v47 = vmax.f32 %v1687_v12, 0.0  ;;  %v2831_v31 = vpop.f32.mrb[195].mxu1  ;;  %v3443_v12 = vmax.f32 %v5054_v16, 0.0 }
 0x318   :  { %v1691_v5 = vpop.f32.mrb[10].mxu0  ;;  %v3256_v46 = vmax.f32 %v1689_v22, 0.0  ;;  %v5058_v43 = vpop.f32.mrb[196].mxu1 }
 0x319   :  { %v3258_v8 = vmax.f32 %v1691_v5, 0.0  ;;  %v1693_v26 = vpop.f32.mrb[11].mxu0  ;;  %v3437_v5 = vmax.f32 %v2828_v15, 0.0  ;;  %v5913_v29 = vpack.c.bf16 %v3446_v11, %v3443_v12  ;;  %v2844_v16 = vpop.f32.mrb[197].mxu1 }
 0x31a   :  { %v3259_v10 = vmax.f32 %v1693_v26, 0.0  ;;  %v3449_v11 = vmax.f32 %v2844_v16, 0.0 }
 0x31b   :  { %1956 = vmatmul.mubr.bf16.gmra.mrb[116].mxu0 %v5288_v3  ;;  %v3659_v13 = vpack.c.bf16 %v3258_v8, %v3255_v47  ;;  %v3440_v3 = vmax.f32 %v2831_v31, 0.0  ;;  %6116 = vst [vmem:[#allocation56_spill] sm:$0xff] %v5913_v29 }
 0x31c   :  { %1965 = vmatprep.mubr.bf16.mxu0 %v6098_v39  ;;  %v3660_v51 = vpack.c.bf16 %v3259_v10, %v3256_v46  ;;  %v5289_v46 = vld [vmem:[#allocation3 + $0x2f0] sm:$0xff]  }
 0x31e   :  { %v1697_v36 = vpop.f32.mrb[12].mxu0  ;;  %4037 = vmatprep.subr.bf16.mxu1 %v3660_v51  ;;  %v5915_v51 = vpack.c.bf16 %v3440_v3, %v3437_v5 }
 0x31f   :  { %v1699_v33 = vpop.f32.mrb[13].mxu0  ;;  %4038 = vmatpush1.bf16.msra.mxu1 %v3659_v13  ;;  %v3261_v22 = vmax.f32 %v1697_v36, 0.0  ;;  %v5059_v36 = vpop.f32.mrb[198].mxu1 }
 0x320   :  { %v1701_v58 = vpop.f32.mrb[14].mxu0  ;;  %v3262_v47 = vmax.f32 %v1699_v33, 0.0  ;;  %6117 = vst [vmem:[#allocation57_spill] sm:$0xff] %v5915_v51  ;;  %v2847_v31 = vpop.f32.mrb[199].mxu1 }
 0x321   :  { %v3264_v26 = vmax.f32 %v1701_v58, 0.0  ;;  %v1703_v35 = vpop.f32.mrb[15].mxu0  ;;  %v3458_v58 = vmax.f32 %v5059_v36, 0.0  ;;  %v3452_v5 = vmax.f32 %v2847_v31, 0.0 }
 0x322   :  { %v3265_v8 = vmax.f32 %v1703_v35, 0.0  ;;  %v3455_v35 = vmax.f32 %v5058_v43, 0.0 }
 0x323   :  { %1966 = vmatmul.mubr.bf16.gmra.mrb[120].mxu0 %v5289_v46  ;;  %v3662_v10 = vpack.c.bf16 %v3264_v26, %v3261_v22 }
 0x324   :  { %1975 = vmatprep.mubr.bf16.mxu0 %v6098_v39  ;;  %v3663_v13 = vpack.c.bf16 %v3265_v8, %v3262_v47  ;;  %v5918_v29 = vpack.c.bf16 %v3458_v58, %v3455_v35  ;;  %v5290_v47 = vld [vmem:[#allocation3 + $0x2f8] sm:$0xff]   ;;  %v5291_v35 = vld [vmem:[#allocation3 + $0x300] sm:$0xff]  }
 0x326   :  { %v1707_v15 = vpop.f32.mrb[16].mxu0  ;;  %4039 = vmatprep.subr.bf16.mxu1 %v3663_v13  ;;  %v5920_v13 = vpack.c.bf16 %v3452_v5, %v3449_v11 }
 0x327   :  { %v1709_v61 = vpop.f32.mrb[17].mxu0  ;;  %4040 = vmatpush1.bf16.msra.mxu1 %v3662_v10  ;;  %v3267_v12 = vmax.f32 %v1707_v15, 0.0 }
 0x328   :  { %v1711_v33 = vpop.f32.mrb[18].mxu0  ;;  %v3268_v26 = vmax.f32 %v1709_v61, 0.0 }
 0x329   :  { %v3270_v46 = vmax.f32 %v1711_v33, 0.0  ;;  %v1713_v22 = vpop.f32.mrb[19].mxu0 }
 0x32a   :  { %v3271_v3 = vmax.f32 %v1713_v22, 0.0 }
 0x32b   :  { %1976 = vmatmul.mubr.bf16.gmra.mrb[124].mxu0 %v5290_v47  ;;  %v3665_v8 = vpack.c.bf16 %v3270_v46, %v3267_v12 }
 0x32c   :  { %1985 = vmatprep.mubr.bf16.mxu0 %v6098_v39  ;;  %v3666_v10 = vpack.c.bf16 %v3271_v3, %v3268_v26 }
 0x32e   :  { %v1717_v51 = vpop.f32.mrb[20].mxu0  ;;  %4041 = vmatprep.subr.bf16.mxu1 %v3666_v10 }
 0x32f   :  { %v1719_v43 = vpop.f32.mrb[21].mxu0  ;;  %4042 = vmatpush1.bf16.msra.mxu1 %v3665_v8  ;;  %v3273_v15 = vmax.f32 %v1717_v51, 0.0  ;;  %v5292_v8 = vld [vmem:[#allocation3 + $0x308] sm:$0xff]  }
 0x330   :  { %v1721_v16 = vpop.f32.mrb[22].mxu0  ;;  %v3274_v61 = vmax.f32 %v1719_v43, 0.0 }
 0x331   :  { %v3276_v36 = vmax.f32 %v1721_v16, 0.0  ;;  %v1723_v31 = vpop.f32.mrb[23].mxu0 }
 0x332   :  { %v3277_v33 = vmax.f32 %v1723_v31, 0.0 }
 0x333   :  { %1986 = vmatmul.mubr.bf16.gmra.mrb[128].mxu0 %v5291_v35  ;;  %v3668_v58 = vpack.c.bf16 %v3276_v36, %v3273_v15 }
 0x334   :  { %1995 = vmatprep.mubr.bf16.mxu0 %v6098_v39  ;;  %v3669_v11 = vpack.c.bf16 %v3277_v33, %v3274_v61 }
 0x336   :  { %v1727_v12 = vpop.f32.mrb[24].mxu0  ;;  %4043 = vmatprep.subr.bf16.mxu1 %v3669_v11  ;;  %v5293_v11 = vld [vmem:[#allocation3 + $0x310] sm:$0xff]  }
 0x337   :  { %v1729_v46 = vpop.f32.mrb[25].mxu0  ;;  %4044 = vmatpush1.bf16.msra.mxu1 %v3668_v58  ;;  %v3279_v5 = vmax.f32 %v1727_v12, 0.0 }
 0x338   :  { %v1731_v22 = vpop.f32.mrb[26].mxu0  ;;  %v3280_v47 = vmax.f32 %v1729_v46, 0.0 }
 0x339   :  { %v3282_v26 = vmax.f32 %v1731_v22, 0.0  ;;  %v1733_v3 = vpop.f32.mrb[27].mxu0 }
 0x33a   :  { %v3283_v51 = vmax.f32 %v1733_v3, 0.0 }
 0x33b   :  { %1996 = vmatmul.mubr.bf16.gmra.mrb[132].mxu0 %v5292_v8  ;;  %v3671_v10 = vpack.c.bf16 %v3282_v26, %v3279_v5 }
 0x33c   :  { %2005 = vmatprep.mubr.bf16.mxu0 %v6098_v39  ;;  %v3672_v43 = vpack.c.bf16 %v3283_v51, %v3280_v47 }
 0x33e   :  { %v1737_v16 = vpop.f32.mrb[28].mxu0  ;;  %4045 = vmatprep.subr.bf16.mxu1 %v3672_v43  ;;  %v5294_v43 = vld [vmem:[#allocation3 + $0x318] sm:$0xff]  }
 0x33f   :  { %v1739_v15 = vpop.f32.mrb[29].mxu0  ;;  %4046 = vmatpush1.bf16.msra.mxu1 %v3671_v10  ;;  %v3285_v31 = vmax.f32 %v1737_v16, 0.0 }
 0x340   :  { %v1741_v36 = vpop.f32.mrb[30].mxu0  ;;  %v3286_v35 = vmax.f32 %v1739_v15, 0.0 }
 0x341   :  { %v3288_v61 = vmax.f32 %v1741_v36, 0.0  ;;  %v1743_v33 = vpop.f32.mrb[31].mxu0 }
 0x342   :  { %v3289_v58 = vmax.f32 %v1743_v33, 0.0 }
 0x343   :  { %2006 = vmatmul.mubr.bf16.gmra.mrb[136].mxu0 %v5293_v11  ;;  %v3674_v12 = vpack.c.bf16 %v3288_v61, %v3285_v31 }
 0x344   :  { %2015 = vmatprep.mubr.bf16.mxu0 %v6098_v39  ;;  %v3675_v46 = vpack.c.bf16 %v3289_v58, %v3286_v35 }
 0x346   :  { %v1747_v22 = vpop.f32.mrb[32].mxu0  ;;  %4047 = vmatprep.subr.bf16.mxu1 %v3675_v46 }
 0x347   :  { %v1749_v5 = vpop.f32.mrb[33].mxu0  ;;  %4048 = vmatpush1.bf16.msra.mxu1 %v3674_v12  ;;  %v3291_v3 = vmax.f32 %v1747_v22, 0.0 }
 0x348   :  { %v1751_v26 = vpop.f32.mrb[34].mxu0  ;;  %v3292_v8 = vmax.f32 %v1749_v5, 0.0 }
 0x349   :  { %v3294_v47 = vmax.f32 %v1751_v26, 0.0  ;;  %v1753_v51 = vpop.f32.mrb[35].mxu0 }
 0x34a   :  { %v3295_v10 = vmax.f32 %v1753_v51, 0.0 }
 0x34b   :  { %2016 = vmatmul.mubr.bf16.gmra.mrb[140].mxu0 %v5294_v43  ;;  %v3677_v16 = vpack.c.bf16 %v3294_v47, %v3291_v3 }
 0x34c   :  { %4228 = vmatprep.mubr.bf16.mxu0 %v5681_v1  ;;  %v3678_v15 = vpack.c.bf16 %v3295_v10, %v3292_v8 }
 0x34e   :  { %v1757_v36 = vpop.f32.mrb[36].mxu0  ;;  %4049 = vmatprep.subr.bf16.mxu1 %v3678_v15 }
 0x34f   :  { %v1759_v31 = vpop.f32.mrb[37].mxu0  ;;  %4050 = vmatpush1.bf16.msra.mxu1 %v3677_v16  ;;  %v3297_v33 = vmax.f32 %v1757_v36, 0.0 }
 0x350   :  { %v1761_v61 = vpop.f32.mrb[38].mxu0  ;;  %v3298_v11 = vmax.f32 %v1759_v31, 0.0 }
 0x351   :  { %v3300_v35 = vmax.f32 %v1761_v61, 0.0  ;;  %v1763_v58 = vpop.f32.mrb[39].mxu0 }
 0x352   :  { %v3301_v12 = vmax.f32 %v1763_v58, 0.0 }
 0x353   :  { %4229 = vmatmul.mubr.bf16.vlgmr.msra.gmra.mrb[144].mxu0 %v5708_v42  ;;  %v3680_v46 = vpack.c.bf16 %v3300_v35, %v3297_v33 }
 0x354   :  { %4774 = vmatpush3.bf16.msra.mxu0 %v5767_v18  ;;  %v3681_v22 = vpack.c.bf16 %v3301_v12, %v3298_v11  ;;  %4308 = vmatprep.mubr.bf16.mxu0 %v5800_v38 }
 0x355   :  { %4775 = vmatprep.subr.bf16.mxu0 %v5785_v50 }
 0x356   :  { %v1767_v1 = vpop.f32.mrb[40].mxu0  ;;  %4051 = vmatprep.subr.bf16.mxu1 %v3681_v22 }
 0x357   :  { %v1769_v5 = vpop.f32.mrb[41].mxu0  ;;  %4052 = vmatpush1.bf16.msra.mxu1 %v3680_v46  ;;  %v3303_v3 = vmax.f32 %v1767_v1, 0.0 }
 0x358   :  { %4776 = vmatpush3.bf16.msra.mxu0 %v5765_v49  ;;  %v1771_v26 = vpop.f32.mrb[42].mxu0  ;;  %v3304_v51 = vmax.f32 %v1769_v5, 0.0 }
 0x359   :  { %4777 = vmatprep.subr.bf16.mxu0 %v5795_v19  ;;  %v3306_v47 = vmax.f32 %v1771_v26, 0.0  ;;  %v1773_v42 = vpop.f32.mrb[43].mxu0 }
 0x35a   :  { %v3307_v8 = vmax.f32 %v1773_v42, 0.0 }
 0x35b   :  { %v3683_v18 = vpack.c.bf16 %v3306_v47, %v3303_v3 }
 0x35c   :  { %4778 = vmatpush3.bf16.msra.mxu0 %v5772_v34  ;;  %v3684_v38 = vpack.c.bf16 %v3307_v8, %v3304_v51 }
 0x35d   :  { %4779 = vmatprep.subr.bf16.mxu0 %v5793_v40 }
 0x35e   :  { %v1777_v50 = vpop.f32.mrb[44].mxu0  ;;  %4053 = vmatprep.subr.bf16.mxu1 %v3684_v38 }
 0x35f   :  { %v1779_v10 = vpop.f32.mrb[45].mxu0  ;;  %4054 = vmatpush1.bf16.msra.mxu1 %v3683_v18  ;;  %v3309_v19 = vmax.f32 %v1777_v50, 0.0 }
 0x360   :  { %4780 = vmatpush3.bf16.msra.mxu0 %v5770_v24  ;;  %v1781_v49 = vpop.f32.mrb[46].mxu0  ;;  %v3310_v15 = vmax.f32 %v1779_v10, 0.0 }
 0x361   :  { %4781 = vmatprep.subr.bf16.mxu0 %v5805_v27  ;;  %v3312_v43 = vmax.f32 %v1781_v49, 0.0  ;;  %v1783_v16 = vpop.f32.mrb[47].mxu0 }
 0x362   :  { %v3313_v36 = vmax.f32 %v1783_v16, 0.0  ;;  %v5958_v16 = vrot.slane %v5901_v6, %v5653_v17  ;;  %v3852_v6 = vcombine.high %v5908_v14, %v5908_v14 }
 0x363   :  { %v3686_v31 = vpack.c.bf16 %v3312_v43, %v3309_v19 }
 0x364   :  { %4782 = vmatpush3.bf16.msra.mxu0 %v5777_v25  ;;  %v3687_v34 = vpack.c.bf16 %v3313_v36, %v3310_v15 }
 0x365   :  { %4783 = vmatprep.subr.bf16.mxu0 %v5803_v62 }
 0x366   :  { %v1787_v40 = vpop.f32.mrb[48].mxu0  ;;  %4055 = vmatprep.subr.bf16.mxu1 %v3687_v34 }
 0x367   :  { %v1789_v61 = vpop.f32.mrb[49].mxu0  ;;  %4056 = vmatpush1.bf16.msra.mxu1 %v3686_v31  ;;  %v3315_v27 = vmax.f32 %v1787_v40, 0.0 }
 0x368   :  { %4784 = vmatpush3.bf16.msra.mxu0 %v5775_v0  ;;  %v1791_v24 = vpop.f32.mrb[50].mxu0  ;;  %v3316_v58 = vmax.f32 %v1789_v61, 0.0 }
 0x369   :  { %4785 = vmatprep.subr.bf16.mxu0 %v5810_v55  ;;  %v3318_v33 = vmax.f32 %v1791_v24, 0.0  ;;  %v1793_v35 = vpop.f32.mrb[51].mxu0 }
 0x36a   :  { %v3319_v11 = vmax.f32 %v1793_v35, 0.0 }
 0x36b   :  { %v3689_v12 = vpack.c.bf16 %v3318_v33, %v3315_v27 }
 0x36c   :  { %4786 = vmatpush3.bf16.msra.mxu0 %v5782_v41  ;;  %v3690_v25 = vpack.c.bf16 %v3319_v11, %v3316_v58 }
 0x36d   :  { %4787 = vmatprep.subr.bf16.mxu0 %v5808_v23 }
 0x36e   :  { %v1797_v62 = vpop.f32.mrb[52].mxu0  ;;  %4057 = vmatprep.subr.bf16.mxu1 %v3690_v25 }
 0x36f   :  { %v1799_v46 = vpop.f32.mrb[53].mxu0  ;;  %4058 = vmatpush1.bf16.msra.mxu1 %v3689_v12  ;;  %v3321_v55 = vmax.f32 %v1797_v62, 0.0 }
 0x370   :  { %4788 = vmatpush3.bf16.msra.mxu0 %v5780_v20  ;;  %v1801_v0 = vpop.f32.mrb[54].mxu0  ;;  %v3322_v5 = vmax.f32 %v1799_v46, 0.0 }
 0x371   :  { %4817 = vmatprep.subr.bf16.mxu0 %v5872_v54  ;;  %v3324_v22 = vmax.f32 %v1801_v0, 0.0  ;;  %v1803_v1 = vpop.f32.mrb[55].mxu0 }
 0x372   :  { %v3325_v26 = vmax.f32 %v1803_v1, 0.0 }
 0x373   :  { %4309 = vmatmul.mubr.bf16.vlgmr.msra.gmra.mrb[148].mxu0 %v5888_v63  ;;  %v3692_v41 = vpack.c.bf16 %v3324_v22, %v3321_v55 }
 0x374   :  { %4818 = vmatpush3.bf16.msra.mxu0 %v5855_v28  ;;  %v3693_v23 = vpack.c.bf16 %v3325_v26, %v3322_v5  ;;  %4388 = vmatprep.mubr.bf16.mxu0 %v3852_v6 }
 0x375   :  { %4819 = vmatprep.subr.bf16.mxu0 %v5874_v59 }
 0x376   :  { %v1807_v3 = vpop.f32.mrb[56].mxu0  ;;  %4059 = vmatprep.subr.bf16.mxu1 %v3693_v23 }
 0x377   :  { %v1809_v47 = vpop.f32.mrb[57].mxu0  ;;  %4060 = vmatpush1.bf16.msra.mxu1 %v3692_v41  ;;  %v3327_v54 = vmax.f32 %v1807_v3, 0.0 }
 0x378   :  { %4820 = vmatpush3.bf16.msra.mxu0 %v5853_v45  ;;  %v1811_v20 = vpop.f32.mrb[58].mxu0  ;;  %v3328_v8 = vmax.f32 %v1809_v47, 0.0 }
 0x379   :  { %4821 = vmatprep.subr.bf16.mxu0 %v5878_v52  ;;  %v3330_v42 = vmax.f32 %v1811_v20, 0.0  ;;  %v1813_v51 = vpop.f32.mrb[59].mxu0 }
 0x37a   :  { %v3331_v63 = vmax.f32 %v1813_v51, 0.0 }
 0x37b   :  { %v3695_v18 = vpack.c.bf16 %v3330_v42, %v3327_v54 }
 0x37c   :  { %4822 = vmatpush3.bf16.msra.mxu0 %v5860_v56  ;;  %v3696_v28 = vpack.c.bf16 %v3331_v63, %v3328_v8 }
 0x37d   :  { %4823 = vmatprep.subr.bf16.mxu0 %v5876_v4 }
 0x37e   :  { %v1817_v59 = vpop.f32.mrb[60].mxu0  ;;  %4061 = vmatprep.subr.bf16.mxu1 %v3696_v28 }
 0x37f   :  { %v1819_v38 = vpop.f32.mrb[61].mxu0  ;;  %4062 = vmatpush1.bf16.msra.mxu1 %v3695_v18  ;;  %v3333_v52 = vmax.f32 %v1817_v59, 0.0 }
 0x380   :  { %4824 = vmatpush3.bf16.msra.mxu0 %v5858_v48  ;;  %v1821_v45 = vpop.f32.mrb[62].mxu0  ;;  %v3334_v49 = vmax.f32 %v1819_v38, 0.0 }
 0x381   :  { %4825 = vmatprep.subr.bf16.mxu0 %v5883_v57  ;;  %v3336_v50 = vmax.f32 %v1821_v45, 0.0  ;;  %v1823_v10 = vpop.f32.mrb[63].mxu0 }
 0x382   :  { %v3337_v19 = vmax.f32 %v1823_v10, 0.0 }
 0x383   :  { %v3698_v43 = vpack.c.bf16 %v3336_v50, %v3333_v52 }
 0x384   :  { %4826 = vmatpush3.bf16.msra.mxu0 %v5865_v60  ;;  %v3699_v56 = vpack.c.bf16 %v3337_v19, %v3334_v49 }
 0x385   :  { %4827 = vmatprep.subr.bf16.mxu0 %v5881_v9 }
 0x386   :  { %v1827_v4 = vpop.f32.mrb[64].mxu0  ;;  %4063 = vmatprep.subr.bf16.mxu1 %v3699_v56 }
 0x387   :  { %v1829_v48 = vpop.f32.mrb[65].mxu0  ;;  %4064 = vmatpush1.bf16.msra.mxu1 %v3698_v43  ;;  %v3339_v15 = vmax.f32 %v1827_v4, 0.0 }
 0x388   :  { %4828 = vmatpush3.bf16.msra.mxu0 %v5863_v21  ;;  %v1831_v57 = vpop.f32.mrb[66].mxu0  ;;  %v3340_v60 = vmax.f32 %v1829_v48, 0.0 }
 0x389   :  { %4829 = vmatprep.subr.bf16.mxu0 %v5892_v7  ;;  %v3342_v36 = vmax.f32 %v1831_v57, 0.0  ;;  %v1833_v31 = vpop.f32.mrb[67].mxu0 }
 0x38a   :  { %v3343_v34 = vmax.f32 %v1833_v31, 0.0  ;;  %4066 = vmatmul.mubr.bf16.vlgmr.msra.gmra.mrb[200].mxu1 %v5958_v16 }
 0x38b   :  { %v3701_v9 = vpack.c.bf16 %v3342_v36, %v3339_v15  ;;  %4106 = vmatprep.mubr.bf16.mxu1 %v3852_v6 }
 0x38c   :  { %4830 = vmatpush3.bf16.msra.mxu0 %v5870_v44  ;;  %v3702_v40 = vpack.c.bf16 %v3343_v34, %v3340_v60  ;;  %v5970_v44 = vcombine.high %v5958_v16, %v5958_v16 }
 0x38d   :  { %4831 = vmatprep.subr.bf16.mxu0 %v5890_v30 }
 0x38e   :  { %v1837_v21 = vpop.f32.mrb[68].mxu0  ;;  %4074 = vmatprep.subr.bf16.mxu1 %v3702_v40 }
 0x38f   :  { %v1839_v61 = vpop.f32.mrb[69].mxu0  ;;  %4075 = vmatpush1.bf16.msra.mxu1 %v3701_v9  ;;  %v3345_v24 = vmax.f32 %v1837_v21, 0.0 }
 0x390   :  { %4832 = vmatpush3.bf16.msra.mxu0 %v5868_v2  ;;  %v1841_v7 = vpop.f32.mrb[70].mxu0  ;;  %v3346_v30 = vmax.f32 %v1839_v61, 0.0 }
 0x391   :  { %v3348_v27 = vmax.f32 %v1841_v7, 0.0  ;;  %v1843_v33 = vpop.f32.mrb[71].mxu0 }
 0x392   :  { %v3349_v35 = vmax.f32 %v1843_v33, 0.0 }
 0x393   :  { %v3704_v58 = vpack.c.bf16 %v3348_v27, %v3345_v24  ;;  %4389 = vmatmul.mubr.bf16.vlgmr.msra.gmra.mrb[152].mxu0 %v5970_v44 }
 0x394   :  { %v3705_v11 = vpack.c.bf16 %v3349_v35, %v3346_v30 }
 0x396   :  { %v1847_v12 = vpop.f32.mrb[72].mxu0  ;;  %4076 = vmatprep.subr.bf16.mxu1 %v3705_v11 }
 0x397   :  { %v1849_v25 = vpop.f32.mrb[73].mxu0  ;;  %4077 = vmatpush1.bf16.msra.mxu1 %v3704_v58  ;;  %v3351_v62 = vmax.f32 %v1847_v12, 0.0 }
 0x398   :  { %v1851_v2 = vpop.f32.mrb[74].mxu0  ;;  %v3352_v55 = vmax.f32 %v1849_v25, 0.0 }
 0x399   :  { %v3354_v46 = vmax.f32 %v1851_v2, 0.0  ;;  %v1853_v0 = vpop.f32.mrb[75].mxu0 }
 0x39a   :  { %v3355_v22 = vmax.f32 %v1853_v0, 0.0 }
 0x39b   :  { %v3707_v1 = vpack.c.bf16 %v3354_v46, %v3351_v62 }
 0x39c   :  { %v3708_v5 = vpack.c.bf16 %v3355_v22, %v3352_v55 }
 0x39e   :  { %v1857_v26 = vpop.f32.mrb[76].mxu0  ;;  %4078 = vmatprep.subr.bf16.mxu1 %v3708_v5 }
 0x39f   :  { %v1859_v41 = vpop.f32.mrb[77].mxu0  ;;  %4079 = vmatpush1.bf16.msra.mxu1 %v3707_v1  ;;  %v3357_v3 = vmax.f32 %v1857_v26, 0.0 }
 0x3a0   :  { %v1861_v23 = vpop.f32.mrb[78].mxu0  ;;  %v3358_v54 = vmax.f32 %v1859_v41, 0.0 }
 0x3a1   :  { %v3360_v47 = vmax.f32 %v1861_v23, 0.0  ;;  %v1863_v20 = vpop.f32.mrb[79].mxu0 }
 0x3a2   :  { %v3361_v42 = vmax.f32 %v1863_v20, 0.0 }
 0x3a3   :  { %v3710_v51 = vpack.c.bf16 %v3360_v47, %v3357_v3 }
 0x3a4   :  { %v3711_v8 = vpack.c.bf16 %v3361_v42, %v3358_v54 }
 0x3a6   :  { %v1867_v63 = vpop.f32.mrb[80].mxu0  ;;  %4080 = vmatprep.subr.bf16.mxu1 %v3711_v8 }
 0x3a7   :  { %v1869_v18 = vpop.f32.mrb[81].mxu0  ;;  %4081 = vmatpush1.bf16.msra.mxu1 %v3710_v51  ;;  %v3363_v59 = vmax.f32 %v1867_v63, 0.0 }
 0x3a8   :  { %v1871_v28 = vpop.f32.mrb[82].mxu0  ;;  %v3364_v52 = vmax.f32 %v1869_v18, 0.0 }
 0x3a9   :  { %v3366_v38 = vmax.f32 %v1871_v28, 0.0  ;;  %v1873_v45 = vpop.f32.mrb[83].mxu0 }
 0x3aa   :  { %v3367_v50 = vmax.f32 %v1873_v45, 0.0 }
 0x3ab   :  { %v3713_v10 = vpack.c.bf16 %v3366_v38, %v3363_v59 }
 0x3ac   :  { %v3714_v49 = vpack.c.bf16 %v3367_v50, %v3364_v52 }
 0x3ae   :  { %v1877_v19 = vpop.f32.mrb[84].mxu0  ;;  %4082 = vmatprep.subr.bf16.mxu1 %v3714_v49 }
 0x3af   :  { %v1879_v43 = vpop.f32.mrb[85].mxu0  ;;  %4083 = vmatpush1.bf16.msra.mxu1 %v3713_v10  ;;  %v3369_v4 = vmax.f32 %v1877_v19, 0.0 }
 0x3b0   :  { %v1881_v56 = vpop.f32.mrb[86].mxu0  ;;  %v3370_v15 = vmax.f32 %v1879_v43, 0.0 }
 0x3b1   :  { %v3372_v48 = vmax.f32 %v1881_v56, 0.0  ;;  %v1883_v57 = vpop.f32.mrb[87].mxu0 }
 0x3b2   :  { %v3373_v36 = vmax.f32 %v1883_v57, 0.0 }
 0x3b3   :  { %v3716_v31 = vpack.c.bf16 %v3372_v48, %v3369_v4 }
 0x3b4   :  { %v3717_v60 = vpack.c.bf16 %v3373_v36, %v3370_v15 }
 0x3b6   :  { %v1887_v34 = vpop.f32.mrb[88].mxu0  ;;  %4084 = vmatprep.subr.bf16.mxu1 %v3717_v60 }
 0x3b7   :  { %v1889_v9 = vpop.f32.mrb[89].mxu0  ;;  %4085 = vmatpush1.bf16.msra.mxu1 %v3716_v31  ;;  %v3375_v6 = vmax.f32 %v1887_v34, 0.0 }
 0x3b8   :  { %v1891_v40 = vpop.f32.mrb[90].mxu0  ;;  %v3376_v7 = vmax.f32 %v1889_v9, 0.0 }
 0x3b9   :  { %v3378_v21 = vmax.f32 %v1891_v40, 0.0  ;;  %v1893_v61 = vpop.f32.mrb[91].mxu0 }
 0x3ba   :  { %v3379_v24 = vmax.f32 %v1893_v61, 0.0 }
 0x3bb   :  { %v3719_v27 = vpack.c.bf16 %v3378_v21, %v3375_v6 }
 0x3bc   :  { %v3720_v33 = vpack.c.bf16 %v3379_v24, %v3376_v7 }
 0x3be   :  { %v1897_v30 = vpop.f32.mrb[92].mxu0  ;;  %4086 = vmatprep.subr.bf16.mxu1 %v3720_v33 }
 0x3bf   :  { %v1899_v35 = vpop.f32.mrb[93].mxu0  ;;  %4087 = vmatpush1.bf16.msra.mxu1 %v3719_v27  ;;  %v3381_v11 = vmax.f32 %v1897_v30, 0.0 }
 0x3c0   :  { %v1901_v58 = vpop.f32.mrb[94].mxu0  ;;  %v3382_v2 = vmax.f32 %v1899_v35, 0.0 }
 0x3c1   :  { %v3384_v12 = vmax.f32 %v1901_v58, 0.0  ;;  %v1903_v25 = vpop.f32.mrb[95].mxu0 }
 0x3c2   :  { %v3385_v62 = vmax.f32 %v1903_v25, 0.0 }
 0x3c3   :  { %v3722_v46 = vpack.c.bf16 %v3384_v12, %v3381_v11 }
 0x3c4   :  { %v3723_v0 = vpack.c.bf16 %v3385_v62, %v3382_v2 }
 0x3c6   :  { %v1907_v55 = vpop.f32.mrb[96].mxu0  ;;  %4088 = vmatprep.subr.bf16.mxu1 %v3723_v0 }
 0x3c7   :  { %v1909_v22 = vpop.f32.mrb[97].mxu0  ;;  %4089 = vmatpush1.bf16.msra.mxu1 %v3722_v46  ;;  %v3387_v5 = vmax.f32 %v1907_v55, 0.0 }
 0x3c8   :  { %v1911_v1 = vpop.f32.mrb[98].mxu0  ;;  %v3388_v23 = vmax.f32 %v1909_v22, 0.0 }
 0x3c9   :  { %v3390_v26 = vmax.f32 %v1911_v1, 0.0  ;;  %v1913_v41 = vpop.f32.mrb[99].mxu0 }
 0x3ca   :  { %v3391_v3 = vmax.f32 %v1913_v41, 0.0 }
 0x3cb   :  { %v3725_v47 = vpack.c.bf16 %v3390_v26, %v3387_v5 }
 0x3cc   :  { %v3726_v20 = vpack.c.bf16 %v3391_v3, %v3388_v23 }
 0x3ce   :  { %v1917_v54 = vpop.f32.mrb[100].mxu0  ;;  %4090 = vmatprep.subr.bf16.mxu1 %v3726_v20 }
 0x3cf   :  { %v1919_v42 = vpop.f32.mrb[101].mxu0  ;;  %4091 = vmatpush1.bf16.msra.mxu1 %v3725_v47  ;;  %v3393_v8 = vmax.f32 %v1917_v54, 0.0 }
 0x3d0   :  { %v1921_v51 = vpop.f32.mrb[102].mxu0  ;;  %v3394_v28 = vmax.f32 %v1919_v42, 0.0 }
 0x3d1   :  { %v3396_v63 = vmax.f32 %v1921_v51, 0.0  ;;  %v1923_v18 = vpop.f32.mrb[103].mxu0 }
 0x3d2   :  { %v3397_v59 = vmax.f32 %v1923_v18, 0.0 }
 0x3d3   :  { %v3728_v38 = vpack.c.bf16 %v3396_v63, %v3393_v8 }
 0x3d4   :  { %v3729_v45 = vpack.c.bf16 %v3397_v59, %v3394_v28 }
 0x3d6   :  { %v1927_v52 = vpop.f32.mrb[104].mxu0  ;;  %4092 = vmatprep.subr.bf16.mxu1 %v3729_v45 }
 0x3d7   :  { %v1929_v50 = vpop.f32.mrb[105].mxu0  ;;  %4093 = vmatpush1.bf16.msra.mxu1 %v3728_v38  ;;  %v3399_v49 = vmax.f32 %v1927_v52, 0.0 }
 0x3d8   :  { %v1931_v10 = vpop.f32.mrb[106].mxu0  ;;  %v3400_v56 = vmax.f32 %v1929_v50, 0.0 }
 0x3d9   :  { %v3402_v19 = vmax.f32 %v1931_v10, 0.0  ;;  %v1933_v43 = vpop.f32.mrb[107].mxu0 }
 0x3da   :  { %v3403_v4 = vmax.f32 %v1933_v43, 0.0 }
 0x3db   :  { %v3731_v48 = vpack.c.bf16 %v3402_v19, %v3399_v49 }
 0x3dc   :  { %v3732_v57 = vpack.c.bf16 %v3403_v4, %v3400_v56 }
 0x3de   :  { %v1937_v15 = vpop.f32.mrb[108].mxu0  ;;  %4094 = vmatprep.subr.bf16.mxu1 %v3732_v57 }
 0x3df   :  { %v1939_v36 = vpop.f32.mrb[109].mxu0  ;;  %4095 = vmatpush1.bf16.msra.mxu1 %v3731_v48  ;;  %v3405_v60 = vmax.f32 %v1937_v15, 0.0 }
 0x3e0   :  { %v1941_v31 = vpop.f32.mrb[110].mxu0  ;;  %v3406_v40 = vmax.f32 %v1939_v36, 0.0 }
 0x3e1   :  { %v3408_v34 = vmax.f32 %v1941_v31, 0.0  ;;  %v1943_v9 = vpop.f32.mrb[111].mxu0 }
 0x3e2   :  { %v3409_v6 = vmax.f32 %v1943_v9, 0.0 }
 0x3e3   :  { %v3734_v21 = vpack.c.bf16 %v3408_v34, %v3405_v60 }
 0x3e4   :  { %v3735_v61 = vpack.c.bf16 %v3409_v6, %v3406_v40 }
 0x3e6   :  { %v1947_v7 = vpop.f32.mrb[112].mxu0  ;;  %4096 = vmatprep.subr.bf16.mxu1 %v3735_v61 }
 0x3e7   :  { %v1949_v24 = vpop.f32.mrb[113].mxu0  ;;  %4097 = vmatpush1.bf16.msra.mxu1 %v3734_v21  ;;  %v3411_v33 = vmax.f32 %v1947_v7, 0.0 }
 0x3e8   :  { %v1951_v27 = vpop.f32.mrb[114].mxu0  ;;  %v3412_v58 = vmax.f32 %v1949_v24, 0.0 }
 0x3e9   :  { %v3414_v30 = vmax.f32 %v1951_v27, 0.0  ;;  %v1953_v35 = vpop.f32.mrb[115].mxu0 }
 0x3ea   :  { %v3415_v11 = vmax.f32 %v1953_v35, 0.0 }
 0x3eb   :  { %v3737_v12 = vpack.c.bf16 %v3414_v30, %v3411_v33 }
 0x3ec   :  { %v3738_v25 = vpack.c.bf16 %v3415_v11, %v3412_v58 }
 0x3ee   :  { %v1957_v2 = vpop.f32.mrb[116].mxu0  ;;  %4098 = vmatprep.subr.bf16.mxu1 %v3738_v25 }
 0x3ef   :  { %v1959_v62 = vpop.f32.mrb[117].mxu0  ;;  %4099 = vmatpush1.bf16.msra.mxu1 %v3737_v12  ;;  %v3417_v0 = vmax.f32 %v1957_v2, 0.0 }
 0x3f0   :  { %v1961_v46 = vpop.f32.mrb[118].mxu0  ;;  %v3418_v1 = vmax.f32 %v1959_v62, 0.0 }
 0x3f1   :  { %v3420_v55 = vmax.f32 %v1961_v46, 0.0  ;;  %v1963_v22 = vpop.f32.mrb[119].mxu0 }
 0x3f2   :  { %v3421_v5 = vmax.f32 %v1963_v22, 0.0 }
 0x3f3   :  { %v3740_v26 = vpack.c.bf16 %v3420_v55, %v3417_v0  ;;  %v3814_v55 = vcombine.high %v5897_v53, %v5897_v53  ;;  %v6118_v53 = vld [vmem:[#allocation20_spill] sm:$0xff] }
 0x3f4   :  { %v3741_v41 = vpack.c.bf16 %v3421_v5, %v3418_v1 }
 0x3f6   :  { %v1967_v23 = vpop.f32.mrb[120].mxu0  ;;  %4100 = vmatprep.subr.bf16.mxu1 %v3741_v41 }
 0x3f7   :  { %v1969_v3 = vpop.f32.mrb[121].mxu0  ;;  %4101 = vmatpush1.bf16.msra.mxu1 %v3740_v26  ;;  %v3423_v20 = vmax.f32 %v1967_v23, 0.0 }
 0x3f8   :  { %v1971_v47 = vpop.f32.mrb[122].mxu0  ;;  %v3424_v51 = vmax.f32 %v1969_v3, 0.0  ;;  %v3828_v3 = vrot.slane %v3814_v55, %v5653_v17  ;;  %v6165_v55 = vld [vmem:[#allocation47_spill] sm:$0xff] }
 0x3f9   :  { %v3426_v54 = vmax.f32 %v1971_v47, 0.0  ;;  %v1973_v42 = vpop.f32.mrb[123].mxu0 }
 0x3fa   :  { %v3427_v8 = vmax.f32 %v1973_v42, 0.0 }
 0x3fb   :  { %v3743_v63 = vpack.c.bf16 %v3426_v54, %v3423_v20 }
 0x3fc   :  { %v3744_v18 = vpack.c.bf16 %v3427_v8, %v3424_v51  ;;  %v5979_v51 = vrot.slane %v3828_v3, %v5653_v17  ;;  %v6119_v8 = vld [vmem:[#allocation13_spill] sm:$0xff] }
 0x3fe   :  { %v1977_v28 = vpop.f32.mrb[124].mxu0  ;;  %4102 = vmatprep.subr.bf16.mxu1 %v3744_v18  ;;  %v6121_v18 = vld [vmem:[#allocation15_spill] sm:$0xff] }
 0x3ff   :  { %v1979_v59 = vpop.f32.mrb[125].mxu0  ;;  %4103 = vmatpush1.bf16.msra.mxu1 %v3743_v63  ;;  %v3429_v45 = vmax.f32 %v1977_v28, 0.0  ;;  %v6120_v63 = vld [vmem:[#allocation6_spill] sm:$0xff]  ;;  %v6122_v28 = vld [vmem:[#allocation8_spill] sm:$0xff] }
 0x400   :  { %v1981_v38 = vpop.f32.mrb[126].mxu0  ;;  %v3430_v10 = vmax.f32 %v1979_v59, 0.0  ;;  %v6123_v59 = vld [vmem:[#allocation14_spill] sm:$0xff] }
 0x401   :  { %v3432_v52 = vmax.f32 %v1981_v38, 0.0  ;;  %v1983_v50 = vpop.f32.mrb[127].mxu0  ;;  %v6124_v38 = vld [vmem:[#allocation7_spill] sm:$0xff] }
 0x402   :  { %v3433_v49 = vmax.f32 %v1983_v50, 0.0  ;;  %v6129_v50 = vld [vmem:[#allocation19_spill] sm:$0xff] }
 0x403   :  { %v3746_v19 = vpack.c.bf16 %v3432_v52, %v3429_v45  ;;  %v6126_v45 = vld [vmem:[#allocation10_spill] sm:$0xff]  ;;  %v6127_v52 = vld [vmem:[#allocation16_spill] sm:$0xff] }
 0x404   :  { %v3747_v43 = vpack.c.bf16 %v3433_v49, %v3430_v10  ;;  %v6130_v10 = vld [vmem:[#allocation12_spill] sm:$0xff]  ;;  %v6131_v49 = vld [vmem:[#allocation18_spill] sm:$0xff] }
 0x406   :  { %v1987_v56 = vpop.f32.mrb[128].mxu0  ;;  %4104 = vmatprep.subr.bf16.mxu1 %v3747_v43  ;;  %v6133_v43 = vld [vmem:[#allocation32_spill] sm:$0xff] }
 0x407   :  { %v1989_v4 = vpop.f32.mrb[129].mxu0  ;;  %4105 = vmatpush1.bf16.msra.mxu1 %v3746_v19  ;;  %v3435_v57 = vmax.f32 %v1987_v56, 0.0  ;;  %v6132_v19 = vld [vmem:[#allocation11_spill] sm:$0xff]  ;;  %v6134_v56 = vld [vmem:[#allocation21_spill] sm:$0xff] }
 0x408   :  { %v1991_v48 = vpop.f32.mrb[130].mxu0  ;;  %v3436_v31 = vmax.f32 %v1989_v4, 0.0  ;;  %v6135_v4 = vld [vmem:[#allocation24_spill] sm:$0xff] }
 0x409   :  { %v3438_v15 = vmax.f32 %v1991_v48, 0.0  ;;  %v1993_v36 = vpop.f32.mrb[131].mxu0  ;;  %v6136_v48 = vld [vmem:[#allocation22_spill] sm:$0xff] }
 0x40a   :  { %v3439_v60 = vmax.f32 %v1993_v36, 0.0  ;;  %4107 = vmatmul.mubr.bf16.vlgmr.msra.gmra.mrb[200].mxu1 %v5970_v44  ;;  %v6139_v36 = vld [vmem:[#allocation34_spill] sm:$0xff] }
 0x40b   :  { %v3749_v34 = vpack.c.bf16 %v3438_v15, %v3435_v57  ;;  %4147 = vmatprep.mubr.bf16.mxu1 %v6098_v39  ;;  %v6137_v57 = vld [vmem:[#allocation31_spill] sm:$0xff] }
 0x40c   :  { %v3750_v9 = vpack.c.bf16 %v3439_v60, %v3436_v31  ;;  %v6138_v15 = vld [vmem:[#allocation23_spill] sm:$0xff]  ;;  %v6140_v31 = vld [vmem:[#allocation26_spill] sm:$0xff]  ;;  %v6141_v60 = vld [vmem:[#allocation33_spill] sm:$0xff] }
 0x40e   :  { %v1997_v40 = vpop.f32.mrb[132].mxu0  ;;  %4115 = vmatprep.subr.bf16.mxu1 %v3750_v9  ;;  %v6143_v9 = vld [vmem:[#allocation36_spill] sm:$0xff] }
 0x40f   :  { %v1999_v6 = vpop.f32.mrb[133].mxu0  ;;  %4116 = vmatpush1.bf16.msra.mxu1 %v3749_v34  ;;  %v3441_v61 = vmax.f32 %v1997_v40, 0.0  ;;  %v6142_v34 = vld [vmem:[#allocation25_spill] sm:$0xff]  ;;  %v6144_v40 = vld [vmem:[#allocation28_spill] sm:$0xff] }
 0x410   :  { %v2001_v21 = vpop.f32.mrb[134].mxu0  ;;  %v3442_v27 = vmax.f32 %v1999_v6, 0.0  ;;  %v6145_v6 = vld [vmem:[#allocation35_spill] sm:$0xff] }
 0x411   :  { %v3444_v7 = vmax.f32 %v2001_v21, 0.0  ;;  %v2003_v24 = vpop.f32.mrb[135].mxu0  ;;  %v6146_v21 = vld [vmem:[#allocation27_spill] sm:$0xff] }
 0x412   :  { %v3445_v33 = vmax.f32 %v2003_v24, 0.0  ;;  %v6149_v24 = vld [vmem:[#allocation37_spill] sm:$0xff] }
 0x413   :  { %v3752_v30 = vpack.c.bf16 %v3444_v7, %v3441_v61  ;;  %v6147_v61 = vld [vmem:[#allocation38_spill] sm:$0xff] }
 0x414   :  { %v3753_v35 = vpack.c.bf16 %v3445_v33, %v3442_v27  ;;  %v6148_v7 = vld [vmem:[#allocation30_spill] sm:$0xff]  ;;  %v6150_v27 = vld [vmem:[#allocation29_spill] sm:$0xff] }
 0x415   :  { %v6151_v33 = vld [vmem:[#allocation49_spill] sm:$0xff] }
 0x416   :  { %v2007_v58 = vpop.f32.mrb[136].mxu0  ;;  %4117 = vmatprep.subr.bf16.mxu1 %v3753_v35  ;;  %v6153_v35 = vld [vmem:[#allocation41_spill] sm:$0xff] }
 0x417   :  { %v2009_v11 = vpop.f32.mrb[137].mxu0  ;;  %4118 = vmatpush1.bf16.msra.mxu1 %v3752_v30  ;;  %v3447_v12 = vmax.f32 %v2007_v58, 0.0  ;;  %v6152_v30 = vld [vmem:[#allocation39_spill] sm:$0xff]  ;;  %v6154_v58 = vld [vmem:[#allocation48_spill] sm:$0xff] }
 0x418   :  { %v2011_v44 = vpop.f32.mrb[138].mxu0  ;;  %v3448_v2 = vmax.f32 %v2009_v11, 0.0  ;;  %v6155_v11 = vld [vmem:[#allocation40_spill] sm:$0xff] }
 0x419   :  { %v3450_v39 = vmax.f32 %v2011_v44, 0.0  ;;  %v2013_v25 = vpop.f32.mrb[139].mxu0  ;;  %v6156_v44 = vld [vmem:[#allocation51_spill] sm:$0xff] }
 0x41a   :  { %v3451_v62 = vmax.f32 %v2013_v25, 0.0  ;;  %v6159_v25 = vld [vmem:[#allocation42_spill] sm:$0xff] }
 0x41b   :  { %v3755_v46 = vpack.c.bf16 %v3450_v39, %v3447_v12  ;;  %v6157_v12 = vld [vmem:[#allocation43_spill] sm:$0xff]  ;;  %v6158_v39 = vld [vmem:[#allocation50_spill] sm:$0xff] }
 0x41c   :  { %v3756_v0 = vpack.c.bf16 %v3451_v62, %v3448_v2  ;;  %v6160_v2 = vld [vmem:[#allocation53_spill] sm:$0xff] }
 0x41d   :  { %v6161_v62 = vld [vmem:[#allocation45_spill] sm:$0xff] }
 0x41e   :  { %v2017_v22 = vpop.f32.mrb[140].mxu0  ;;  %4119 = vmatprep.subr.bf16.mxu1 %v3756_v0  ;;  %v6163_v0 = vld [vmem:[#allocation44_spill] sm:$0xff] }
 0x41f   :  { %v2019_v1 = vpop.f32.mrb[141].mxu0  ;;  %4120 = vmatpush1.bf16.msra.mxu1 %v3755_v46  ;;  %v3453_v26 = vmax.f32 %v2017_v22, 0.0  ;;  %v6162_v46 = vld [vmem:[#allocation52_spill] sm:$0xff]  ;;  %v6166_v22 = vld [vmem:[#allocation54_spill] sm:$0xff] }
 0x420   :  { %v2021_v5 = vpop.f32.mrb[142].mxu0  ;;  %v3454_v47 = vmax.f32 %v2019_v1, 0.0  ;;  %v6167_v1 = vld [vmem:[#allocation46_spill] sm:$0xff] }
 0x421   :  { %v3456_v41 = vmax.f32 %v2021_v5, 0.0  ;;  %v2023_v23 = vpop.f32.mrb[143].mxu0  ;;  %v5324_v5 = vmov 0.0  }
 0x422   :  { %v3457_v20 = vmax.f32 %v2023_v23, 0.0 }
 0x423   :  { %v3758_v54 = vpack.c.bf16 %v3456_v41, %v3453_v26  ;;  %v6168_v26 = vld [vmem:[#allocation57_spill] sm:$0xff]  ;;  %v6169_v41 = vld [vmem:[#allocation56_spill] sm:$0xff] }
 0x424   :  { %v3759_v42 = vpack.c.bf16 %v3457_v20, %v3454_v47 }
 0x426   :  { %4121 = vmatprep.subr.bf16.mxu1 %v3759_v42  ;;  %v4745_v23 = vpop.f32.mrb[144].mxu0 }
 0x427   :  { %4122 = vmatpush1.bf16.msra.mxu1 %v3758_v54  ;;  %v4746_v3 = vpop.f32.mrb[145].mxu0 }
 0x428   :  { %4707 = vmatprep.subr.bf16.mxu1 %v5569_v32  ;;  %v6125_v32 = vld [vmem:[#allocation17_spill] sm:$0xff]  ;;  %v4747_v47 = vadd.f32 %v4746_v3, %v4745_v23 }
 0x42a   :  { %4597 = vmatmul.mubr.msk.bf16.vlgmr.msra.gmra.mrb[200].mxu1 %vm3865_vm0, %v5979_v51 }
 0x42b   :  { %4708 = vmatpush3.bf16.msra.mxu1 %v5545_v37  ;;  %4188 = vmatprep.mubr.bf16.mxu1 %v6118_v53  ;;  %v6128_v37 = vld [vmem:[#allocation9_spill] sm:$0xff] }
 0x42c   :  { %4709 = vmatprep.subr.bf16.mxu1 %v6119_v8 }
 0x42f   :  { %4710 = vmatpush3.bf16.msra.mxu1 %v6120_v63 }
 0x430   :  { %4711 = vmatprep.subr.bf16.mxu1 %v6121_v18 }
 0x433   :  { %4712 = vmatpush3.bf16.msra.mxu1 %v6122_v28 }
 0x434   :  { %4713 = vmatprep.subr.bf16.mxu1 %v6123_v59 }
 0x437   :  { %4714 = vmatpush3.bf16.msra.mxu1 %v6124_v38 }
 0x438   :  { %4715 = vmatprep.subr.bf16.mxu1 %v6125_v32 }
 0x43b   :  { %4716 = vmatpush3.bf16.msra.mxu1 %v6126_v45 }
 0x43c   :  { %4717 = vmatprep.subr.bf16.mxu1 %v6127_v52 }
 0x43f   :  { %4718 = vmatpush3.bf16.msra.mxu1 %v6128_v37 }
 0x440   :  { %4719 = vmatprep.subr.bf16.mxu1 %v6129_v50 }
 0x443   :  { %4720 = vmatpush3.bf16.msra.mxu1 %v6130_v10 }
 0x444   :  { %4721 = vmatprep.subr.bf16.mxu1 %v6131_v49 }
 0x447   :  { %4722 = vmatpush3.bf16.msra.mxu1 %v6132_v19 }
 0x448   :  { %4751 = vmatprep.subr.bf16.mxu1 %v6133_v43 }
 0x44a   :  { %4189 = vmatmul.mubr.bf16.vlgmr.msra.gmra.mrb[204].mxu1 %v6134_v56 }
 0x44b   :  { %4752 = vmatpush3.bf16.msra.mxu1 %v6135_v4  ;;  %4268 = vmatprep.mubr.bf16.mxu1 %v6136_v48 }
 0x44c   :  { %4753 = vmatprep.subr.bf16.mxu1 %v6137_v57 }
 0x44f   :  { %4754 = vmatpush3.bf16.msra.mxu1 %v6138_v15 }
 0x450   :  { %4755 = vmatprep.subr.bf16.mxu1 %v6139_v36 }
 0x453   :  { %4756 = vmatpush3.bf16.msra.mxu1 %v6140_v31 }
 0x454   :  { %4757 = vmatprep.subr.bf16.mxu1 %v6141_v60 }
 0x457   :  { %4758 = vmatpush3.bf16.msra.mxu1 %v6142_v34 }
 0x458   :  { %4759 = vmatprep.subr.bf16.mxu1 %v6143_v9 }
 0x45b   :  { %4760 = vmatpush3.bf16.msra.mxu1 %v6144_v40 }
 0x45c   :  { %4761 = vmatprep.subr.bf16.mxu1 %v6145_v6 }
 0x45f   :  { %4762 = vmatpush3.bf16.msra.mxu1 %v6146_v21 }
 0x460   :  { %4763 = vmatprep.subr.bf16.mxu1 %v6147_v61 }
 0x463   :  { %4764 = vmatpush3.bf16.msra.mxu1 %v6148_v7 }
 0x464   :  { %4765 = vmatprep.subr.bf16.mxu1 %v6149_v24 }
 0x467   :  { %4766 = vmatpush3.bf16.msra.mxu1 %v6150_v27 }
 0x468   :  { %4795 = vmatprep.subr.bf16.mxu1 %v6151_v33 }
 0x46a   :  { %4269 = vmatmul.mubr.bf16.vlgmr.msra.gmra.mrb[208].mxu1 %v6152_v30 }
 0x46b   :  { %4796 = vmatpush3.bf16.msra.mxu1 %v6153_v35  ;;  %4348 = vmatprep.mubr.bf16.mxu1 %v5908_v14  ;;  %v6164_v14 = vld [vmem:[#allocation55_spill] sm:$0xff] }
 0x46c   :  { %4797 = vmatprep.subr.bf16.mxu1 %v6154_v58 }
 0x46f   :  { %4798 = vmatpush3.bf16.msra.mxu1 %v6155_v11 }
 0x470   :  { %4799 = vmatprep.subr.bf16.mxu1 %v6156_v44 }
 0x473   :  { %4800 = vmatpush3.bf16.msra.mxu1 %v6157_v12 }
 0x474   :  { %4801 = vmatprep.subr.bf16.mxu1 %v6158_v39 }
 0x477   :  { %4802 = vmatpush3.bf16.msra.mxu1 %v6159_v25 }
 0x478   :  { %4803 = vmatprep.subr.bf16.mxu1 %v6160_v2  ;;  %v6170_v2 = vlaneseq }
 0x47a   :  { %vm4465_vm2 = vcmp.lt.s32.totalorder %v6170_v2, 384 }
 0x47b   :  { %4804 = vmatpush3.bf16.msra.mxu1 %v6161_v62 }
 0x47c   :  { %4805 = vmatprep.subr.bf16.mxu1 %v6162_v46 }
 0x47f   :  { %4806 = vmatpush3.bf16.msra.mxu1 %v6163_v0 }
 0x480   :  { %4807 = vmatprep.subr.bf16.mxu1 %v6164_v14 }
 0x483   :  { %4808 = vmatpush3.bf16.msra.mxu1 %v6165_v55 }
 0x484   :  { %4809 = vmatprep.subr.bf16.mxu1 %v6166_v22 }
 0x487   :  { %4810 = vmatpush3.bf16.msra.mxu1 %v6167_v1 }
 0x488   :  { %5060 = vmatprep.subr.bf16.mxu1 %v5324_v5 }
 0x48a   :  { %4349 = vmatmul.mubr.bf16.vlgmr.msra.gmra.mrb[212].mxu1 %v5958_v16  ;;  %v4748_v16 = vpop.f32.mrb[146].mxu0 }
 0x48b   :  { %5061 = vmatpush3.bf16.msra.mxu1 %v6168_v26  ;;  %5068 = vmatprep.mubr.msk.bf16.mxu1 %vm5325_vm1, %v5324_v5  ;;  %v4749_v20 = vpop.f32.mrb[147].mxu0 }
 0x48c   :  { %5062 = vmatprep.subr.bf16.mxu1 %v5324_v5  ;;  %v4789_v54 = vpop.f32.mrb[148].mxu0 }
 0x48d   :  { %v4790_v42 = vpop.f32.mrb[149].mxu0 }
 0x48e   :  { %v4791_v53 = vadd.f32 %v4790_v42, %v4789_v54  ;;  %v4792_v8 = vpop.f32.mrb[150].mxu0 }
 0x48f   :  { %5063 = vmatpush3.bf16.msra.mxu1 %v6169_v41  ;;  %v4793_v63 = vpop.f32.mrb[151].mxu0 }
 0x490   :  { %5064 = vmatprep.subr.bf16.mxu1 %v5324_v5  ;;  %v4833_v18 = vpop.f32.mrb[152].mxu0 }
 0x491   :  { %v4834_v28 = vpop.f32.mrb[153].mxu0 }
 0x492   :  { %v4835_v59 = vadd.f32 %v4834_v28, %v4833_v18 }
 0x493   :  { %5065 = vmatpush3.bf16.msra.mxu1 %v5920_v13  ;;  %v4836_v13 = vpop.f32.mrb[154].mxu0 }
 0x494   :  { %5066 = vmatprep.subr.bf16.mxu1 %v5324_v5  ;;  %v4837_v38 = vpop.f32.mrb[155].mxu0 }
 0x497   :  { %5067 = vmatpush3.bf16.msra.mxu1 %v5918_v29  ;;  %v3762_v29 = vstv %s6056_s3 }
 0x49a   :  { %5069 = vmatmul.mubr.msk.bf16.vlgmr.msra.gmra.mrb[216].mxu1 %vm3865_vm0, %v5979_v51 }
 0x4fd   :  { %v4149_v51 = vpop.f32.mrb[200].mxu1 }
 0x4fe   :  { %v5072_v32 = vadd.f32 %v4149_v51, %v3762_v29  ;;  %v4151_v45 = vpop.f32.mrb[201].mxu1 }
 0x4ff   :  { %v5073_v52 = vadd.f32 %v4151_v45, %v3762_v29  ;;  %v4153_v37 = vpop.f32.mrb[202].mxu1 }
 0x500   :  { %v4154_v50 = vpop.f32.mrb[203].mxu1 }
 0x501   :  { %v4439_v10 = vcombine.low %v5072_v32, %v5073_v52 }
 0x503   :  { %v4446_v44 = vrot.slane %v4439_v10, %v5653_v17 }
 0x51d   :  { %v4723_v49 = vpop.f32.mrb[204].mxu1 }
 0x51e   :  { %v4724_v19 = vpop.f32.mrb[205].mxu1 }
 0x51f   :  { %v4725_v43 = vadd.f32 %v4724_v19, %v4723_v49  ;;  %v4726_v56 = vpop.f32.mrb[206].mxu1 }
 0x520   :  { %v4727_v4 = vpop.f32.mrb[207].mxu1 }
 0x521   :  { %v4191_v48 = vadd.f32 %v4725_v43, %v3762_v29 }
 0x523   :  { %v4231_v57 = vadd.f32 %v4747_v47, %v4191_v48 }
 0x53d   :  { %v4767_v15 = vpop.f32.mrb[208].mxu1 }
 0x53e   :  { %v4768_v36 = vpop.f32.mrb[209].mxu1 }
 0x53f   :  { %v4769_v31 = vadd.f32 %v4768_v36, %v4767_v15  ;;  %v4770_v60 = vpop.f32.mrb[210].mxu1 }
 0x540   :  { %v4771_v34 = vpop.f32.mrb[211].mxu1 }
 0x541   :  { %v4271_v9 = vadd.f32 %v4769_v31, %v4231_v57 }
 0x543   :  { %v4311_v40 = vadd.f32 %v4791_v53, %v4271_v9 }
 0x55d   :  { %v4811_v6 = vpop.f32.mrb[212].mxu1 }
 0x55e   :  { %v4812_v21 = vpop.f32.mrb[213].mxu1 }
 0x55f   :  { %v4813_v61 = vadd.f32 %v4812_v21, %v4811_v6  ;;  %v4814_v7 = vpop.f32.mrb[214].mxu1 }
 0x560   :  { %v4815_v24 = vpop.f32.mrb[215].mxu1 }
 0x561   :  { %v4351_v27 = vadd.f32 %v4813_v61, %v4311_v40 }
 0x563   :  { %v4391_v33 = vadd.f32 %v4835_v59, %v4351_v27 }
 0x56d   :  { %v4430_v30 = vpop.f32.mrb[216].mxu1 }
 0x56e   :  { %v4431_v35 = vadd.f32 %v4430_v30, %v4391_v33  ;;  %v5070_v58 = vpop.f32.mrb[217].mxu1 }
 0x56f   :  { %v4433_v11 = vpop.f32.mrb[218].mxu1 }
 0x570   :  { %v4453_v12 = vrot.slane %v4431_v35, %v5653_v17  ;;  %v5071_v39 = vpop.f32.mrb[219].mxu1 }
 0x572   :  { %v4454_v25 = vcombine.low %v4446_v44, %v4453_v12 }
 0x574   :  { %v4461_v62 = vrot.slane %v4454_v25, %v5653_v17 }
 0x576   :  { %4467 = vst.msk [vmem:[%s6057_s4] sm:$0x7] %vm4465_vm2, %v4461_v62 }
 0x577   :  { %4472 = vsyncpa [#allocation4], 1 }

</bundles_post_ra>
